<compile_context>
chip_gen: v6e
topology: v6e:2x2x1
jax: 0.10.0
libtpu: 0.0.40
codegen_flags: <defaults>
</compile_context>

<pallas_src>
import math
import functools

import jax
import jax.numpy as jnp
from jax import lax
from jax.experimental import pallas as pl
from jax.experimental.pallas import tpu as pltpu

F32 = jnp.float32
BF16 = jnp.bfloat16


def _softmax_lastdim(s):
    m = jnp.max(s, axis=-1, keepdims=True)
    e = jnp.exp(s - m)
    # approx reciprocal runs on the otherwise idle EUP slot; use approx=False for
    # bit-tighter parity with the torch reference.
    return e * pl.reciprocal(jnp.sum(e, axis=-1, keepdims=True), approx=True)


def _split_heads(t, n_heads):
    # (n_heads*hd, L) -> (n_heads, hd, L) via static slices + stack.
    # (ch=8 slices are sublane-granule aligned; stack/concat is the safest
    # lowering path, avoiding reliance on in-kernel reshape support.)
    hd = t.shape[0] // n_heads
    return jnp.stack([t[h * hd:(h + 1) * hd, :] for h in range(n_heads)], axis=0)


def _merge_heads(t):
    # (n_heads, hd, L) -> (n_heads*hd, L), head-major channel order.
    return jnp.concatenate([t[h] for h in range(t.shape[0])], axis=0)


# Row layouts of the packed slabs (wrapper builds them in this exact order).
def _w32_offsets(ref_dim, dim):
    o, r = {}, 0
    o["wq"] = r; r += ref_dim          # cross-attn Wq           (ref_dim, ref_dim)
    o["wkv"] = r; r += 2 * ref_dim     # cross-attn [Wk; Wv]     (2*ref_dim, ref_dim)
    o["wo"] = r; r += ref_dim          # cross-attn Wo           (ref_dim, ref_dim)
    o["conv"] = r; r += 3 * dim        # conv taps k=0,1,2       (3*dim, ref_dim)
    o["rows"] = r
    return o


def _fmisc_offsets(ref_dim, dim):
    o, r = {}, 0
    o["ga"] = r; r += dim              # group-averaging matrix  (dim, dim)
    o["lat"] = r; r += ref_dim         # latents^T               (ref_dim, num_latents)
    o["bq"] = r; r += ref_dim          # column vectors (col 0)
    o["bkv"] = r; r += 2 * ref_dim
    o["bo"] = r; r += ref_dim
    o["conv_b"] = r; r += dim
    o["rows"] = r
    return o


# --------------------------------------------------------------------------
# Fused RefEncoder forward kernel (one grid step per batch element)
# --------------------------------------------------------------------------
def _ref_encoder_kernel(
    x_ref,        # (1, ref_dim, T)              f32
    w32_ref,      # (4*ref_dim + 3*dim, ref_dim) bf16
    w64_ref,      # (n_blocks*4*dim, dim)        bf16
    fmisc_ref,    # (2*dim + 5*ref_dim, >=dim)   f32
    blkvec_ref,   # (n_blocks, 3*dim, 4)         f32  [gamma | beta | qkv_b | proj_b]
    relbias_ref,  # (n_blocks, H, L, L)          bf16
    out_ref,      # (1, 1, ref_dim)              f32
    *, num_heads, n_blocks, ref_dim, dim, num_latents,
):
    H = num_heads
    hd = ref_dim // H
    ch = dim // H
    Nq = num_latents

    x = x_ref[0]                                   # (ref_dim, T) f32
    T = x.shape[1]
    L = Nq + T
    xb = x.astype(BF16)

    wo32 = _w32_offsets(ref_dim, dim)
    fo = _fmisc_offsets(ref_dim, dim)

    # ------------- cross attention: query = latents, key/value = x -------------
    wq = w32_ref[wo32["wq"]:wo32["wq"] + ref_dim, :]
    wkv = w32_ref[wo32["wkv"]:wo32["wkv"] + 2 * ref_dim, :]
    wo = w32_ref[wo32["wo"]:wo32["wo"] + ref_dim, :]
    lat = fmisc_ref[fo["lat"]:fo["lat"] + ref_dim, 0:Nq]
    bq = fmisc_ref[fo["bq"]:fo["bq"] + ref_dim, 0:1]
    bkv = fmisc_ref[fo["bkv"]:fo["bkv"] + 2 * ref_dim, 0:1]
    bo = fmisc_ref[fo["bo"]:fo["bo"] + ref_dim, 0:1]

    q = jnp.dot(wq, lat.astype(BF16), preferred_element_type=F32) + bq      # (ref_dim, Nq)
    kv = jnp.dot(wkv, xb, preferred_element_type=F32) + bkv                 # (2*ref_dim, T)
    k = kv[0:ref_dim, :]
    v = kv[ref_dim:2 * ref_dim, :]

    qh = _split_heads(q, H).astype(BF16)                                    # (H, hd, Nq)
    kh = _split_heads(k, H).astype(BF16)                                    # (H, hd, T)
    vh = _split_heads(v, H).astype(BF16)
    s = jnp.einsum('hcq,hct->hqt', qh, kh,
                   preferred_element_type=F32) * (1.0 / math.sqrt(hd))      # (H, Nq, T)
    p = _softmax_lastdim(s)
    o = jnp.einsum('hct,hqt->hcq', vh, p.astype(BF16),
                   preferred_element_type=F32)                              # (H, hd, Nq)
    lat_out = jnp.dot(wo, _merge_heads(o).astype(BF16),
                      preferred_element_type=F32) + bo                      # (ref_dim, Nq)

    # ------ concat along length; Conv1d(k=3, pad=1) as 3 accumulating taps ------
    # Shifted operands via in-register 0/1 shift matrices on the MXU (no copies).
    h_cat = jnp.concatenate([lat_out, x], axis=1)                           # (ref_dim, L)
    hcb = h_cat.astype(BF16)
    row = lax.broadcasted_iota(jnp.int32, (L, L), 0)
    col = lax.broadcasted_iota(jnp.int32, (L, L), 1)
    sh_l = jnp.where(row + 1 == col, 1.0, 0.0).astype(BF16)   # col t <- h[:, t-1], 0 at t=0
    sh_r = jnp.where(row == col + 1, 1.0, 0.0).astype(BF16)   # col t <- h[:, t+1], 0 at t=L-1
    h_left = jnp.dot(hcb, sh_l, preferred_element_type=F32).astype(BF16)
    h_right = jnp.dot(hcb, sh_r, preferred_element_type=F32).astype(BF16)

    c0 = wo32["conv"]
    wc0 = w32_ref[c0:c0 + dim, :]
    wc1 = w32_ref[c0 + dim:c0 + 2 * dim, :]
    wc2 = w32_ref[c0 + 2 * dim:c0 + 3 * dim, :]
    conv_b = fmisc_ref[fo["conv_b"]:fo["conv_b"] + dim, 0:1]
    h = (jnp.dot(wc0, h_left, preferred_element_type=F32)
         + jnp.dot(wc1, hcb, preferred_element_type=F32)
         + jnp.dot(wc2, h_right, preferred_element_type=F32)
         + conv_b)                                                          # (dim, L) f32

    ga = fmisc_ref[fo["ga"]:fo["ga"] + dim, 0:dim]            # block-diag group averaging
    scale = 1.0 / math.sqrt(math.sqrt(ch))

    # -------------------- n_blocks x AttentionBlock (fori_loop) --------------------
    def block_body(b, h):
        bv = blkvec_ref[b]                                    # (3*dim, 4) f32
        gamma = bv[0:dim, 0:1]
        beta = bv[0:dim, 1:2]
        qkv_b = bv[0:3 * dim, 2:3]
        proj_b = bv[0:dim, 3:4]

        # GroupNorm(32, dim): one matmul group-averages both mean and mean-square.
        mc = jnp.mean(h, axis=1, keepdims=True)                             # (dim, 1)
        msq = jnp.mean(h * h, axis=1, keepdims=True)                        # (dim, 1)
        gstats = jnp.dot(ga, jnp.concatenate([mc, msq], axis=1),
                         preferred_element_type=F32)                        # (dim, 2)
        gmean = gstats[:, 0:1]
        gvar = gstats[:, 1:2] - gmean * gmean
        hn = (h - gmean) * lax.rsqrt(gvar + 1e-5) * gamma + beta

        # qkv 1x1 conv as ONE (3*dim, dim) @ (dim, L) matmul (weights host-reordered
        # to [q_all | k_all | v_all] so the q/k/v splits are full-width row slices).
        qkv_off = pl.multiple_of(b * (3 * dim), 3 * dim)
        wqkv = w64_ref[pl.ds(qkv_off, 3 * dim), :]
        qkv = jnp.dot(wqkv, hn.astype(BF16), preferred_element_type=F32) + qkv_b

        qh = _split_heads(qkv[0:dim, :] * scale, H).astype(BF16)            # (H, ch, L)
        kh = _split_heads(qkv[dim:2 * dim, :] * scale, H).astype(BF16)
        vh = _split_heads(qkv[2 * dim:3 * dim, :], H).astype(BF16)
        w = jnp.einsum('hct,hcs->hts', qh, kh,
                       preferred_element_type=F32) + relbias_ref[b].astype(F32)
        pw = _softmax_lastdim(w)
        a = jnp.einsum('hcs,hts->hct', vh, pw.astype(BF16),
                       preferred_element_type=F32)                          # (H, ch, L)

        proj_off = pl.multiple_of(n_blocks * 3 * dim + b * dim, dim)
        wproj = w64_ref[pl.ds(proj_off, dim), :]
        proj = jnp.dot(wproj, _merge_heads(a).astype(BF16),
                       preferred_element_type=F32) + proj_b                 # (dim, L)
        return h + proj                                                     # residual

    h = lax.fori_loop(0, n_blocks, block_body, h)

    # ----- h[:ref_dim, :].mean(-1), emitted lane-dense as (1, 1, ref_dim) -----
    ones = jnp.full((8, L), 1.0 / L, F32)            # 8 identical rows: sublane-aligned
    red = lax.dot_general(ones, h[0:ref_dim, :], (((1,), (1,)), ((), ())),
                          preferred_element_type=F32)                       # (8, ref_dim)
    out_ref[...] = red[0:1, :][None]                                        # (1, 1, ref_dim)


# --------------------------------------------------------------------------
# Relative-position bias (tortoise RelativePositionBias, non-causal)
# --------------------------------------------------------------------------
# TODO(synk): bucket-index arithmetic + embedding gather have no clean Pallas
# equivalent at this size; they are precomputed in plain JAX and fed to the
# kernel as a constant (blocks, heads, L, L) bf16 bias table.
def relative_position_bias(emb, length, scale, num_buckets=32, max_distance=64):
    pos = jnp.arange(length)
    rel = pos[None, :] - pos[:, None]
    n = -rel
    half = num_buckets // 2
    ret = (n < 0).astype(jnp.int32) * half
    n = jnp.abs(n)
    max_exact = half // 2
    is_small = n < max_exact
    val_if_large = max_exact + (
        jnp.log(jnp.maximum(n, 1).astype(jnp.float32) / max_exact)
        / math.log(max_distance / max_exact) * (half - max_exact)
    ).astype(jnp.int32)
    val_if_large = jnp.minimum(val_if_large, half - 1)
    buckets = ret + jnp.where(is_small, n, val_if_large)      # (L, L)
    values = emb[buckets]                                     # (L, L, heads)
    return jnp.transpose(values, (2, 0, 1)) * scale           # (heads, L, L)


# --------------------------------------------------------------------------
# Wrapper: host-side slab packing + single pallas_call
# --------------------------------------------------------------------------
def ref_encoder_forward(x, params, *, num_heads, groups=32):
    B, ref_dim, T = x.shape
    latents = params["latents"]                    # (num_latents, ref_dim)
    Nq = latents.shape[0]
    dim = params["conv_w"].shape[0]
    blocks = params["blocks"]
    n_blocks = len(blocks)
    H = num_heads
    ch = dim // H
    L = Nq + T

    ca = params["ca"]
    cw = params["conv_w"]                          # (dim, ref_dim, 3)

    # --- bf16 weight slab #1: all (., ref_dim)-wide weights (order = _w32_offsets) ---
    w32 = jnp.concatenate(
        [ca["wq"], ca["wk"], ca["wv"], ca["wo"], cw[:, :, 0], cw[:, :, 1], cw[:, :, 2]],
        axis=0).astype(BF16)                       # (4*ref_dim + 3*dim, ref_dim)

    # --- bf16 weight slab #2: all (., dim)-wide weights [qkv blocks | proj blocks] ---
    def reorder_qkv(wb):   # per-head [q|k|v] rows -> [q_allheads | k_allheads | v_allheads]
        t = wb.reshape(H, 3, ch, -1)
        return jnp.transpose(t, (1, 0, 2, 3)).reshape(3 * dim, -1)

    w64 = jnp.concatenate(
        [reorder_qkv(b["wqkv"]) for b in blocks] + [b["wproj"] for b in blocks],
        axis=0).astype(BF16)                       # (n_blocks*4*dim, dim)

    # --- f32 misc slab: group-averaging matrix, latents^T, bias columns (col 0) ---
    gs = dim // groups
    idx = jnp.arange(dim)
    ga = (idx[:, None] // gs == idx[None, :] // gs).astype(jnp.float32) / gs

    fcols = max(dim, Nq)

    def padc(a):
        return jnp.pad(a, ((0, 0), (0, fcols - a.shape[1])))

    fmisc = jnp.concatenate([                      # order = _fmisc_offsets
        padc(ga),
        padc(jnp.transpose(latents)),
        padc(ca["bq"]),
        padc(jnp.concatenate([ca["bk"], ca["bv"]], axis=0)),
        padc(ca["bo"]),
        padc(params["conv_b"]),
    ], axis=0)                                     # (2*dim + 5*ref_dim, fcols)

    # --- per-block f32 bias columns: [gamma | beta | qkv_bias(reordered) | proj_bias] ---
    rows = 3 * dim

    def padr(v):
        return jnp.pad(v, ((0, rows - v.shape[0]), (0, 0)))

    blk_vec = jnp.stack([
        jnp.concatenate([padr(b["gamma"]), padr(b["beta"]),
                         reorder_qkv(b["bqkv"]), padr(b["bproj"])], axis=1)
        for b in blocks])                          # (n_blocks, 3*dim, 4)

    # --- additive rel-pos bias, precomputed; bf16 to bound VMEM growth (~L^2) on v7x ---
    rel_scale = math.sqrt(ch)
    relbias = jnp.stack(
        [relative_position_bias(b["rel_emb"], L, rel_scale) for b in blocks]
    ).astype(BF16)                                 # (n_blocks, H, L, L)

    # --- advisory cost estimate for XLA's scheduler around the custom call ---
    flops = 2 * B * (
        ref_dim * ref_dim * Nq                     # cross-attn q proj
        + 2 * ref_dim * ref_dim * T                # cross-attn k/v proj
        + 2 * ref_dim * Nq * T                     # cross-attn scores + attend
        + ref_dim * ref_dim * Nq                   # cross-attn out proj
        + 2 * ref_dim * L * L                      # conv shift matmuls
        + 3 * dim * ref_dim * L                    # conv taps
        + n_blocks * (3 * dim * dim * L + 2 * dim * L * L + dim * dim * L + 2 * dim * dim)
    )
    transcend = B * (H * Nq * T + n_blocks * H * L * L)
    bytes_accessed = int(x.size * 4 + w32.size * 2 + w64.size * 2 + fmisc.size * 4
                         + blk_vec.size * 4 + relbias.size * 2 + B * ref_dim * 4)

    def full_spec(a):
        nd = a.ndim
        return pl.BlockSpec(a.shape, lambda b, _nd=nd: (0,) * _nd)

    kern = functools.partial(
        _ref_encoder_kernel, num_heads=H, n_blocks=n_blocks,
        ref_dim=ref_dim, dim=dim, num_latents=Nq)

    out = pl.pallas_call(
        kern,
        out_shape=jax.ShapeDtypeStruct((B, 1, ref_dim), jnp.float32),
        grid=(B,),
        in_specs=[
            pl.BlockSpec((1, ref_dim, T), lambda b: (b, 0, 0)),
            full_spec(w32), full_spec(w64), full_spec(fmisc),
            full_spec(blk_vec), full_spec(relbias),
        ],
        out_specs=pl.BlockSpec((1, 1, ref_dim), lambda b: (b, 0, 0)),
        compiler_params=pltpu.CompilerParams(dimension_semantics=("parallel",)),
        cost_estimate=pl.CostEstimate(flops=int(flops), transcendentals=int(transcend),
                                      bytes_accessed=bytes_accessed),
    )(x, w32, w64, fmisc, blk_vec, relbias)
    return out[:, 0, :]


# --------------------------------------------------------------------------
# Synthetic parameters
# --------------------------------------------------------------------------
def init_params(key, ref_dim, dim, num_latents, num_heads, num_buckets=32):
    keys = jax.random.split(key, 48)
    it = iter(keys)

    def nrm(shape, std=0.05):
        return std * jax.random.normal(next(it), shape, dtype=jnp.float32)

    p = {}
    p["latents"] = 0.02 * jax.random.normal(next(it), (num_latents, ref_dim), jnp.float32)
    p["ca"] = dict(
        wq=nrm((ref_dim, ref_dim)), bq=nrm((ref_dim, 1)),
        wk=nrm((ref_dim, ref_dim)), bk=nrm((ref_dim, 1)),
        wv=nrm((ref_dim, ref_dim)), bv=nrm((ref_dim, 1)),
        wo=nrm((ref_dim, ref_dim)), bo=nrm((ref_dim, 1)),
    )
    p["conv_w"] = nrm((dim, ref_dim, 3))
    p["conv_b"] = nrm((dim, 1))
    blocks = []
    for _ in range(4):
        blocks.append(dict(
            gamma=1.0 + nrm((dim, 1), 0.1),
            beta=nrm((dim, 1), 0.1),
            wqkv=nrm((3 * dim, dim)),
            bqkv=nrm((3 * dim, 1)),
            rel_emb=nrm((num_buckets, num_heads)),
            wproj=nrm((dim, dim)),     # original is zero-init; random to exercise compute
            bproj=nrm((dim, 1)),
        ))
    p["blocks"] = blocks
    return p


if __name__ == "__main__":
    batch, ref_dim, dim, T = 2, 32, 64, 8        # keep batch a multiple of 2 for v7x
    num_latents, num_heads = 32, 8

    key = jax.random.PRNGKey(0)
    kx, kp = jax.random.split(key)
    x = jax.random.normal(kx, (batch, ref_dim, T), dtype=jnp.float32)   # NCL layout
    params = init_params(kp, ref_dim, dim, num_latents, num_heads)

    fwd = jax.jit(functools.partial(ref_encoder_forward, num_heads=num_heads))
    out = jax.block_until_ready(fwd(x, params))

    assert out.shape == (batch, ref_dim), out.shape
    assert bool(jnp.all(jnp.isfinite(out)))
    print("KERNEL_OK")
</pallas_src>

<mosaic_0001>
module attributes {stable_mosaic.version = 11 : i64} {
  func.func @_ref_encoder_kernel(%arg0: i32, %arg1: memref<1x32x8xf32, #tpu.memory_space<vmem>>, %arg2: memref<320x32xbf16, #tpu.memory_space<vmem>>, %arg3: memref<1024x64xbf16, #tpu.memory_space<vmem>>, %arg4: memref<288x64xf32, #tpu.memory_space<vmem>>, %arg5: memref<4x192x4xf32, #tpu.memory_space<vmem>>, %arg6: memref<4x8x40x40xbf16, #tpu.memory_space<vmem>>, %arg7: memref<1x1x32xf32, #tpu.memory_space<vmem>>) attributes {dimension_semantics = [#tpu.dimension_semantics<parallel>], iteration_bounds = array<i64: 2>, scalar_prefetch = 0 : i64, scratch_operands = 0 : i64, tpu.core_type = #tpu.core_type<tc>, window_params = [{transform_indices = @transform_0, window_bounds = array<i64: 1, 32, 8>}, {pipeline_mode = #tpu.pipeline_mode<synchronous>, transform_indices = @transform_1, window_bounds = array<i64: 320, 32>}, {pipeline_mode = #tpu.pipeline_mode<synchronous>, transform_indices = @transform_2, window_bounds = array<i64: 1024, 64>}, {pipeline_mode = #tpu.pipeline_mode<synchronous>, transform_indices = @transform_3, window_bounds = array<i64: 288, 64>}, {pipeline_mode = #tpu.pipeline_mode<synchronous>, transform_indices = @transform_4, window_bounds = array<i64: 4, 192, 4>}, {pipeline_mode = #tpu.pipeline_mode<synchronous>, transform_indices = @transform_5, window_bounds = array<i64: 4, 8, 40, 40>}, {transform_indices = @transform_6, window_bounds = array<i64: 1, 1, 32>}]} {
    %c0 = arith.constant 0 : index
    %c0_0 = arith.constant 0 : index
    %c0_1 = arith.constant 0 : index
    %0 = vector.load %arg1[%c0, %c0_0, %c0_1] : memref<1x32x8xf32, #tpu.memory_space<vmem>>, vector<1x32x8xf32>
    %1 = vector.shape_cast %0 : vector<1x32x8xf32> to vector<32x8xf32>
    %2 = arith.truncf %1 : vector<32x8xf32> to vector<32x8xbf16>
    %c0_2 = arith.constant 0 : index
    %c0_3 = arith.constant 0 : index
    %3 = vector.load %arg2[%c0_2, %c0_3] : memref<320x32xbf16, #tpu.memory_space<vmem>>, vector<32x32xbf16>
    %c32 = arith.constant 32 : index
    %c0_4 = arith.constant 0 : index
    %4 = vector.load %arg2[%c32, %c0_4] : memref<320x32xbf16, #tpu.memory_space<vmem>>, vector<64x32xbf16>
    %c96 = arith.constant 96 : index
    %c0_5 = arith.constant 0 : index
    %5 = vector.load %arg2[%c96, %c0_5] : memref<320x32xbf16, #tpu.memory_space<vmem>>, vector<32x32xbf16>
    %c64 = arith.constant 64 : index
    %c0_6 = arith.constant 0 : index
    %6 = vector.load %arg4[%c64, %c0_6] : memref<288x64xf32, #tpu.memory_space<vmem>>, vector<32x32xf32>
    %c96_7 = arith.constant 96 : index
    %c0_8 = arith.constant 0 : index
    %7 = vector.load %arg4[%c96_7, %c0_8] : memref<288x64xf32, #tpu.memory_space<vmem>>, vector<32x1xf32>
    %c128 = arith.constant 128 : index
    %c0_9 = arith.constant 0 : index
    %8 = vector.load %arg4[%c128, %c0_9] : memref<288x64xf32, #tpu.memory_space<vmem>>, vector<64x1xf32>
    %c192 = arith.constant 192 : index
    %c0_10 = arith.constant 0 : index
    %9 = vector.load %arg4[%c192, %c0_10] : memref<288x64xf32, #tpu.memory_space<vmem>>, vector<32x1xf32>
    %10 = arith.truncf %6 : vector<32x32xf32> to vector<32x32xbf16>
    %cst = arith.constant dense<0.000000e+00> : vector<32x32xf32>
    %11 = tpu.matmul %3, %10, %cst {dimension_numbers = #tpu.dot_dimension_numbers<[1], [0], [0], [1], [0, 0, 1, 1], [], []>} : vector<32x32xbf16>, vector<32x32xbf16>, vector<32x32xf32> -> vector<32x32xf32>
    %12 = vector.broadcast %7 : vector<32x1xf32> to vector<32x32xf32>
    %13 = arith.addf %11, %12 : vector<32x32xf32>
    %cst_11 = arith.constant dense<0.000000e+00> : vector<64x8xf32>
    %14 = tpu.matmul %4, %2, %cst_11 {dimension_numbers = #tpu.dot_dimension_numbers<[1], [0], [0], [1], [0, 0, 1, 1], [], []>} : vector<64x32xbf16>, vector<32x8xbf16>, vector<64x8xf32> -> vector<64x8xf32>
    %15 = vector.broadcast %8 : vector<64x1xf32> to vector<64x8xf32>
    %16 = arith.addf %14, %15 : vector<64x8xf32>
    %17 = vector.extract_strided_slice %16 {offsets = [0, 0], sizes = [32, 8], strides = [1, 1]} : vector<64x8xf32> to vector<32x8xf32>
    %18 = vector.extract_strided_slice %16 {offsets = [32, 0], sizes = [32, 8], strides = [1, 1]} : vector<64x8xf32> to vector<32x8xf32>
    %19 = vector.extract_strided_slice %13 {offsets = [0, 0], sizes = [4, 32], strides = [1, 1]} : vector<32x32xf32> to vector<4x32xf32>
    %20 = vector.extract_strided_slice %13 {offsets = [4, 0], sizes = [4, 32], strides = [1, 1]} : vector<32x32xf32> to vector<4x32xf32>
    %21 = vector.extract_strided_slice %13 {offsets = [8, 0], sizes = [4, 32], strides = [1, 1]} : vector<32x32xf32> to vector<4x32xf32>
    %22 = vector.extract_strided_slice %13 {offsets = [12, 0], sizes = [4, 32], strides = [1, 1]} : vector<32x32xf32> to vector<4x32xf32>
    %23 = vector.extract_strided_slice %13 {offsets = [16, 0], sizes = [4, 32], strides = [1, 1]} : vector<32x32xf32> to vector<4x32xf32>
    %24 = vector.extract_strided_slice %13 {offsets = [20, 0], sizes = [4, 32], strides = [1, 1]} : vector<32x32xf32> to vector<4x32xf32>
    %25 = vector.extract_strided_slice %13 {offsets = [24, 0], sizes = [4, 32], strides = [1, 1]} : vector<32x32xf32> to vector<4x32xf32>
    %26 = vector.extract_strided_slice %13 {offsets = [28, 0], sizes = [4, 32], strides = [1, 1]} : vector<32x32xf32> to vector<4x32xf32>
    %27 = vector.shape_cast %19 : vector<4x32xf32> to vector<1x4x32xf32>
    %28 = vector.shape_cast %20 : vector<4x32xf32> to vector<1x4x32xf32>
    %29 = vector.shape_cast %21 : vector<4x32xf32> to vector<1x4x32xf32>
    %30 = vector.shape_cast %22 : vector<4x32xf32> to vector<1x4x32xf32>
    %31 = vector.shape_cast %23 : vector<4x32xf32> to vector<1x4x32xf32>
    %32 = vector.shape_cast %24 : vector<4x32xf32> to vector<1x4x32xf32>
    %33 = vector.shape_cast %25 : vector<4x32xf32> to vector<1x4x32xf32>
    %34 = vector.shape_cast %26 : vector<4x32xf32> to vector<1x4x32xf32>
    %35 = tpu.concatenate %27, %28, %29, %30, %31, %32, %33, %34 in 0 : vector<1x4x32xf32>, vector<1x4x32xf32>, vector<1x4x32xf32>, vector<1x4x32xf32>, vector<1x4x32xf32>, vector<1x4x32xf32>, vector<1x4x32xf32>, vector<1x4x32xf32> -> vector<8x4x32xf32>
    %36 = arith.truncf %35 : vector<8x4x32xf32> to vector<8x4x32xbf16>
    %37 = vector.extract_strided_slice %17 {offsets = [0, 0], sizes = [4, 8], strides = [1, 1]} : vector<32x8xf32> to vector<4x8xf32>
    %38 = vector.extract_strided_slice %17 {offsets = [4, 0], sizes = [4, 8], strides = [1, 1]} : vector<32x8xf32> to vector<4x8xf32>
    %39 = vector.extract_strided_slice %17 {offsets = [8, 0], sizes = [4, 8], strides = [1, 1]} : vector<32x8xf32> to vector<4x8xf32>
    %40 = vector.extract_strided_slice %17 {offsets = [12, 0], sizes = [4, 8], strides = [1, 1]} : vector<32x8xf32> to vector<4x8xf32>
    %41 = vector.extract_strided_slice %17 {offsets = [16, 0], sizes = [4, 8], strides = [1, 1]} : vector<32x8xf32> to vector<4x8xf32>
    %42 = vector.extract_strided_slice %17 {offsets = [20, 0], sizes = [4, 8], strides = [1, 1]} : vector<32x8xf32> to vector<4x8xf32>
    %43 = vector.extract_strided_slice %17 {offsets = [24, 0], sizes = [4, 8], strides = [1, 1]} : vector<32x8xf32> to vector<4x8xf32>
    %44 = vector.extract_strided_slice %17 {offsets = [28, 0], sizes = [4, 8], strides = [1, 1]} : vector<32x8xf32> to vector<4x8xf32>
    %45 = vector.shape_cast %37 : vector<4x8xf32> to vector<1x4x8xf32>
    %46 = vector.shape_cast %38 : vector<4x8xf32> to vector<1x4x8xf32>
    %47 = vector.shape_cast %39 : vector<4x8xf32> to vector<1x4x8xf32>
    %48 = vector.shape_cast %40 : vector<4x8xf32> to vector<1x4x8xf32>
    %49 = vector.shape_cast %41 : vector<4x8xf32> to vector<1x4x8xf32>
    %50 = vector.shape_cast %42 : vector<4x8xf32> to vector<1x4x8xf32>
    %51 = vector.shape_cast %43 : vector<4x8xf32> to vector<1x4x8xf32>
    %52 = vector.shape_cast %44 : vector<4x8xf32> to vector<1x4x8xf32>
    %53 = tpu.concatenate %45, %46, %47, %48, %49, %50, %51, %52 in 0 : vector<1x4x8xf32>, vector<1x4x8xf32>, vector<1x4x8xf32>, vector<1x4x8xf32>, vector<1x4x8xf32>, vector<1x4x8xf32>, vector<1x4x8xf32>, vector<1x4x8xf32> -> vector<8x4x8xf32>
    %54 = arith.truncf %53 : vector<8x4x8xf32> to vector<8x4x8xbf16>
    %55 = vector.extract_strided_slice %18 {offsets = [0, 0], sizes = [4, 8], strides = [1, 1]} : vector<32x8xf32> to vector<4x8xf32>
    %56 = vector.extract_strided_slice %18 {offsets = [4, 0], sizes = [4, 8], strides = [1, 1]} : vector<32x8xf32> to vector<4x8xf32>
    %57 = vector.extract_strided_slice %18 {offsets = [8, 0], sizes = [4, 8], strides = [1, 1]} : vector<32x8xf32> to vector<4x8xf32>
    %58 = vector.extract_strided_slice %18 {offsets = [12, 0], sizes = [4, 8], strides = [1, 1]} : vector<32x8xf32> to vector<4x8xf32>
    %59 = vector.extract_strided_slice %18 {offsets = [16, 0], sizes = [4, 8], strides = [1, 1]} : vector<32x8xf32> to vector<4x8xf32>
    %60 = vector.extract_strided_slice %18 {offsets = [20, 0], sizes = [4, 8], strides = [1, 1]} : vector<32x8xf32> to vector<4x8xf32>
    %61 = vector.extract_strided_slice %18 {offsets = [24, 0], sizes = [4, 8], strides = [1, 1]} : vector<32x8xf32> to vector<4x8xf32>
    %62 = vector.extract_strided_slice %18 {offsets = [28, 0], sizes = [4, 8], strides = [1, 1]} : vector<32x8xf32> to vector<4x8xf32>
    %63 = vector.shape_cast %55 : vector<4x8xf32> to vector<1x4x8xf32>
    %64 = vector.shape_cast %56 : vector<4x8xf32> to vector<1x4x8xf32>
    %65 = vector.shape_cast %57 : vector<4x8xf32> to vector<1x4x8xf32>
    %66 = vector.shape_cast %58 : vector<4x8xf32> to vector<1x4x8xf32>
    %67 = vector.shape_cast %59 : vector<4x8xf32> to vector<1x4x8xf32>
    %68 = vector.shape_cast %60 : vector<4x8xf32> to vector<1x4x8xf32>
    %69 = vector.shape_cast %61 : vector<4x8xf32> to vector<1x4x8xf32>
    %70 = vector.shape_cast %62 : vector<4x8xf32> to vector<1x4x8xf32>
    %71 = tpu.concatenate %63, %64, %65, %66, %67, %68, %69, %70 in 0 : vector<1x4x8xf32>, vector<1x4x8xf32>, vector<1x4x8xf32>, vector<1x4x8xf32>, vector<1x4x8xf32>, vector<1x4x8xf32>, vector<1x4x8xf32>, vector<1x4x8xf32> -> vector<8x4x8xf32>
    %72 = arith.truncf %71 : vector<8x4x8xf32> to vector<8x4x8xbf16>
    "tpu.trace_start"() <{level = 10 : i32, message = "hcq,hct->hqt"}> : () -> ()
    %cst_12 = arith.constant dense<0.000000e+00> : vector<8x32x8xf32>
    %73 = tpu.matmul %36, %54, %cst_12 {dimension_numbers = #tpu.dot_dimension_numbers<[1], [1], [2], [2], [0, 0, 0, 2, 1, 2], [0], [0]>} : vector<8x4x32xbf16>, vector<8x4x8xbf16>, vector<8x32x8xf32> -> vector<8x32x8xf32>
    "tpu.trace_stop"() : () -> ()
    %cst_13 = arith.constant 5.000000e-01 : f32
    %74 = vector.broadcast %cst_13 : f32 to vector<8x32x8xf32>
    %75 = arith.mulf %73, %74 : vector<8x32x8xf32>
    %cst_14 = arith.constant dense<0xFF800000> : vector<8x32xf32>
    %76 = vector.multi_reduction <maximumf>, %75, %cst_14 [2] : vector<8x32x8xf32> to vector<8x32xf32>
    %77 = vector.shape_cast %76 : vector<8x32xf32> to vector<8x32x1xf32>
    %78 = vector.broadcast %77 : vector<8x32x1xf32> to vector<8x32x8xf32>
    %79 = arith.subf %75, %78 : vector<8x32x8xf32>
    %80 = math.exp %79 : vector<8x32x8xf32>
    %cst_15 = arith.constant dense<0.000000e+00> : vector<8x32xf32>
    %81 = vector.multi_reduction <add>, %80, %cst_15 [2] : vector<8x32x8xf32> to vector<8x32xf32>
    %82 = vector.shape_cast %81 : vector<8x32xf32> to vector<8x32x1xf32>
    %83 = tpu.reciprocal %82 {approx = true} : vector<8x32x1xf32> -> vector<8x32x1xf32>
    %84 = vector.broadcast %83 : vector<8x32x1xf32> to vector<8x32x8xf32>
    %85 = arith.mulf %80, %84 : vector<8x32x8xf32>
    %86 = arith.truncf %85 : vector<8x32x8xf32> to vector<8x32x8xbf16>
    "tpu.trace_start"() <{level = 10 : i32, message = "hct,hqt->hcq"}> : () -> ()
    %cst_16 = arith.constant dense<0.000000e+00> : vector<8x4x32xf32>
    %87 = tpu.matmul %72, %86, %cst_16 {dimension_numbers = #tpu.dot_dimension_numbers<[2], [2], [1], [1], [0, 0, 0, 1, 1, 1], [0], [0]>} : vector<8x4x8xbf16>, vector<8x32x8xbf16>, vector<8x4x32xf32> -> vector<8x4x32xf32>
    "tpu.trace_stop"() : () -> ()
    %88 = vector.extract_strided_slice %87 {offsets = [0, 0, 0], sizes = [1, 4, 32], strides = [1, 1, 1]} : vector<8x4x32xf32> to vector<1x4x32xf32>
    %89 = vector.shape_cast %88 : vector<1x4x32xf32> to vector<4x32xf32>
    %90 = vector.extract_strided_slice %87 {offsets = [1, 0, 0], sizes = [1, 4, 32], strides = [1, 1, 1]} : vector<8x4x32xf32> to vector<1x4x32xf32>
    %91 = vector.shape_cast %90 : vector<1x4x32xf32> to vector<4x32xf32>
    %92 = vector.extract_strided_slice %87 {offsets = [2, 0, 0], sizes = [1, 4, 32], strides = [1, 1, 1]} : vector<8x4x32xf32> to vector<1x4x32xf32>
    %93 = vector.shape_cast %92 : vector<1x4x32xf32> to vector<4x32xf32>
    %94 = vector.extract_strided_slice %87 {offsets = [3, 0, 0], sizes = [1, 4, 32], strides = [1, 1, 1]} : vector<8x4x32xf32> to vector<1x4x32xf32>
    %95 = vector.shape_cast %94 : vector<1x4x32xf32> to vector<4x32xf32>
    %96 = vector.extract_strided_slice %87 {offsets = [4, 0, 0], sizes = [1, 4, 32], strides = [1, 1, 1]} : vector<8x4x32xf32> to vector<1x4x32xf32>
    %97 = vector.shape_cast %96 : vector<1x4x32xf32> to vector<4x32xf32>
    %98 = vector.extract_strided_slice %87 {offsets = [5, 0, 0], sizes = [1, 4, 32], strides = [1, 1, 1]} : vector<8x4x32xf32> to vector<1x4x32xf32>
    %99 = vector.shape_cast %98 : vector<1x4x32xf32> to vector<4x32xf32>
    %100 = vector.extract_strided_slice %87 {offsets = [6, 0, 0], sizes = [1, 4, 32], strides = [1, 1, 1]} : vector<8x4x32xf32> to vector<1x4x32xf32>
    %101 = vector.shape_cast %100 : vector<1x4x32xf32> to vector<4x32xf32>
    %102 = vector.extract_strided_slice %87 {offsets = [7, 0, 0], sizes = [1, 4, 32], strides = [1, 1, 1]} : vector<8x4x32xf32> to vector<1x4x32xf32>
    %103 = vector.shape_cast %102 : vector<1x4x32xf32> to vector<4x32xf32>
    %104 = tpu.concatenate %89, %91, %93, %95, %97, %99, %101, %103 in 0 : vector<4x32xf32>, vector<4x32xf32>, vector<4x32xf32>, vector<4x32xf32>, vector<4x32xf32>, vector<4x32xf32>, vector<4x32xf32>, vector<4x32xf32> -> vector<32x32xf32>
    %105 = arith.truncf %104 : vector<32x32xf32> to vector<32x32xbf16>
    %cst_17 = arith.constant dense<0.000000e+00> : vector<32x32xf32>
    %106 = tpu.matmul %5, %105, %cst_17 {dimension_numbers = #tpu.dot_dimension_numbers<[1], [0], [0], [1], [0, 0, 1, 1], [], []>} : vector<32x32xbf16>, vector<32x32xbf16>, vector<32x32xf32> -> vector<32x32xf32>
    %107 = vector.broadcast %9 : vector<32x1xf32> to vector<32x32xf32>
    %108 = arith.addf %106, %107 : vector<32x32xf32>
    %109 = tpu.concatenate %108, %1 in 1 : vector<32x32xf32>, vector<32x8xf32> -> vector<32x40xf32>
    %110 = arith.truncf %109 : vector<32x40xf32> to vector<32x40xbf16>
    %111 = tpu.iota {dimensions = array<i32: 0>} : vector<40x40xi32>
    %112 = tpu.iota {dimensions = array<i32: 1>} : vector<40x40xi32>
    %c1_i32 = arith.constant 1 : i32
    %113 = vector.broadcast %c1_i32 : i32 to vector<40x40xi32>
    %114 = arith.addi %111, %113 : vector<40x40xi32>
    %115 = arith.cmpi eq, %114, %112 : vector<40x40xi32>
    %cst_18 = arith.constant 1.000000e+00 : f32
    %cst_19 = arith.constant 0.000000e+00 : f32
    %116 = vector.broadcast %cst_18 : f32 to vector<40x40xf32>
    %117 = vector.broadcast %cst_19 : f32 to vector<40x40xf32>
    %118 = arith.select %115, %116, %117 : vector<40x40xi1>, vector<40x40xf32>
    %119 = arith.truncf %118 : vector<40x40xf32> to vector<40x40xbf16>
    %c1_i32_20 = arith.constant 1 : i32
    %120 = vector.broadcast %c1_i32_20 : i32 to vector<40x40xi32>
    %121 = arith.addi %112, %120 : vector<40x40xi32>
    %122 = arith.cmpi eq, %111, %121 : vector<40x40xi32>
    %cst_21 = arith.constant 1.000000e+00 : f32
    %cst_22 = arith.constant 0.000000e+00 : f32
    %123 = vector.broadcast %cst_21 : f32 to vector<40x40xf32>
    %124 = vector.broadcast %cst_22 : f32 to vector<40x40xf32>
    %125 = arith.select %122, %123, %124 : vector<40x40xi1>, vector<40x40xf32>
    %126 = arith.truncf %125 : vector<40x40xf32> to vector<40x40xbf16>
    %cst_23 = arith.constant dense<0.000000e+00> : vector<32x40xf32>
    %127 = tpu.matmul %110, %119, %cst_23 {dimension_numbers = #tpu.dot_dimension_numbers<[1], [0], [0], [1], [0, 0, 1, 1], [], []>} : vector<32x40xbf16>, vector<40x40xbf16>, vector<32x40xf32> -> vector<32x40xf32>
    %128 = arith.truncf %127 : vector<32x40xf32> to vector<32x40xbf16>
    %cst_24 = arith.constant dense<0.000000e+00> : vector<32x40xf32>
    %129 = tpu.matmul %110, %126, %cst_24 {dimension_numbers = #tpu.dot_dimension_numbers<[1], [0], [0], [1], [0, 0, 1, 1], [], []>} : vector<32x40xbf16>, vector<40x40xbf16>, vector<32x40xf32> -> vector<32x40xf32>
    %130 = arith.truncf %129 : vector<32x40xf32> to vector<32x40xbf16>
    %c128_25 = arith.constant 128 : index
    %c0_26 = arith.constant 0 : index
    %131 = vector.load %arg2[%c128_25, %c0_26] : memref<320x32xbf16, #tpu.memory_space<vmem>>, vector<64x32xbf16>
    %c192_27 = arith.constant 192 : index
    %c0_28 = arith.constant 0 : index
    %132 = vector.load %arg2[%c192_27, %c0_28] : memref<320x32xbf16, #tpu.memory_space<vmem>>, vector<64x32xbf16>
    %c256 = arith.constant 256 : index
    %c0_29 = arith.constant 0 : index
    %133 = vector.load %arg2[%c256, %c0_29] : memref<320x32xbf16, #tpu.memory_space<vmem>>, vector<64x32xbf16>
    %c224 = arith.constant 224 : index
    %c0_30 = arith.constant 0 : index
    %134 = vector.load %arg4[%c224, %c0_30] : memref<288x64xf32, #tpu.memory_space<vmem>>, vector<64x1xf32>
    %cst_31 = arith.constant dense<0.000000e+00> : vector<64x40xf32>
    %135 = tpu.matmul %131, %128, %cst_31 {dimension_numbers = #tpu.dot_dimension_numbers<[1], [0], [0], [1], [0, 0, 1, 1], [], []>} : vector<64x32xbf16>, vector<32x40xbf16>, vector<64x40xf32> -> vector<64x40xf32>
    %cst_32 = arith.constant dense<0.000000e+00> : vector<64x40xf32>
    %136 = tpu.matmul %132, %110, %cst_32 {dimension_numbers = #tpu.dot_dimension_numbers<[1], [0], [0], [1], [0, 0, 1, 1], [], []>} : vector<64x32xbf16>, vector<32x40xbf16>, vector<64x40xf32> -> vector<64x40xf32>
    %137 = arith.addf %135, %136 : vector<64x40xf32>
    %cst_33 = arith.constant dense<0.000000e+00> : vector<64x40xf32>
    %138 = tpu.matmul %133, %130, %cst_33 {dimension_numbers = #tpu.dot_dimension_numbers<[1], [0], [0], [1], [0, 0, 1, 1], [], []>} : vector<64x32xbf16>, vector<32x40xbf16>, vector<64x40xf32> -> vector<64x40xf32>
    %139 = arith.addf %137, %138 : vector<64x40xf32>
    %140 = vector.broadcast %134 : vector<64x1xf32> to vector<64x40xf32>
    %141 = arith.addf %139, %140 : vector<64x40xf32>
    %c0_34 = arith.constant 0 : index
    %c0_35 = arith.constant 0 : index
    %142 = vector.load %arg4[%c0_34, %c0_35] : memref<288x64xf32, #tpu.memory_space<vmem>>, vector<64x64xf32>
    %c0_i32 = arith.constant 0 : i32
    %c4_i32 = arith.constant 4 : i32
    %143 = arith.addi %c0_i32, %c4_i32 : i32
    %c1_i32_36 = arith.constant 1 : i32
    %144 = scf.for %arg8 = %c0_i32 to %143 step %c1_i32_36 iter_args(%arg9 = %141) -> (vector<64x40xf32>)  : i32 {
      %151 = arith.index_cast %arg8 : i32 to index
      %c0_43 = arith.constant 0 : index
      %c0_44 = arith.constant 0 : index
      %152 = vector.load %arg5[%151, %c0_43, %c0_44] : memref<4x192x4xf32, #tpu.memory_space<vmem>>, vector<1x192x4xf32>
      %153 = vector.shape_cast %152 : vector<1x192x4xf32> to vector<192x4xf32>
      %154 = vector.extract_strided_slice %153 {offsets = [0, 0], sizes = [64, 1], strides = [1, 1]} : vector<192x4xf32> to vector<64x1xf32>
      %155 = vector.extract_strided_slice %153 {offsets = [0, 1], sizes = [64, 1], strides = [1, 1]} : vector<192x4xf32> to vector<64x1xf32>
      %156 = vector.extract_strided_slice %153 {offsets = [0, 2], sizes = [192, 1], strides = [1, 1]} : vector<192x4xf32> to vector<192x1xf32>
      %157 = vector.extract_strided_slice %153 {offsets = [0, 3], sizes = [64, 1], strides = [1, 1]} : vector<192x4xf32> to vector<64x1xf32>
      %cst_45 = arith.constant dense<0.000000e+00> : vector<64xf32>
      %158 = vector.multi_reduction <add>, %arg9, %cst_45 [1] : vector<64x40xf32> to vector<64xf32>
      %159 = vector.shape_cast %158 : vector<64xf32> to vector<64x1xf32>
      %cst_46 = arith.constant 4.000000e+01 : f32
      %160 = vector.broadcast %cst_46 : f32 to vector<64x1xf32>
      %161 = arith.divf %159, %160 : vector<64x1xf32>
      %162 = arith.mulf %arg9, %arg9 : vector<64x40xf32>
      %cst_47 = arith.constant dense<0.000000e+00> : vector<64xf32>
      %163 = vector.multi_reduction <add>, %162, %cst_47 [1] : vector<64x40xf32> to vector<64xf32>
      %164 = vector.shape_cast %163 : vector<64xf32> to vector<64x1xf32>
      %cst_48 = arith.constant 4.000000e+01 : f32
      %165 = vector.broadcast %cst_48 : f32 to vector<64x1xf32>
      %166 = arith.divf %164, %165 : vector<64x1xf32>
      %167 = tpu.concatenate %161, %166 in 1 : vector<64x1xf32>, vector<64x1xf32> -> vector<64x2xf32>
      %cst_49 = arith.constant dense<0.000000e+00> : vector<64x2xf32>
      %168 = tpu.matmul %142, %167, %cst_49 {dimension_numbers = #tpu.dot_dimension_numbers<[1], [0], [0], [1], [0, 0, 1, 1], [], []>} : vector<64x64xf32>, vector<64x2xf32>, vector<64x2xf32> -> vector<64x2xf32>
      %169 = vector.extract_strided_slice %168 {offsets = [0, 0], sizes = [64, 1], strides = [1, 1]} : vector<64x2xf32> to vector<64x1xf32>
      %170 = vector.extract_strided_slice %168 {offsets = [0, 1], sizes = [64, 1], strides = [1, 1]} : vector<64x2xf32> to vector<64x1xf32>
      %171 = arith.mulf %169, %169 : vector<64x1xf32>
      %172 = arith.subf %170, %171 : vector<64x1xf32>
      %173 = vector.broadcast %169 : vector<64x1xf32> to vector<64x40xf32>
      %174 = arith.subf %arg9, %173 : vector<64x40xf32>
      %cst_50 = arith.constant 9.99999974E-6 : f32
      %175 = vector.broadcast %cst_50 : f32 to vector<64x1xf32>
      %176 = arith.addf %172, %175 : vector<64x1xf32>
      %177 = math.rsqrt %176 : vector<64x1xf32>
      %178 = vector.broadcast %177 : vector<64x1xf32> to vector<64x40xf32>
      %179 = arith.mulf %174, %178 : vector<64x40xf32>
      %180 = vector.broadcast %154 : vector<64x1xf32> to vector<64x40xf32>
      %181 = arith.mulf %179, %180 : vector<64x40xf32>
      %182 = vector.broadcast %155 : vector<64x1xf32> to vector<64x40xf32>
      %183 = arith.addf %181, %182 : vector<64x40xf32>
      %c192_i32 = arith.constant 192 : i32
      %184 = arith.muli %arg8, %c192_i32 : i32
      %185 = tpu.assume_multiple %184, 192 : i32
      %186 = arith.index_cast %185 : i32 to index
      %c0_51 = arith.constant 0 : index
      %187 = vector.load %arg3[%186, %c0_51] : memref<1024x64xbf16, #tpu.memory_space<vmem>>, vector<192x64xbf16>
      %188 = arith.truncf %183 : vector<64x40xf32> to vector<64x40xbf16>
      %cst_52 = arith.constant dense<0.000000e+00> : vector<192x40xf32>
      %189 = tpu.matmul %187, %188, %cst_52 {dimension_numbers = #tpu.dot_dimension_numbers<[1], [0], [0], [1], [0, 0, 1, 1], [], []>} : vector<192x64xbf16>, vector<64x40xbf16>, vector<192x40xf32> -> vector<192x40xf32>
      %190 = vector.broadcast %156 : vector<192x1xf32> to vector<192x40xf32>
      %191 = arith.addf %189, %190 : vector<192x40xf32>
      %192 = vector.extract_strided_slice %191 {offsets = [0, 0], sizes = [64, 40], strides = [1, 1]} : vector<192x40xf32> to vector<64x40xf32>
      %cst_53 = arith.constant 0.594603539 : f32
      %193 = vector.broadcast %cst_53 : f32 to vector<64x40xf32>
      %194 = arith.mulf %192, %193 : vector<64x40xf32>
      %195 = vector.extract_strided_slice %194 {offsets = [0, 0], sizes = [8, 40], strides = [1, 1]} : vector<64x40xf32> to vector<8x40xf32>
      %196 = vector.extract_strided_slice %194 {offsets = [8, 0], sizes = [8, 40], strides = [1, 1]} : vector<64x40xf32> to vector<8x40xf32>
      %197 = vector.extract_strided_slice %194 {offsets = [16, 0], sizes = [8, 40], strides = [1, 1]} : vector<64x40xf32> to vector<8x40xf32>
      %198 = vector.extract_strided_slice %194 {offsets = [24, 0], sizes = [8, 40], strides = [1, 1]} : vector<64x40xf32> to vector<8x40xf32>
      %199 = vector.extract_strided_slice %194 {offsets = [32, 0], sizes = [8, 40], strides = [1, 1]} : vector<64x40xf32> to vector<8x40xf32>
      %200 = vector.extract_strided_slice %194 {offsets = [40, 0], sizes = [8, 40], strides = [1, 1]} : vector<64x40xf32> to vector<8x40xf32>
      %201 = vector.extract_strided_slice %194 {offsets = [48, 0], sizes = [8, 40], strides = [1, 1]} : vector<64x40xf32> to vector<8x40xf32>
      %202 = vector.extract_strided_slice %194 {offsets = [56, 0], sizes = [8, 40], strides = [1, 1]} : vector<64x40xf32> to vector<8x40xf32>
      %203 = vector.shape_cast %195 : vector<8x40xf32> to vector<1x8x40xf32>
      %204 = vector.shape_cast %196 : vector<8x40xf32> to vector<1x8x40xf32>
      %205 = vector.shape_cast %197 : vector<8x40xf32> to vector<1x8x40xf32>
      %206 = vector.shape_cast %198 : vector<8x40xf32> to vector<1x8x40xf32>
      %207 = vector.shape_cast %199 : vector<8x40xf32> to vector<1x8x40xf32>
      %208 = vector.shape_cast %200 : vector<8x40xf32> to vector<1x8x40xf32>
      %209 = vector.shape_cast %201 : vector<8x40xf32> to vector<1x8x40xf32>
      %210 = vector.shape_cast %202 : vector<8x40xf32> to vector<1x8x40xf32>
      %211 = tpu.concatenate %203, %204, %205, %206, %207, %208, %209, %210 in 0 : vector<1x8x40xf32>, vector<1x8x40xf32>, vector<1x8x40xf32>, vector<1x8x40xf32>, vector<1x8x40xf32>, vector<1x8x40xf32>, vector<1x8x40xf32>, vector<1x8x40xf32> -> vector<8x8x40xf32>
      %212 = arith.truncf %211 : vector<8x8x40xf32> to vector<8x8x40xbf16>
      %213 = vector.extract_strided_slice %191 {offsets = [64, 0], sizes = [64, 40], strides = [1, 1]} : vector<192x40xf32> to vector<64x40xf32>
      %cst_54 = arith.constant 0.594603539 : f32
      %214 = vector.broadcast %cst_54 : f32 to vector<64x40xf32>
      %215 = arith.mulf %213, %214 : vector<64x40xf32>
      %216 = vector.extract_strided_slice %215 {offsets = [0, 0], sizes = [8, 40], strides = [1, 1]} : vector<64x40xf32> to vector<8x40xf32>
      %217 = vector.extract_strided_slice %215 {offsets = [8, 0], sizes = [8, 40], strides = [1, 1]} : vector<64x40xf32> to vector<8x40xf32>
      %218 = vector.extract_strided_slice %215 {offsets = [16, 0], sizes = [8, 40], strides = [1, 1]} : vector<64x40xf32> to vector<8x40xf32>
      %219 = vector.extract_strided_slice %215 {offsets = [24, 0], sizes = [8, 40], strides = [1, 1]} : vector<64x40xf32> to vector<8x40xf32>
      %220 = vector.extract_strided_slice %215 {offsets = [32, 0], sizes = [8, 40], strides = [1, 1]} : vector<64x40xf32> to vector<8x40xf32>
      %221 = vector.extract_strided_slice %215 {offsets = [40, 0], sizes = [8, 40], strides = [1, 1]} : vector<64x40xf32> to vector<8x40xf32>
      %222 = vector.extract_strided_slice %215 {offsets = [48, 0], sizes = [8, 40], strides = [1, 1]} : vector<64x40xf32> to vector<8x40xf32>
      %223 = vector.extract_strided_slice %215 {offsets = [56, 0], sizes = [8, 40], strides = [1, 1]} : vector<64x40xf32> to vector<8x40xf32>
      %224 = vector.shape_cast %216 : vector<8x40xf32> to vector<1x8x40xf32>
      %225 = vector.shape_cast %217 : vector<8x40xf32> to vector<1x8x40xf32>
      %226 = vector.shape_cast %218 : vector<8x40xf32> to vector<1x8x40xf32>
      %227 = vector.shape_cast %219 : vector<8x40xf32> to vector<1x8x40xf32>
      %228 = vector.shape_cast %220 : vector<8x40xf32> to vector<1x8x40xf32>
      %229 = vector.shape_cast %221 : vector<8x40xf32> to vector<1x8x40xf32>
      %230 = vector.shape_cast %222 : vector<8x40xf32> to vector<1x8x40xf32>
      %231 = vector.shape_cast %223 : vector<8x40xf32> to vector<1x8x40xf32>
      %232 = tpu.concatenate %224, %225, %226, %227, %228, %229, %230, %231 in 0 : vector<1x8x40xf32>, vector<1x8x40xf32>, vector<1x8x40xf32>, vector<1x8x40xf32>, vector<1x8x40xf32>, vector<1x8x40xf32>, vector<1x8x40xf32>, vector<1x8x40xf32> -> vector<8x8x40xf32>
      %233 = arith.truncf %232 : vector<8x8x40xf32> to vector<8x8x40xbf16>
      %234 = vector.extract_strided_slice %191 {offsets = [128, 0], sizes = [64, 40], strides = [1, 1]} : vector<192x40xf32> to vector<64x40xf32>
      %235 = vector.extract_strided_slice %234 {offsets = [0, 0], sizes = [8, 40], strides = [1, 1]} : vector<64x40xf32> to vector<8x40xf32>
      %236 = vector.extract_strided_slice %234 {offsets = [8, 0], sizes = [8, 40], strides = [1, 1]} : vector<64x40xf32> to vector<8x40xf32>
      %237 = vector.extract_strided_slice %234 {offsets = [16, 0], sizes = [8, 40], strides = [1, 1]} : vector<64x40xf32> to vector<8x40xf32>
      %238 = vector.extract_strided_slice %234 {offsets = [24, 0], sizes = [8, 40], strides = [1, 1]} : vector<64x40xf32> to vector<8x40xf32>
      %239 = vector.extract_strided_slice %234 {offsets = [32, 0], sizes = [8, 40], strides = [1, 1]} : vector<64x40xf32> to vector<8x40xf32>
      %240 = vector.extract_strided_slice %234 {offsets = [40, 0], sizes = [8, 40], strides = [1, 1]} : vector<64x40xf32> to vector<8x40xf32>
      %241 = vector.extract_strided_slice %234 {offsets = [48, 0], sizes = [8, 40], strides = [1, 1]} : vector<64x40xf32> to vector<8x40xf32>
      %242 = vector.extract_strided_slice %234 {offsets = [56, 0], sizes = [8, 40], strides = [1, 1]} : vector<64x40xf32> to vector<8x40xf32>
      %243 = vector.shape_cast %235 : vector<8x40xf32> to vector<1x8x40xf32>
      %244 = vector.shape_cast %236 : vector<8x40xf32> to vector<1x8x40xf32>
      %245 = vector.shape_cast %237 : vector<8x40xf32> to vector<1x8x40xf32>
      %246 = vector.shape_cast %238 : vector<8x40xf32> to vector<1x8x40xf32>
      %247 = vector.shape_cast %239 : vector<8x40xf32> to vector<1x8x40xf32>
      %248 = vector.shape_cast %240 : vector<8x40xf32> to vector<1x8x40xf32>
      %249 = vector.shape_cast %241 : vector<8x40xf32> to vector<1x8x40xf32>
      %250 = vector.shape_cast %242 : vector<8x40xf32> to vector<1x8x40xf32>
      %251 = tpu.concatenate %243, %244, %245, %246, %247, %248, %249, %250 in 0 : vector<1x8x40xf32>, vector<1x8x40xf32>, vector<1x8x40xf32>, vector<1x8x40xf32>, vector<1x8x40xf32>, vector<1x8x40xf32>, vector<1x8x40xf32>, vector<1x8x40xf32> -> vector<8x8x40xf32>
      %252 = arith.truncf %251 : vector<8x8x40xf32> to vector<8x8x40xbf16>
      "tpu.trace_start"() <{level = 10 : i32, message = "hct,hcs->hts"}> : () -> ()
      %cst_55 = arith.constant dense<0.000000e+00> : vector<8x40x40xf32>
      %253 = tpu.matmul %212, %233, %cst_55 {dimension_numbers = #tpu.dot_dimension_numbers<[1], [1], [2], [2], [0, 0, 0, 2, 1, 2], [0], [0]>} : vector<8x8x40xbf16>, vector<8x8x40xbf16>, vector<8x40x40xf32> -> vector<8x40x40xf32>
      "tpu.trace_stop"() : () -> ()
      %254 = arith.index_cast %arg8 : i32 to index
      %c0_56 = arith.constant 0 : index
      %c0_57 = arith.constant 0 : index
      %c0_58 = arith.constant 0 : index
      %255 = vector.load %arg6[%254, %c0_56, %c0_57, %c0_58] : memref<4x8x40x40xbf16, #tpu.memory_space<vmem>>, vector<1x8x40x40xbf16>
      %256 = vector.shape_cast %255 : vector<1x8x40x40xbf16> to vector<8x40x40xbf16>
      %257 = arith.extf %256 : vector<8x40x40xbf16> to vector<8x40x40xf32>
      %258 = arith.addf %253, %257 : vector<8x40x40xf32>
      %cst_59 = arith.constant dense<0xFF800000> : vector<8x40xf32>
      %259 = vector.multi_reduction <maximumf>, %258, %cst_59 [2] : vector<8x40x40xf32> to vector<8x40xf32>
      %260 = vector.shape_cast %259 : vector<8x40xf32> to vector<8x40x1xf32>
      %261 = vector.broadcast %260 : vector<8x40x1xf32> to vector<8x40x40xf32>
      %262 = arith.subf %258, %261 : vector<8x40x40xf32>
      %263 = math.exp %262 : vector<8x40x40xf32>
      %cst_60 = arith.constant dense<0.000000e+00> : vector<8x40xf32>
      %264 = vector.multi_reduction <add>, %263, %cst_60 [2] : vector<8x40x40xf32> to vector<8x40xf32>
      %265 = vector.shape_cast %264 : vector<8x40xf32> to vector<8x40x1xf32>
      %266 = tpu.reciprocal %265 {approx = true} : vector<8x40x1xf32> -> vector<8x40x1xf32>
      %267 = vector.broadcast %266 : vector<8x40x1xf32> to vector<8x40x40xf32>
      %268 = arith.mulf %263, %267 : vector<8x40x40xf32>
      %269 = arith.truncf %268 : vector<8x40x40xf32> to vector<8x40x40xbf16>
      "tpu.trace_start"() <{level = 10 : i32, message = "hcs,hts->hct"}> : () -> ()
      %cst_61 = arith.constant dense<0.000000e+00> : vector<8x8x40xf32>
      %270 = tpu.matmul %252, %269, %cst_61 {dimension_numbers = #tpu.dot_dimension_numbers<[2], [2], [1], [1], [0, 0, 0, 1, 1, 1], [0], [0]>} : vector<8x8x40xbf16>, vector<8x40x40xbf16>, vector<8x8x40xf32> -> vector<8x8x40xf32>
      "tpu.trace_stop"() : () -> ()
      %c64_i32 = arith.constant 64 : i32
      %271 = arith.muli %arg8, %c64_i32 : i32
      %c768_i32 = arith.constant 768 : i32
      %272 = arith.addi %c768_i32, %271 : i32
      %273 = tpu.assume_multiple %272, 64 : i32
      %274 = arith.index_cast %273 : i32 to index
      %c0_62 = arith.constant 0 : index
      %275 = vector.load %arg3[%274, %c0_62] : memref<1024x64xbf16, #tpu.memory_space<vmem>>, vector<64x64xbf16>
      %276 = vector.extract_strided_slice %270 {offsets = [0, 0, 0], sizes = [1, 8, 40], strides = [1, 1, 1]} : vector<8x8x40xf32> to vector<1x8x40xf32>
      %277 = vector.shape_cast %276 : vector<1x8x40xf32> to vector<8x40xf32>
      %278 = vector.extract_strided_slice %270 {offsets = [1, 0, 0], sizes = [1, 8, 40], strides = [1, 1, 1]} : vector<8x8x40xf32> to vector<1x8x40xf32>
      %279 = vector.shape_cast %278 : vector<1x8x40xf32> to vector<8x40xf32>
      %280 = vector.extract_strided_slice %270 {offsets = [2, 0, 0], sizes = [1, 8, 40], strides = [1, 1, 1]} : vector<8x8x40xf32> to vector<1x8x40xf32>
      %281 = vector.shape_cast %280 : vector<1x8x40xf32> to vector<8x40xf32>
      %282 = vector.extract_strided_slice %270 {offsets = [3, 0, 0], sizes = [1, 8, 40], strides = [1, 1, 1]} : vector<8x8x40xf32> to vector<1x8x40xf32>
      %283 = vector.shape_cast %282 : vector<1x8x40xf32> to vector<8x40xf32>
      %284 = vector.extract_strided_slice %270 {offsets = [4, 0, 0], sizes = [1, 8, 40], strides = [1, 1, 1]} : vector<8x8x40xf32> to vector<1x8x40xf32>
      %285 = vector.shape_cast %284 : vector<1x8x40xf32> to vector<8x40xf32>
      %286 = vector.extract_strided_slice %270 {offsets = [5, 0, 0], sizes = [1, 8, 40], strides = [1, 1, 1]} : vector<8x8x40xf32> to vector<1x8x40xf32>
      %287 = vector.shape_cast %286 : vector<1x8x40xf32> to vector<8x40xf32>
      %288 = vector.extract_strided_slice %270 {offsets = [6, 0, 0], sizes = [1, 8, 40], strides = [1, 1, 1]} : vector<8x8x40xf32> to vector<1x8x40xf32>
      %289 = vector.shape_cast %288 : vector<1x8x40xf32> to vector<8x40xf32>
      %290 = vector.extract_strided_slice %270 {offsets = [7, 0, 0], sizes = [1, 8, 40], strides = [1, 1, 1]} : vector<8x8x40xf32> to vector<1x8x40xf32>
      %291 = vector.shape_cast %290 : vector<1x8x40xf32> to vector<8x40xf32>
      %292 = tpu.concatenate %277, %279, %281, %283, %285, %287, %289, %291 in 0 : vector<8x40xf32>, vector<8x40xf32>, vector<8x40xf32>, vector<8x40xf32>, vector<8x40xf32>, vector<8x40xf32>, vector<8x40xf32>, vector<8x40xf32> -> vector<64x40xf32>
      %293 = arith.truncf %292 : vector<64x40xf32> to vector<64x40xbf16>
      %cst_63 = arith.constant dense<0.000000e+00> : vector<64x40xf32>
      %294 = tpu.matmul %275, %293, %cst_63 {dimension_numbers = #tpu.dot_dimension_numbers<[1], [0], [0], [1], [0, 0, 1, 1], [], []>} : vector<64x64xbf16>, vector<64x40xbf16>, vector<64x40xf32> -> vector<64x40xf32>
      %295 = vector.broadcast %157 : vector<64x1xf32> to vector<64x40xf32>
      %296 = arith.addf %294, %295 : vector<64x40xf32>
      %297 = arith.addf %arg9, %296 : vector<64x40xf32>
      scf.yield %297 : vector<64x40xf32>
    }
    %c4_i32_37 = arith.constant 4 : i32
    %cst_38 = arith.constant 2.500000e-02 : f32
    %145 = vector.broadcast %cst_38 : f32 to vector<8x40xf32>
    %146 = vector.extract_strided_slice %144 {offsets = [0, 0], sizes = [32, 40], strides = [1, 1]} : vector<64x40xf32> to vector<32x40xf32>
    %cst_39 = arith.constant dense<0.000000e+00> : vector<8x32xf32>
    %147 = tpu.matmul %145, %146, %cst_39 {dimension_numbers = #tpu.dot_dimension_numbers<[1], [1], [0], [0], [0, 0, 1, 0], [], []>} : vector<8x40xf32>, vector<32x40xf32>, vector<8x32xf32> -> vector<8x32xf32>
    %148 = vector.extract_strided_slice %147 {offsets = [0, 0], sizes = [1, 32], strides = [1, 1]} : vector<8x32xf32> to vector<1x32xf32>
    %149 = vector.shape_cast %148 : vector<1x32xf32> to vector<1x1x32xf32>
    %c0_40 = arith.constant 0 : index
    %c0_41 = arith.constant 0 : index
    %c0_42 = arith.constant 0 : index
    %150 = vector.load %arg7[%c0_40, %c0_41, %c0_42] : memref<1x1x32xf32, #tpu.memory_space<vmem>>, vector<1x1x32xf32>
    tpu.vector_store %arg7[%c0_40, %c0_41, %c0_42], %149 {strides = array<i32>} : memref<1x1x32xf32, #tpu.memory_space<vmem>>, vector<1x1x32xf32>,
    return
  }
  func.func @transform_0(%arg0: i32) -> (i32, i32, i32) {
    %c0_i32 = arith.constant 0 : i32
    %c0_i32_0 = arith.constant 0 : i32
    %c0_i32_1 = arith.constant 0 : i32
    return %arg0, %c0_i32, %c0_i32_0 : i32, i32, i32
  }
  func.func @transform_1(%arg0: i32) -> (i32, i32) {
    %c0_i32 = arith.constant 0 : i32
    %c0_i32_0 = arith.constant 0 : i32
    %c0_i32_1 = arith.constant 0 : i32
    return %c0_i32, %c0_i32_0 : i32, i32
  }
  func.func @transform_2(%arg0: i32) -> (i32, i32) {
    %c0_i32 = arith.constant 0 : i32
    %c0_i32_0 = arith.constant 0 : i32
    %c0_i32_1 = arith.constant 0 : i32
    return %c0_i32, %c0_i32_0 : i32, i32
  }
  func.func @transform_3(%arg0: i32) -> (i32, i32) {
    %c0_i32 = arith.constant 0 : i32
    %c0_i32_0 = arith.constant 0 : i32
    %c0_i32_1 = arith.constant 0 : i32
    return %c0_i32, %c0_i32_0 : i32, i32
  }
  func.func @transform_4(%arg0: i32) -> (i32, i32, i32) {
    %c0_i32 = arith.constant 0 : i32
    %c0_i32_0 = arith.constant 0 : i32
    %c0_i32_1 = arith.constant 0 : i32
    %c0_i32_2 = arith.constant 0 : i32
    return %c0_i32, %c0_i32_0, %c0_i32_1 : i32, i32, i32
  }
  func.func @transform_5(%arg0: i32) -> (i32, i32, i32, i32) {
    %c0_i32 = arith.constant 0 : i32
    %c0_i32_0 = arith.constant 0 : i32
    %c0_i32_1 = arith.constant 0 : i32
    %c0_i32_2 = arith.constant 0 : i32
    %c0_i32_3 = arith.constant 0 : i32
    return %c0_i32, %c0_i32_0, %c0_i32_1, %c0_i32_2 : i32, i32, i32, i32
  }
  func.func @transform_6(%arg0: i32) -> (i32, i32, i32) {
    %c0_i32 = arith.constant 0 : i32
    %c0_i32_0 = arith.constant 0 : i32
    %c0_i32_1 = arith.constant 0 : i32
    return %arg0, %c0_i32, %c0_i32_0 : i32, i32, i32
  }
}

</mosaic_0001>

<bundles_post_ra>
// kernel: ref_encoder_forward.1
= control target key start
LH: loop header
LB: loop body
LE: loop exit
PB: predicated region body
PF: predicated region fallthrough
CT: control target
= control target key end

     0   :  { %11 = vsyncpa [#allocation3], 0  ;;  %s8998_s0 = inlined_call_operand.vmem [shape: f32[2,32,8], index: 0, kind: input, shape index: {}]   ;;  %s8999_s1 = inlined_call_operand.vmem [shape: bf16[320,32], index: 1, kind: input, shape index: {}]   ;;  %s9000_s2 = inlined_call_operand.vmem [shape: bf16[1024,64], index: 2, kind: input, shape index: {}]   ;;  %s9001_s3 = inlined_call_operand.vmem [shape: f32[288,64], index: 3, kind: input, shape index: {}]   ;;  %s9002_s4 = inlined_call_operand.vmem [shape: f32[4,192,4], index: 4, kind: input, shape index: {}]   ;;  %s9003_s5 = inlined_call_operand.vmem [shape: bf16[4,8,40,40], index: 5, kind: input, shape index: {}]   ;;  %s9004_s6 = inlined_call_operand.hbm [shape: f32[2,1,32], index: 6, kind: output, shape index: {}]  }
   0x1   :  { %13 = vsyncpa [#allocation3 + $0x1], 0  ;;  %s7155_s21 = smov 0   ;;  %s7157_s22 = smov 0  }
   0x2   :  { %s7159_s23 = smov 0   ;;  %s7161_s24 = smov 0  }
   0x3 LB: > { %s7176_s25 = sadd.s32 4294967295, %s7068_s24   ;;  %s5523_s26 = sadd.s32 4294967294, %s7068_s24   ;;  %s7068_s24 = sphi %s7161_s24, %s9102_s24   ;;  %s7064_s23 = sphi %s7159_s23, %s9101_s23   ;;  %s7060_s22 = sphi %s7157_s22, %s9100_s22   ;;  %s7056_s21 = sphi %s7155_s21, %s9099_s21  }
   0x4   : > { %s7180_s27 = sadd.s32 1, %s7068_s24   ;;  %s157_s28 = sadd.s32 1, %s7064_s23 }
   0x5   : > { %s154_s29 = ssub.s32 %s7068_s24, %s7180_s27  ;;  %p167_p0 = scmp.ne.s32.totalorder %s7064_s23, %s7060_s22 }
   0x6   : > { %p155_p1 = scmp.eq.s32.totalorder %s154_s29, 0  ;;  %p168_p2 = scmp.eq.s32.totalorder %s7176_s25, 1 }
   0x7   : > { %p173_p3 = scmp.ne.s32.totalorder %s7060_s22, %s7056_s21  ;;  %p174_p4 = scmp.eq.s32.totalorder %s5523_s26, 1 }
   0x8   : > { %s7191_s30 = scalar_select %p155_p1, %s7064_s23, %s157_s28  }
   0x9   : > { %p7193_p5 = por %p168_p2, %p167_p0  ;;  %p7197_p6 = por %p174_p4, %p173_p3 }
   0xa   : > { %p5526_p7 = scmp.ge.s32.totalorder %s7068_s24, 1  ;;  %p215_p8 = scmp.lt.s32.totalorder %s7068_s24, 3 }
   0xc   : > { %p216_p9 = pnand %p5526_p7, %p215_p8 }
   0xe   : > { %219 = sbr.rel (%p216_p9) target bundleno = 4252 (0x109c), region = 44 }
  0x13   : > { %s242_s9 = sand.u32 1, %s7060_s22   ;;  %v274_v0 = vld [vmem:[%s9001_s3 + $0x50] sm:$0xff]  ;;  %v275_v1 = vld [vmem:[%s9001_s3 + $0x58] sm:$0xff]  ;;  %v272_v2 = vld [vmem:[%s9001_s3 + $0x40] sm:$0xff]  ;;  %vm324_vm0 = vcmask 261120   ;;  %p244_p10 = scmp.lt.s32.totalorder %s7176_s25, 1 }
  0x14   : > { %v293_v3 = vpack.c.bf16 %v275_v1, %v274_v0  ;;  %v273_v4 = vld [vmem:[%s9001_s3 + $0x48] sm:$0xff]  ;;  %v6610_v6 = vld [vmem:[%s8999_s1] sm:$0xff]   ;;  %v7106_v7 = vmov 0   ;;  %v6612_v19 = vld [vmem:[%s8999_s1 + $0x10] sm:$0xff]   ;;  %vm600_vm1 = vcmask 1041408   ;;  %vm593_vm2 = vcmask 31744  }
  0x15   : > { %v292_v5 = vpack.c.bf16 %v273_v4, %v272_v2  ;;  %s245_s20 = scalar_select %p244_p10, %s7176_s25, 1  ;;  %5993 = vmatprep.mubr.msk.bf16.mxu1 %vm324_vm0, %v6610_v6  ;;  %6598 = vset.pattern.permute.xlu0 %v7106_v7  ;;  %v276_v8 = vld [vmem:[%s9001_s3 + $0x60] sm:$0xff]  ;;  %v6611_v13 = vld [vmem:[%s8999_s1 + $0x8] sm:$0xff]   ;;  %v278_v20 = vld [vmem:[%s9001_s3 + $0x70] sm:$0xff]  ;;  %vm1203_vm3 = vcmask 64512   ;;  %vm7108_vm4 = vmmov 0  }
  0x16   : > { %5989 = vmatprep.subr.bf16.mxu1 %v293_v3  ;;  %v280_v9 = vld [vmem:[%s9001_s3 + $0x80] sm:$0xff]  ;;  %296 = vperm.xlu0 %6598, %v276_v8   ;;  %v277_v17 = vld [vmem:[%s9001_s3 + $0x68] sm:$0xff]  ;;  %v279_v22 = vld [vmem:[%s9001_s3 + $0x78] sm:$0xff]  ;;  %s7109_s29 = smov 32   ;;  %vm1976_vm5 = vcmask 1043456   ;;  %s7893_s16 = scalar_lea.vmem [#allocation2], %s242_s9 }
  0x17   : > { %5990 = vmatpush3.bf16.msra.mxu1 %v293_v3  ;;  %s5689_s26 = sshll.u32 %s245_s20, 5  ;;  %6599 = vset.pattern.permute.xlu1 %v7106_v7  ;;  %v281_v23 = vld [vmem:[%s9001_s3 + $0x88] sm:$0xff]  ;;  %v6613_v24 = vld [vmem:[%s8999_s1 + $0x18] sm:$0xff]   ;;  %v282_v25 = vld [vmem:[%s9001_s3 + $0x90] sm:$0xff]  ;;  %s7911_s17 = smov 0  }
  0x18   : > { %5991 = vmatprep.subr.bf16.mxu1 %v292_v5  ;;  %s248_s10 = scalar_lea.vmem %s8998_s0, %s5689_s26  ;;  %382 = vperm.xlu1 %6599, %v280_v9   ;;  %v6614_v28 = vld [vmem:[%s8999_s1 + $0x20] sm:$0xff]   ;;  %v6615_v29 = vld [vmem:[%s8999_s1 + $0x28] sm:$0xff]   ;;  %v283_v59 = vld [vmem:[%s9001_s3 + $0x98] sm:$0xff] }
  0x19   : > { %v7231_v10 = vld [vmem:[%s248_s10 + $0x10] sm:$0xff]  ;;  %v7233_v11 = vld [vmem:[%s248_s10 + $0x18] sm:$0xff]  ;;  %v7235_v12 = vld [vmem:[%s248_s10] sm:$0xff] }
  0x1a   : > { %v6605_v14 = vpack.i.bf16 %v7233_v11, %v7231_v10  ;;  %v255_v15 = vpack.c.bf16 %v7233_v11, %v7231_v10  ;;  %v7244_v16 = vld [vmem:[%s248_s10 + $0x8] sm:$0xff]  ;;  %301 = vperm.xlu0 %6598, %v277_v17  }
  0x1b   : > { %5992 = vmatpush3.bf16.msra.mxu1 %v292_v5  ;;  %v6600_v18 = vpack.i.bf16 %v7244_v16, %v7235_v12  ;;  %v254_v21 = vpack.c.bf16 %v7244_v16, %v7235_v12  ;;  %v2272_v12 = vld [vmem:[%s9001_s3 + $0xf8] sm:$0xff]  ;;  %v2274_v10 = vld [vmem:[%s9001_s3 + $0x108] sm:$0xff] }
  0x1c   : > { %5997 = vmatprep.subr.bf16.mxu1 %v255_v15  ;;  %306 = vperm.xlu1 %6599, %v278_v20  }
  0x1e   : > { %5994 = vmatmul.mubr.msk.bf16.vlgmr.msra.gmra.mxu1 %vm324_vm0, %v6611_v13  ;;  %311 = vperm.xlu0 %6598, %v279_v22  }
  0x1f   : > { %5998 = vmatpush3.bf16.msra.mxu1 %v255_v15  ;;  %6001 = vmatprep.mubr.msk.bf16.mxu1 %vm324_vm0, %v6612_v19 }
  0x20   : > { %5999 = vmatprep.subr.bf16.mxu1 %v254_v21  ;;  %387 = vperm.xlu1 %6599, %v281_v23  }
  0x23   : > { %6000 = vmatpush3.bf16.msra.mxu1 %v254_v21 }
  0x24   : > { %392 = vperm.xlu1 %6599, %v282_v25  }
  0x26   : > { %6002 = vmatmul.mubr.msk.bf16.vlgmr.msra.gmra.mxu1 %vm324_vm0, %v6613_v24 }
  0x27   : > { %6005 = vmatprep.mubr.msk.bf16.mxu1 %vm324_vm0, %v6614_v28 }
  0x2e   : > { %6006 = vmatmul.mubr.msk.bf16.gmra.mxu1 %vm324_vm0, %v6615_v29 }
  0x91   : > { %v297_v27 = vpop.permute.xlu0 %296 }
  0x93   : > { %v383_v26 = vpop.permute.xlu1 %382 }
  0x95   : > { %v302_v38 = vpop.permute.xlu0 %301 }
  0x97   : > { %v307_v30 = vpop.permute.xlu1 %306 }
  0x99   : > { %v312_v62 = vpop.permute.xlu0 %311 }
  0x9b   : > { %v388_v35 = vpop.permute.xlu1 %387 }
  0x9f   : > { %v393_v46 = vpop.permute.xlu1 %392 }
  0xde   : > { %v5995_v31 = vpop.f32.mrf.mxu1 }
  0xdf   : > { %v374_v43 = vadd.f32 %v5995_v31, %v307_v30 }
  0xe0   : > { %v365_v32 = vpop.f32.mrf.mxu1 }
  0xe1   : > { %v366_v33 = vadd.f32 %v365_v32, %v297_v27  ;;  %v524_v50 = vrot.slane %v374_v43, 4  ;;  %v533_v1 = vpack.c.bf16 %v374_v43, %v374_v43 }
  0xe2   : > { %v5996_v34 = vpop.f32.mrf.mxu1 }
  0xe3   : > { %v518_v36 = vrot.slane %v366_v33, 4  ;;  %v529_v37 = vpack.c.bf16 %v366_v33, %v366_v33  ;;  %v534_v58 = vpack.c.bf16 %v524_v50, %v524_v50  ;;  %v377_v63 = vadd.f32 %v5996_v34, %v312_v62 }
  0xe4   : > { %v368_v39 = vpop.f32.mrf.mxu1 }
  0xe5   : > { %v530_v40 = vpack.c.bf16 %v518_v36, %v518_v36  ;;  %v369_v41 = vadd.f32 %v368_v39, %v302_v38  ;;  %577 = vxpose.xlu0.c.b16.start.end [1/1] (short) (narrow) %v529_v37, 32  ;;  %v527_v2 = vrot.slane %v377_v63, 4  ;;  %v535_v4 = vpack.c.bf16 %v377_v63, %v377_v63 }
  0xe6   : > { %v6003_v42 = vpop.f32.mrf.mxu1 }
  0xe7   : > { %v521_v44 = vrot.slane %v369_v41, 4  ;;  %653 = vxpose.xlu1.c.b16.start.end [1/1] (short) (narrow) %v530_v40, 32  ;;  %v495_v52 = vadd.f32 %v6003_v42, %v393_v46  ;;  %v536_v3 = vpack.c.bf16 %v527_v2, %v527_v2  ;;  %v531_v5 = vpack.c.bf16 %v369_v41, %v369_v41 }
  0xe8   : > { %v486_v45 = vpop.f32.mrf.mxu1 }
  0xe9   : > { %v532_v47 = vpack.c.bf16 %v521_v44, %v521_v44  ;;  %v487_v48 = vadd.f32 %v486_v45, %v383_v26  ;;  %v7289_v61 = vpack.c.bf16 %v495_v52, %v495_v52  ;;  %v544_v19 = vrot.slane %v495_v52, 4 }
  0xea   : > { %v7282_v49 = vpop.f32.mrf.mxu1 }
  0xeb   : > { %v538_v51 = vrot.slane %v487_v48, 4  ;;  %v549_v53 = vpack.c.bf16 %v487_v48, %v487_v48  ;;  %v554_v21 = vpack.c.bf16 %v544_v19, %v544_v19  ;;  %v898_v39 = vsel %vm600_vm1, %v7289_v61, 0 }
  0xec   : > { %801 = vxpose.xlu1.c.b16.start.end [1/1] (short) (narrow) %v532_v47, 32  ;;  %v489_v54 = vpop.f32.mrf.mxu1 }
  0xed   : > { %v550_v55 = vpack.c.bf16 %v538_v51, %v538_v51  ;;  %v490_v56 = vadd.f32 %v489_v54, %v388_v35  ;;  %6464 = vmatprep.subr.msk.bf16.mxu0 %vm600_vm1, %v549_v53  ;;  %v602_v57 = vsel %vm600_vm1, %v549_v53, 0  ;;  %v972_v25 = vsel %vm600_vm1, %v554_v21, 0 }
  0xee   : > { %6010 = vmatpush3.bf16.msra.mxu0 %v602_v57 }
  0xef   : > { %v551_v60 = vpack.c.bf16 %v490_v56, %v490_v56  ;;  %6465 = vmatprep.subr.msk.bf16.mxu0 %vm600_vm1, %v550_v55  ;;  %v541_v7 = vrot.slane %v490_v56, 4  ;;  %v676_v15 = vsel %vm600_vm1, %v550_v55, 0  ;;  %v7340_v55 = vpop.f32.mrf.mxu1 }
  0xf1   : > { %949 = vxpose.xlu1.c.b16.start.end [1/1] (short) (narrow) %v534_v58, 32  ;;  %6466 = vmatprep.subr.msk.bf16.mxu1 %vm600_vm1, %v551_v60  ;;  %v750_v0 = vsel %vm600_vm1, %v551_v60, 0  ;;  %v552_v13 = vpack.c.bf16 %v541_v7, %v541_v7  ;;  %v7342_v56 = vpop.f32.mrf.mxu1 }
  0xf2   : > { %397 = vperm.xlu0 %6598, %v283_v59   ;;  %6022 = vmatpush3.bf16.msra.mxu1 %v750_v0 }
  0xf3   : > { %6468 = vmatprep.subr.msk.bf16.mxu1 %vm600_vm1, %v7289_v61  ;;  %v824_v22 = vsel %vm600_vm1, %v552_v13, 0  ;;  %v7344_v58 = vpop.f32.mrf.mxu1 }
  0xf5   : > { %v7346_v60 = vpop.f32.mrf.mxu1 }
  0xf6   : > { %875 = vxpose.xlu1.c.b16.start.end [1/1] (short) (narrow) %v533_v1, 32 }
  0xfb   : > { %1097 = vxpose.xlu1.c.b16.start.end [1/1] (short) (narrow) %v536_v3, 32 }
 0x100   : > { %1023 = vxpose.xlu1.c.b16.start.end [1/1] (short) (narrow) %v535_v4, 32 }
 0x110   : > { %727 = vxpose.xlu0.c.b16.start.end [1/1] (short) (narrow) %v531_v5, 32 }
 0x147   : > { %v585_v6 = vpop.trf.xlu0 }
 0x148   : > { %6011 = vmatprep.mubr.msk.bf16.mxu0 %vm593_vm2, %v585_v6 }
 0x149   : > { %v661_v8 = vpop.trf.xlu1 }
 0x14b   : > { %v586_v9 = vpop.trf.xlu0 }
 0x14c   : > { %6012 = vmatmul.mubr.msk.bf16.vlgmr.msra.gmra.mxu0 %vm593_vm2, %v586_v9 }
 0x14d   : > { %6016 = vmatpush3.bf16.msra.mxu0 %v676_v15  ;;  %v662_v17 = vpop.trf.xlu1  ;;  %6017 = vmatprep.mubr.msk.bf16.mxu0 %vm593_vm2, %v661_v8 }
 0x14e   : > { %6467 = vmatprep.subr.msk.bf16.mxu0 %vm600_vm1, %v552_v13 }
 0x151   : > { %v809_v20 = vpop.trf.xlu1 }
 0x154   : > { %6018 = vmatmul.mubr.msk.bf16.vlgmr.msra.gmra.mxu0 %vm593_vm2, %v662_v17 }
 0x155   : > { %6028 = vmatpush3.bf16.msra.mxu0 %v824_v22  ;;  %v810_v23 = vpop.trf.xlu1  ;;  %6029 = vmatprep.mubr.msk.bf16.mxu0 %vm593_vm2, %v809_v20 }
 0x156   : > { %6469 = vmatprep.subr.msk.bf16.mxu0 %vm600_vm1, %v554_v21 }
 0x159   : > { %v957_v24 = vpop.trf.xlu1 }
 0x15c   : > { %6030 = vmatmul.mubr.msk.bf16.vlgmr.msra.gmra.mxu0 %vm593_vm2, %v810_v23 }
 0x15d   : > { %6040 = vmatpush3.bf16.msra.mxu0 %v972_v25  ;;  %v958_v26 = vpop.trf.xlu1  ;;  %6041 = vmatprep.mubr.msk.bf16.mxu0 %vm593_vm2, %v957_v24 }
 0x161   : > { %v883_v27 = vpop.trf.xlu1 }
 0x164   : > { %6042 = vmatmul.mubr.msk.bf16.vlgmr.msra.gmra.mxu0 %vm593_vm2, %v958_v26 }
 0x165   : > { %v884_v28 = vpop.trf.xlu1 }
 0x169   : > { %v1105_v29 = vpop.trf.xlu1 }
 0x16a   : > { %6053 = vmatprep.mubr.msk.bf16.mxu0 %vm593_vm2, %v1105_v29 }
 0x16d   : > { %v398_v30 = vpop.permute.xlu0 %397  ;;  %v1106_v37 = vpop.trf.xlu1 }
 0x16e   : > { %v498_v31 = vadd.f32 %v7282_v49, %v398_v30 }
 0x170   : > { %v547_v32 = vrot.slane %v498_v31, 4  ;;  %v555_v38 = vpack.c.bf16 %v498_v31, %v498_v31 }
 0x171   : > { %v1031_v40 = vpop.trf.xlu1 }
 0x172   : > { %v556_v33 = vpack.c.bf16 %v547_v32, %v547_v32  ;;  %v735_v34 = vpop.trf.xlu0  ;;  %v1046_v41 = vsel %vm600_vm1, %v555_v38, 0 }
 0x173   : > { %6023 = vmatprep.mubr.msk.bf16.mxu1 %vm593_vm2, %v735_v34 }
 0x174   : > { %6471 = vmatprep.subr.msk.bf16.mxu0 %vm600_vm1, %v556_v33  ;;  %v1120_v35 = vsel %vm600_vm1, %v556_v33, 0 }
 0x175   : > { %6052 = vmatpush3.bf16.msra.mxu0 %v1120_v35  ;;  %v1032_v42 = vpop.trf.xlu1 }
 0x176   : > { %v736_v36 = vpop.trf.xlu0 }
 0x177   : > { %6024 = vmatmul.mubr.msk.bf16.vlgmr.msra.gmra.mxu1 %vm593_vm2, %v736_v36 }
 0x178   : > { %6034 = vmatpush3.bf16.msra.mxu1 %v898_v39  ;;  %6035 = vmatprep.mubr.msk.bf16.mxu1 %vm593_vm2, %v883_v27 }
 0x179   : > { %6470 = vmatprep.subr.msk.bf16.mxu1 %vm600_vm1, %v555_v38  ;;  %6054 = vmatmul.mubr.msk.bf16.vlgmr.msra.gmra.mxu0 %vm593_vm2, %v1106_v37 }
 0x17f   : > { %6036 = vmatmul.mubr.msk.bf16.vlgmr.msra.gmra.mxu1 %vm593_vm2, %v884_v28 }
 0x180   : > { %6046 = vmatpush3.bf16.msra.mxu1 %v1046_v41  ;;  %6047 = vmatprep.mubr.msk.bf16.mxu1 %vm593_vm2, %v1031_v40 }
 0x187   : > { %6048 = vmatmul.mubr.msk.bf16.vlgmr.msra.gmra.mxu1 %vm593_vm2, %v1032_v42 }
 0x20c   : > { %v6013_v43 = vpop.f32.mrf.mxu0 }
 0x20d   : > { %v7324_v44 = vmul.f32 0.5, %v6013_v43 }
 0x20e   : > { %v638_v45 = vpop.f32.mrf.mxu0 }
 0x20f   : > { %v7326_v46 = vmul.f32 0.5, %v638_v45  ;;  %v1210_v47 = vsel %vm1203_vm3, %v7324_v44, -inf }
 0x210   : > { %1211 = vmax.xlane.f32.xlu1 %v1210_v47  ;;  %v6014_v48 = vpop.f32.mrf.mxu0 }
 0x211   : > { %v7330_v49 = vmul.f32 0.5, %v6014_v48  ;;  %v1204_v50 = vsel %vm1203_vm3, %v7326_v46, -inf }
 0x212   : > { %v641_v51 = vpop.f32.mrf.mxu0 }
 0x213   : > { %v7334_v52 = vmul.f32 0.5, %v641_v51  ;;  %v1213_v54 = vsel %vm1203_vm3, %v7330_v49, -inf }
 0x214   : > { %1205 = vmax.xlane.f32.xlu1 %v1204_v50  ;;  %v6019_v57 = vpop.f32.mrf.mxu0 }
 0x215   : > { %v1207_v53 = vsel %vm1203_vm3, %v7334_v52, -inf  ;;  %v7356_v7 = vmul.f32 0.5, %v6019_v57 }
 0x216   : > { %1208 = vmax.xlane.f32.xlu0 %v1207_v53  ;;  %v712_v59 = vpop.f32.mrf.mxu0 }
 0x217   : > { %v7364_v19 = vmul.f32 0.5, %v712_v59  ;;  %v1222_v22 = vsel %vm1203_vm3, %v7356_v7, -inf }
 0x218   : > { %1214 = vmax.xlane.f32.xlu1 %v1213_v54  ;;  %v6020_v63 = vpop.f32.mrf.mxu0 }
 0x219   : > { %v7366_v20 = vmul.f32 0.5, %v6020_v63  ;;  %v1216_v27 = vsel %vm1203_vm3, %v7364_v19, -inf }
 0x21a   : > { %v715_v5 = vpop.f32.mrf.mxu0 }
 0x21b   : > { %v7374_v26 = vmul.f32 0.5, %v715_v5  ;;  %v1225_v28 = vsel %vm1203_vm3, %v7366_v20, -inf }
 0x21c   : > { %v6031_v17 = vpop.f32.mrf.mxu0 }
 0x21d   : > { %v1219_v34 = vsel %vm1203_vm3, %v7374_v26, -inf  ;;  %v7388_v37 = vmul.f32 0.5, %v6031_v17 }
 0x21e   : > { %v860_v25 = vpop.f32.mrf.mxu0 }
 0x21f   : > { %v7396_v43 = vmul.f32 0.5, %v860_v25  ;;  %v1246_v48 = vsel %vm1203_vm3, %v7388_v37, -inf }
 0x220   : > { %v6032_v31 = vpop.f32.mrf.mxu0 }
 0x221   : > { %v7398_v45 = vmul.f32 0.5, %v6032_v31  ;;  %v1240_v57 = vsel %vm1203_vm3, %v7396_v43, -inf }
 0x222   : > { %v863_v36 = vpop.f32.mrf.mxu0 }
 0x223   : > { %v7406_v54 = vmul.f32 0.5, %v863_v36  ;;  %v1249_v59 = vsel %vm1203_vm3, %v7398_v45, -inf }
 0x224   : > { %v6043_v42 = vpop.f32.mrf.mxu0 }
 0x225   : > { %v1243_v5 = vsel %vm1203_vm3, %v7406_v54, -inf  ;;  %v7424_v17 = vmul.f32 0.5, %v6043_v42 }
 0x226   : > { %v1008_v53 = vpop.f32.mrf.mxu0 }
 0x237   : > { %v6025_v61 = vpop.f32.mrf.mxu1 }
 0x238   : > { %v7348_v62 = vmul.f32 0.5, %v6025_v61 }
 0x239   : > { %v786_v0 = vpop.f32.mrf.mxu1 }
 0x23a   : > { %v7350_v1 = vmul.f32 0.5, %v786_v0  ;;  %v1234_v2 = vsel %vm1203_vm3, %v7348_v62, -inf }
 0x23b   : > { %v6026_v3 = vpop.f32.mrf.mxu1  ;;  %1235 = vmax.xlane.f32.xlu1 %v1234_v2 }
 0x23c   : > { %v7354_v4 = vmul.f32 0.5, %v6026_v3  ;;  %v1228_v9 = vsel %vm1203_vm3, %v7350_v1, -inf  ;;  %v6044_v3 = vpop.f32.mrf.mxu0 }
 0x23d   : > { %v789_v6 = vpop.f32.mrf.mxu1  ;;  %v7430_v25 = vmul.f32 0.5, %v6044_v3 }
 0x23e   : > { %v7358_v8 = vmul.f32 0.5, %v789_v6  ;;  %v1237_v13 = vsel %vm1203_vm3, %v7354_v4, -inf }
 0x23f   : > { %1229 = vmax.xlane.f32.xlu1 %v1228_v9  ;;  %1238 = vmax.xlane.f32.xlu0 %v1237_v13  ;;  %v6037_v15 = vpop.f32.mrf.mxu1 }
 0x240   : > { %v1231_v21 = vsel %vm1203_vm3, %v7358_v8, -inf  ;;  %v7372_v24 = vmul.f32 0.5, %v6037_v15  ;;  %v1011_v15 = vpop.f32.mrf.mxu0 }
 0x241   : > { %v934_v23 = vpop.f32.mrf.mxu1 }
 0x242   : > { %v1258_v30 = vsel %vm1203_vm3, %v7372_v24, -inf  ;;  %v7382_v32 = vmul.f32 0.5, %v934_v23  ;;  %v7428_v23 = vmul.f32 0.5, %v1008_v53 }
 0x243   : > { %1232 = vmax.xlane.f32.xlu0 %v1231_v21  ;;  %1223 = vmax.xlane.f32.xlu1 %v1222_v22  ;;  %v6038_v29 = vpop.f32.mrf.mxu1  ;;  %v6055_v22 = vpop.f32.mrf.mxu0 }
 0x244   : > { %v7384_v33 = vmul.f32 0.5, %v6038_v29  ;;  %v1252_v39 = vsel %vm1203_vm3, %v7382_v32, -inf  ;;  %v7438_v31 = vmul.f32 0.5, %v6055_v22 }
 0x245   : > { %v937_v35 = vpop.f32.mrf.mxu1  ;;  %v1156_v29 = vpop.f32.mrf.mxu0 }
 0x246   : > { %v7390_v38 = vmul.f32 0.5, %v937_v35  ;;  %v1261_v40 = vsel %vm1203_vm3, %v7384_v33, -inf  ;;  %v1273_v35 = vsel %vm1203_vm3, %v7430_v25, -inf  ;;  %v1294_v42 = vsel %vm1203_vm3, %v7438_v31, -inf }
 0x247   : > { %1217 = vmax.xlane.f32.xlu1 %v1216_v27  ;;  %1226 = vmax.xlane.f32.xlu0 %v1225_v28  ;;  %v6049_v41 = vpop.f32.mrf.mxu1  ;;  %v1270_v28 = vsel %vm1203_vm3, %v7424_v17, -inf  ;;  %v6056_v36 = vpop.f32.mrf.mxu0 }
 0x248   : > { %v1255_v47 = vsel %vm1203_vm3, %v7390_v38, -inf  ;;  %v7404_v51 = vmul.f32 0.5, %v6049_v41 }
 0x249   : > { %v1082_v50 = vpop.f32.mrf.mxu1 }
 0x24a   : > { %v7412_v63 = vmul.f32 0.5, %v1082_v50  ;;  %v1282_v2 = vsel %vm1203_vm3, %v7404_v51, -inf }
 0x24b   : > { %1259 = vmax.xlane.f32.xlu1 %v1258_v30  ;;  %1220 = vmax.xlane.f32.xlu0 %v1219_v34  ;;  %v6050_v61 = vpop.f32.mrf.mxu1  ;;  %v7436_v30 = vmul.f32 0.5, %v1011_v15  ;;  %v1264_v34 = vsel %vm1203_vm3, %v7428_v23, -inf }
 0x24c   : > { %v7414_v0 = vmul.f32 0.5, %v6050_v61  ;;  %v1276_v9 = vsel %vm1203_vm3, %v7412_v63, -inf }
 0x24d   : > { %v1085_v6 = vpop.f32.mrf.mxu1  ;;  %v1267_v41 = vsel %vm1203_vm3, %v7436_v30, -inf }
 0x24e   : > { %v1285_v13 = vsel %vm1203_vm3, %v7414_v0, -inf  ;;  %v7426_v21 = vmul.f32 0.5, %v1085_v6 }
 0x24f   : > { %1253 = vmax.xlane.f32.xlu1 %v1252_v39  ;;  %1262 = vmax.xlane.f32.xlu0 %v1261_v40  ;;  %v7444_v39 = vmul.f32 0.5, %v1156_v29  ;;  %v7446_v40 = vmul.f32 0.5, %v6056_v36 }
 0x250   : > { %v1279_v27 = vsel %vm1203_vm3, %v7426_v21, -inf }
 0x251   : > { %v1288_v50 = vsel %vm1203_vm3, %v7444_v39, -inf  ;;  %v1297_v53 = vsel %vm1203_vm3, %v7446_v40, -inf }
 0x253   : > { %1256 = vmax.xlane.f32.xlu0 %v1255_v47  ;;  %1247 = vmax.xlane.f32.xlu1 %v1246_v48  ;;  %v1159_v47 = vpop.f32.mrf.mxu0 }
 0x254   : > { %v7452_v48 = vmul.f32 0.5, %v1159_v47 }
 0x257   : > { %1241 = vmax.xlane.f32.xlu1 %v1240_v57  ;;  %1250 = vmax.xlane.f32.xlu0 %v1249_v59  ;;  %v1291_v57 = vsel %vm1203_vm3, %v7452_v48, -inf  ;;  %v284_v59 = vld [vmem:[%s9001_s3 + $0xa0] sm:$0xff] }
 0x25b   : > { %1283 = vmax.xlane.f32.xlu1 %v1282_v2  ;;  %1244 = vmax.xlane.f32.xlu0 %v1243_v5 }
 0x25f   : > { %1277 = vmax.xlane.f32.xlu1 %v1276_v9  ;;  %1286 = vmax.xlane.f32.xlu0 %v1285_v13 }
 0x263   : > { %1280 = vmax.xlane.f32.xlu0 %v1279_v27  ;;  %1271 = vmax.xlane.f32.xlu1 %v1270_v28 }
 0x267   : > { %1265 = vmax.xlane.f32.xlu1 %v1264_v34  ;;  %1274 = vmax.xlane.f32.xlu0 %v1273_v35 }
 0x26b   : > { %1268 = vmax.xlane.f32.xlu0 %v1267_v41  ;;  %1295 = vmax.xlane.f32.xlu1 %v1294_v42 }
 0x26f   : > { %1289 = vmax.xlane.f32.xlu1 %v1288_v50  ;;  %1298 = vmax.xlane.f32.xlu0 %v1297_v53 }
 0x273   : > { %1292 = vmax.xlane.f32.xlu0 %v1291_v57 }
 0x280   : > { %402 = vperm.xlu1 %6599, %v284_v59  }
 0x299   : > { %v1212_v61 = vpop.xlane.xlu1 %1211 }
 0x29a   : > { %v1302_v2 = vsub.f32 %v7324_v44, %v1212_v61 }
 0x29c   : > { %v1336_v3 = vmul.f32 1.442695, %v1302_v2 }
 0x29d   : > { %v1206_v5 = vpop.xlane.xlu1 %1205 }
 0x29e   : > { %6630 = vpow2.f32 %v1336_v3  ;;  %v1300_v6 = vsub.f32 %v7326_v46, %v1206_v5  ;;  %v9005_v5 = vmov 0.0  }
 0x29f   : > { %v1209_v9 = vpop.xlane.xlu0 %1208  ;;  %6057 = vmatprep.subr.bf16.mxu1 %v9005_v5  ;;  %6065 = vmatprep.subr.bf16.mxu0 %v9005_v5 }
 0x2a0   : > { %v1332_v13 = vmul.f32 1.442695, %v1300_v6  ;;  %v1301_v15 = vsub.f32 %v7334_v52, %v1209_v9  ;;  %6061 = vmatprep.mubr.msk.bf16.mxu1 %vm7108_vm4, %v9005_v5  ;;  %6069 = vmatprep.mubr.msk.bf16.mxu0 %vm7108_vm4, %v9005_v5 }
 0x2a1   : > { %v1215_v22 = vpop.xlane.xlu1 %1214 }
 0x2a2   : > { %6632 = vpow2.f32 %v1332_v13  ;;  %v1303_v27 = vsub.f32 %v7330_v49, %v1215_v22  ;;  %v1334_v28 = vmul.f32 1.442695, %v1301_v15 }
 0x2a4   : > { %v1338_v29 = vmul.f32 1.442695, %v1303_v27 }
 0x2a6   : > { %6634 = vpow2.f32 %v1338_v29 }
 0x2a7   : > { %6636 = vpow2.f32 %v1334_v28 }
 0x2ab   : > { %v7467_v34 = vpop.eup %6630 }
 0x2ac   : > { %v1402_v44 = vsel %vm1203_vm3, %v7467_v34, 0.0 }
 0x2ad   : > { %1403 = vadd.xlane.f32.xlu1 %v1402_v44 }
 0x2af   : > { %v7471_v35 = vpop.eup %6632 }
 0x2b0   : > { %v1396_v46 = vsel %vm1203_vm3, %v7471_v35, 0.0 }
 0x2b1   : > { %1397 = vadd.xlane.f32.xlu1 %v1396_v46 }
 0x2b3   : > { %v7475_v52 = vpop.eup %6634 }
 0x2b4   : > { %v1405_v49 = vsel %vm1203_vm3, %v7475_v52, 0.0  ;;  %v7479_v36 = vpop.eup %6636 }
 0x2b5   : > { %1406 = vadd.xlane.f32.xlu0 %v1405_v49  ;;  %v1399_v41 = vsel %vm1203_vm3, %v7479_v36, 0.0 }
 0x2b9   : > { %1400 = vadd.xlane.f32.xlu0 %v1399_v41 }
 0x2c4   : > { %v1236_v42 = vpop.xlane.xlu1 %1235 }
 0x2c5   : > { %v1310_v47 = vsub.f32 %v7348_v62, %v1236_v42 }
 0x2c7   : > { %v1352_v50 = vmul.f32 1.442695, %v1310_v47 }
 0x2c8   : > { %v1230_v53 = vpop.xlane.xlu1 %1229  ;;  %v1239_v57 = vpop.xlane.xlu0 %1238 }
 0x2c9   : > { %6638 = vpow2.f32 %v1352_v50  ;;  %v1308_v59 = vsub.f32 %v7350_v1, %v1230_v53  ;;  %v1311_v61 = vsub.f32 %v7354_v4, %v1239_v57 }
 0x2cb   : > { %v1348_v2 = vmul.f32 1.442695, %v1308_v59  ;;  %v1354_v3 = vmul.f32 1.442695, %v1311_v61 }
 0x2cc   : > { %v1233_v6 = vpop.xlane.xlu0 %1232  ;;  %v1224_v9 = vpop.xlane.xlu1 %1223 }
 0x2cd   : > { %6640 = vpow2.f32 %v1348_v2  ;;  %v1309_v62 = vsub.f32 %v7358_v8, %v1233_v6  ;;  %v1306_v13 = vsub.f32 %v7356_v7, %v1224_v9 }
 0x2ce   : > { %6642 = vpow2.f32 %v1354_v3 }
 0x2cf   : > { %v1350_v15 = vmul.f32 1.442695, %v1309_v62  ;;  %v1344_v22 = vmul.f32 1.442695, %v1306_v13 }
 0x2d0   : > { %v1218_v1 = vpop.xlane.xlu1 %1217  ;;  %v1227_v27 = vpop.xlane.xlu0 %1226 }
 0x2d1   : > { %6644 = vpow2.f32 %v1350_v15  ;;  %v1304_v4 = vsub.f32 %v7364_v19, %v1218_v1  ;;  %v1307_v28 = vsub.f32 %v7366_v20, %v1227_v27 }
 0x2d2   : > { %6646 = vpow2.f32 %v1344_v22 }
 0x2d3   : > { %v1340_v29 = vmul.f32 1.442695, %v1304_v4  ;;  %v1346_v44 = vmul.f32 1.442695, %v1307_v28 }
 0x2d4   : > { %v1260_v46 = vpop.xlane.xlu1 %1259  ;;  %v1221_v49 = vpop.xlane.xlu0 %1220 }
 0x2d5   : > { %6648 = vpow2.f32 %v1340_v29  ;;  %v1318_v8 = vsub.f32 %v7372_v24, %v1260_v46  ;;  %v1305_v7 = vsub.f32 %v7374_v26, %v1221_v49 }
 0x2d6   : > { %v7494_v41 = vpop.eup %6638  ;;  %6650 = vpow2.f32 %v1346_v44 }
 0x2d7   : > { %v1368_v42 = vmul.f32 1.442695, %v1318_v8  ;;  %v1342_v47 = vmul.f32 1.442695, %v1305_v7  ;;  %v1426_v19 = vsel %vm1203_vm3, %v7494_v41, 0.0 }
 0x2d8   : > { %v1254_v50 = vpop.xlane.xlu1 %1253  ;;  %v1263_v20 = vpop.xlane.xlu0 %1262  ;;  %1427 = vadd.xlane.f32.xlu1 %v1426_v19 }
 0x2d9   : > { %6652 = vpow2.f32 %v1368_v42  ;;  %v1316_v53 = vsub.f32 %v7382_v32, %v1254_v50  ;;  %v1319_v57 = vsub.f32 %v7384_v33, %v1263_v20 }
 0x2da   : > { %v7500_v59 = vpop.eup %6640  ;;  %6654 = vpow2.f32 %v1342_v47 }
 0x2db   : > { %v7502_v24 = vpop.eup %6642  ;;  %v1364_v26 = vmul.f32 1.442695, %v1316_v53  ;;  %v1420_v61 = vsel %vm1203_vm3, %v7500_v59, 0.0  ;;  %v1370_v2 = vmul.f32 1.442695, %v1319_v57 }
 0x2dc   : > { %v1257_v3 = vpop.xlane.xlu0 %1256  ;;  %v1248_v6 = vpop.xlane.xlu1 %1247  ;;  %1421 = vadd.xlane.f32.xlu1 %v1420_v61  ;;  %v1429_v9 = vsel %vm1203_vm3, %v7502_v24, 0.0 }
 0x2dd   : > { %6656 = vpow2.f32 %v1364_v26  ;;  %v1317_v32 = vsub.f32 %v7390_v38, %v1257_v3  ;;  %v1314_v33 = vsub.f32 %v7388_v37, %v1248_v6  ;;  %1430 = vadd.xlane.f32.xlu0 %v1429_v9 }
 0x2de   : > { %v7510_v62 = vpop.eup %6644  ;;  %6658 = vpow2.f32 %v1370_v2 }
 0x2df   : > { %v7512_v13 = vpop.eup %6646  ;;  %v1360_v15 = vmul.f32 1.442695, %v1314_v33  ;;  %v1423_v22 = vsel %vm1203_vm3, %v7510_v62, 0.0  ;;  %v1366_v1 = vmul.f32 1.442695, %v1317_v32 }
 0x2e0   : > { %v1242_v27 = vpop.xlane.xlu1 %1241  ;;  %v1251_v4 = vpop.xlane.xlu0 %1250  ;;  %v1414_v28 = vsel %vm1203_vm3, %v7512_v13, 0.0 }
 0x2e1   : > { %v1312_v38 = vsub.f32 %v7396_v43, %v1242_v27  ;;  %v1315_v37 = vsub.f32 %v7398_v45, %v1251_v4  ;;  %1415 = vadd.xlane.f32.xlu1 %v1414_v28  ;;  %1424 = vadd.xlane.f32.xlu0 %v1423_v22  ;;  %6660 = vpow2.f32 %v1360_v15 }
 0x2e2   : > { %v7520_v29 = vpop.eup %6648  ;;  %6662 = vpow2.f32 %v1366_v1 }
 0x2e3   : > { %v7526_v44 = vpop.eup %6650  ;;  %v1356_v46 = vmul.f32 1.442695, %v1312_v38  ;;  %v1408_v43 = vsel %vm1203_vm3, %v7520_v29, 0.0  ;;  %v1362_v45 = vmul.f32 1.442695, %v1315_v37 }
 0x2e4   : > { %v1284_v49 = vpop.xlane.xlu1 %1283  ;;  %v1245_v8 = vpop.xlane.xlu0 %1244  ;;  %v1417_v7 = vsel %vm1203_vm3, %v7526_v44, 0.0 }
 0x2e5   : > { %6664 = vpow2.f32 %v1356_v46  ;;  %v1326_v42 = vsub.f32 %v7404_v51, %v1284_v49  ;;  %1409 = vadd.xlane.f32.xlu1 %v1408_v43  ;;  %1418 = vadd.xlane.f32.xlu0 %v1417_v7  ;;  %v1313_v53 = vsub.f32 %v7406_v54, %v1245_v8 }
 0x2e6   : > { %v7533_v47 = vpop.eup %6652  ;;  %6666 = vpow2.f32 %v1362_v45 }
 0x2e7   : > { %v7535_v19 = vpop.eup %6654  ;;  %v1450_v50 = vsel %vm1203_vm3, %v7533_v47, 0.0  ;;  %v1384_v20 = vmul.f32 1.442695, %v1326_v42  ;;  %v1358_v6 = vmul.f32 1.442695, %v1313_v53 }
 0x2e8   : > { %v1278_v57 = vpop.xlane.xlu1 %1277  ;;  %v1287_v26 = vpop.xlane.xlu0 %1286  ;;  %v1411_v61 = vsel %vm1203_vm3, %v7535_v19, 0.0 }
 0x2e9   : > { %1451 = vadd.xlane.f32.xlu1 %v1450_v50  ;;  %1412 = vadd.xlane.f32.xlu0 %v1411_v61  ;;  %v1324_v2 = vsub.f32 %v7412_v63, %v1278_v57  ;;  %6668 = vpow2.f32 %v1384_v20  ;;  %v1327_v9 = vsub.f32 %v7414_v0, %v1287_v26 }
 0x2ea   : > { %v7542_v51 = vpop.eup %6656  ;;  %6670 = vpow2.f32 %v1358_v6 }
 0x2eb   : > { %v1444_v3 = vsel %vm1203_vm3, %v7542_v51, 0.0  ;;  %v7548_v33 = vpop.eup %6658  ;;  %v1380_v1 = vmul.f32 1.442695, %v1324_v2  ;;  %v1386_v4 = vmul.f32 1.442695, %v1327_v9 }
 0x2ec   : > { %v1281_v32 = vpop.xlane.xlu0 %1280  ;;  %v1272_v54 = vpop.xlane.xlu1 %1271  ;;  %v1453_v37 = vsel %vm1203_vm3, %v7548_v33, 0.0 }
 0x2ed   : > { %v1322_v15 = vsub.f32 %v7424_v17, %v1272_v54  ;;  %1445 = vadd.xlane.f32.xlu0 %v1444_v3  ;;  %v1325_v27 = vsub.f32 %v7426_v21, %v1281_v32 }
 0x2ee   : > { %v7551_v22 = vpop.eup %6660 }
 0x2ef   : > { %v1376_v63 = vmul.f32 1.442695, %v1322_v15  ;;  %v1438_v0 = vsel %vm1203_vm3, %v7551_v22, 0.0  ;;  %v7558_v46 = vpop.eup %6662  ;;  %v1382_v21 = vmul.f32 1.442695, %v1325_v27 }
 0x2f0   : > { %v1266_v28 = vpop.xlane.xlu1 %1265  ;;  %v1275_v38 = vpop.xlane.xlu0 %1274  ;;  %1439 = vadd.xlane.f32.xlu1 %v1438_v0  ;;  %v1447_v42 = vsel %vm1203_vm3, %v7558_v46, 0.0 }
 0x2f1   : > { %v1320_v17 = vsub.f32 %v7428_v23, %v1266_v28  ;;  %1454 = vadd.xlane.f32.xlu0 %v1453_v37  ;;  %6672 = vpow2.f32 %v1376_v63  ;;  %v1323_v8 = vsub.f32 %v7430_v25, %v1275_v38 }
 0x2f2   : > { %v7561_v43 = vpop.eup %6664  ;;  %6674 = vpow2.f32 %v1380_v1 }
 0x2f3   : > { %v1432_v45 = vsel %vm1203_vm3, %v7561_v43, 0.0  ;;  %6676 = vpow2.f32 %v1386_v4  ;;  %v1372_v49 = vmul.f32 1.442695, %v1320_v17  ;;  %v7568_v50 = vpop.eup %6666  ;;  %v1378_v23 = vmul.f32 1.442695, %v1323_v8 }
 0x2f4   : > { %v1269_v7 = vpop.xlane.xlu0 %1268  ;;  %1433 = vadd.xlane.f32.xlu1 %v1432_v45  ;;  %6678 = vpow2.f32 %v1382_v21  ;;  %v1441_v57 = vsel %vm1203_vm3, %v7568_v50, 0.0 }
 0x2f5   : > { %1448 = vadd.xlane.f32.xlu0 %v1447_v42  ;;  %6680 = vpow2.f32 %v1372_v49  ;;  %v1321_v20 = vsub.f32 %v7436_v30, %v1269_v7 }
 0x2f6   : > { %v7573_v26 = vpop.eup %6668  ;;  %6682 = vpow2.f32 %v1378_v23  ;;  %v286_v23 = vld [vmem:[%s9001_s3 + $0xb0] sm:$0xff] }
 0x2f7   : > { %v1374_v2 = vmul.f32 1.442695, %v1321_v20  ;;  %v1474_v3 = vsel %vm1203_vm3, %v7573_v26, 0.0  ;;  %v7578_v9 = vpop.eup %6670  ;;  %v288_v20 = vld [vmem:[%s9001_s3 + $0xc0] sm:$0xff] }
 0x2f8   : > { %v1299_v53 = vpop.xlane.xlu0 %1298  ;;  %v1435_v1 = vsel %vm1203_vm3, %v7578_v9, 0.0 }
 0x2f9   : > { %v1331_v25 = vsub.f32 %v7446_v40, %v1299_v53  ;;  %1442 = vadd.xlane.f32.xlu0 %v1441_v57  ;;  %v285_v53 = vld [vmem:[%s9001_s3 + $0xa8] sm:$0xff] }
 0x2fa   : > { %v289_v57 = vld [vmem:[%s9001_s3 + $0xc8] sm:$0xff] }
 0x2fb   : > { %v1394_v61 = vmul.f32 1.442695, %v1331_v25  ;;  %v1296_v25 = vpop.xlane.xlu1 %1295 }
 0x2fc   : > { %v1293_v6 = vpop.xlane.xlu0 %1292 }
 0x2fd   : > { %1475 = vadd.xlane.f32.xlu0 %v1474_v3  ;;  %v1329_v30 = vsub.f32 %v7452_v48, %v1293_v6  ;;  %6684 = vpow2.f32 %v1394_v61  ;;  %v290_v61 = vld [vmem:[%s9001_s3 + $0xd0] sm:$0xff]  ;;  %v291_v6 = vld [vmem:[%s9001_s3 + $0xd8] sm:$0xff] }
 0x2fe   : > { %v7581_v32 = vpop.eup %6672  ;;  %6686 = vpow2.f32 %v1374_v2  ;;  %v1330_v2 = vsub.f32 %v7438_v31, %v1296_v25 }
 0x2ff   : > { %v1390_v54 = vmul.f32 1.442695, %v1329_v30  ;;  %v7583_v15 = vpop.eup %6674  ;;  %v1462_v40 = vsel %vm1203_vm3, %v7581_v32, 0.0  ;;  %v1290_v3 = vpop.xlane.xlu1 %1289 }
 0x300   : > { %v7589_v27 = vpop.eup %6676  ;;  %1463 = vadd.xlane.f32.xlu1 %v1462_v40  ;;  %v1468_v48 = vsel %vm1203_vm3, %v7583_v15, 0.0  ;;  %v1392_v30 = vmul.f32 1.442695, %v1330_v2 }
 0x301   : > { %6688 = vpow2.f32 %v1390_v54  ;;  %1436 = vadd.xlane.f32.xlu0 %v1435_v1  ;;  %v7591_v63 = vpop.eup %6678  ;;  %v1477_v4 = vsel %vm1203_vm3, %v7589_v27, 0.0  ;;  %v1328_v54 = vsub.f32 %v7444_v39, %v1290_v3 }
 0x302   : > { %v7597_v28 = vpop.eup %6680  ;;  %v1471_v38 = vsel %vm1203_vm3, %v7591_v63, 0.0  ;;  %6690 = vpow2.f32 %v1392_v30  ;;  %v2271_v30 = vld [vmem:[%s9001_s3 + $0xf0] sm:$0xff] }
 0x303   : > { %v1456_v0 = vsel %vm1203_vm3, %v7597_v28, 0.0  ;;  %v7603_v37 = vpop.eup %6682  ;;  %v1388_v40 = vmul.f32 1.442695, %v1328_v54  ;;  %v403_v1 = vpop.permute.xlu1 %402 }
 0x304   : > { %1469 = vadd.xlane.f32.xlu1 %v1468_v48  ;;  %v1465_v45 = vsel %vm1203_vm3, %v7603_v37, 0.0  ;;  %v2270_v48 = vld [vmem:[%s9001_s3 + $0xe8] sm:$0xff] }
 0x305   : > { %1478 = vadd.xlane.f32.xlu0 %v1477_v4  ;;  %6692 = vpow2.f32 %v1388_v40  ;;  %v2273_v40 = vld [vmem:[%s9001_s3 + $0x100] sm:$0xff] }
 0x308   : > { %1472 = vadd.xlane.f32.xlu1 %v1471_v38  ;;  %v2276_v38 = vld [vmem:[%s9001_s3 + $0x118] sm:$0xff] }
 0x309   : > { %1457 = vadd.xlane.f32.xlu0 %v1456_v0 }
 0x30a   : > { %v7605_v17 = vpop.eup %6684 }
 0x30b   : > { %v1489_v21 = vsel %vm1203_vm3, %v7605_v17, 0.0  ;;  %v7611_v49 = vpop.eup %6686 }
 0x30c   : > { %1490 = vadd.xlane.f32.xlu1 %v1489_v21  ;;  %v1459_v42 = vsel %vm1203_vm3, %v7611_v49, 0.0 }
 0x30d   : > { %1466 = vadd.xlane.f32.xlu0 %v1465_v45 }
 0x30e   : > { %v7613_v8 = vpop.eup %6688 }
 0x30f   : > { %v1483_v7 = vsel %vm1203_vm3, %v7613_v8, 0.0  ;;  %v7651_v16 = vpop.eup %6690 }
 0x310   : > { %1484 = vadd.xlane.f32.xlu1 %v1483_v7  ;;  %v1486_v11 = vsel %vm1203_vm3, %v7651_v16, 0.0 }
 0x311   : > { %1460 = vadd.xlane.f32.xlu0 %v1459_v42 }
 0x321   : > { %412 = vperm.xlu1 %6599, %v286_v23  }
 0x325   : > { %1985 = vperm.xlu1 %6599, %v288_v20  }
 0x327   : > { %407 = vperm.xlu0 %6598, %v285_v53  }
 0x329   : > { %1990 = vperm.xlu1 %6599, %v289_v57  }
 0x32d   : > { %1995 = vperm.xlu1 %6599, %v290_v61  }
 0x331   : > { %2000 = vperm.xlu1 %6599, %v291_v6  }
 0x335   : > { %6601 = vrot.lane.b32.xlu1 %v6600_v18, %s7109_s29 }
 0x336   : > { %v1404_v31 = vpop.xlane.xlu1 %1403 }
 0x337   : > { %6694 = vrcp.f32 %v1404_v31 }
 0x339   : > { %6606 = vrot.lane.b32.xlu1 %v6605_v14, %s7109_s29  ;;  %v7658_v14 = vpop.eup %6692 }
 0x33a   : > { %v1398_v4 = vpop.xlane.xlu1 %1397  ;;  %v1480_v0 = vsel %vm1203_vm3, %v7658_v14, 0.0 }
 0x33d   : > { %2583 = vperm.xlu1 %6599, %v2270_v48   ;;  %v2275_v48 = vld [vmem:[%s9001_s3 + $0x110] sm:$0xff] }
 0x33e   : > { %v1407_v39 = vpop.xlane.xlu0 %1406 }
 0x33f   : > { %6696 = vrcp.f32 %v1407_v39 }
 0x340   : > { %6698 = vrcp.f32 %v1398_v4 }
 0x341   : > { %2593 = vperm.xlu1 %6599, %v2272_v12  }
 0x342   : > { %v1401_v18 = vpop.xlane.xlu0 %1400 }
 0x343   : > { %6700 = vrcp.f32 %v1401_v18 }
 0x344   : > { %v6695_v21 = vpop.eup %6694 }
 0x345   : > { %2603 = vperm.xlu1 %6599, %v2274_v10   ;;  %v1526_v7 = vmul.f32 %v6695_v21, %v7467_v34  ;;  %v7673_v34 = vadd.f32 %v7342_v56, %v403_v1 }
 0x346   : > { %1487 = vadd.xlane.f32.xlu0 %v1486_v11 }
 0x349   : > { %2613 = vperm.xlu1 %6599, %v2276_v38  }
 0x34a   : > { %1481 = vadd.xlane.f32.xlu0 %v1480_v0 }
 0x34c   : > { %v6697_v45 = vpop.eup %6696 }
 0x34d   : > { %v1527_v42 = vmul.f32 %v6697_v45, %v7475_v52  ;;  %v6699_v23 = vpop.eup %6698  ;;  %v287_v52 = vld [vmem:[%s9001_s3 + $0xb8] sm:$0xff] }
 0x34e   : > { %v1524_v61 = vmul.f32 %v6699_v23, %v7471_v35  ;;  %v2269_v35 = vld [vmem:[%s9001_s3 + $0xe0] sm:$0xff] }
 0x34f   : > { %v1557_v20 = vpack.c.bf16 %v1527_v42, %v1526_v7 }
 0x350   : > { %v6701_v53 = vpop.eup %6700 }
 0x351   : > { %v1579_v57 = vsel %vm1203_vm3, %v1557_v20, 0  ;;  %v1525_v25 = vmul.f32 %v6701_v53, %v7479_v36  ;;  %v569_v36 = vpack.c.bf16 %v7673_v34, %v7673_v34 }
 0x352   : > { %6058 = vmatpush3.bf16.xpose.msra.mxu1 %v1579_v57 }
 0x353   : > { %6059 = vmatprep.subr.bf16.mxu1 %v9005_v5  ;;  %v1556_v2 = vpack.c.bf16 %v1525_v25, %v1524_v61 }
 0x355   : > { %v1576_v3 = vsel %vm1203_vm3, %v1556_v2, 0 }
 0x35a   : > { %6060 = vmatpush3.bf16.xpose.msra.mxu1 %v1576_v3 }
 0x35b   : > { %6073 = vmatprep.subr.bf16.mxu1 %v9005_v5 }
 0x360   : > { %417 = vperm.xlu0 %6598, %v287_v52  }
 0x361   : > { %v1428_v6 = vpop.xlane.xlu1 %1427  ;;  %6062 = vmatmul.mubr.msk.bf16.vlgmr.msra.gmra.mxu1 %vm1203_vm3, %v569_v36 }
 0x362   : > { %6077 = vmatprep.mubr.msk.bf16.mxu1 %vm7108_vm4, %v9005_v5  ;;  %6702 = vrcp.f32 %v1428_v6 }
 0x364   : > { %2578 = vperm.xlu0 %6598, %v2269_v35  }
 0x365   : > { %v1422_v56 = vpop.xlane.xlu1 %1421 }
 0x366   : > { %v1431_v54 = vpop.xlane.xlu0 %1430 }
 0x367   : > { %6704 = vrcp.f32 %v1431_v54 }
 0x368   : > { %2588 = vperm.xlu0 %6598, %v2271_v30   ;;  %6706 = vrcp.f32 %v1422_v56 }
 0x36a   : > { %v1416_v1 = vpop.xlane.xlu1 %1415  ;;  %v1425_v31 = vpop.xlane.xlu0 %1424 }
 0x36b   : > { %6708 = vrcp.f32 %v1425_v31 }
 0x36c   : > { %2598 = vperm.xlu0 %6598, %v2273_v40   ;;  %6710 = vrcp.f32 %v1416_v1 }
 0x36e   : > { %v1419_v39 = vpop.xlane.xlu0 %1418  ;;  %v1410_v4 = vpop.xlane.xlu1 %1409 }
 0x36f   : > { %6712 = vrcp.f32 %v1419_v39  ;;  %v6703_v12 = vpop.eup %6702 }
 0x370   : > { %2608 = vperm.xlu0 %6598, %v2275_v48   ;;  %6714 = vrcp.f32 %v1410_v4  ;;  %v1534_v11 = vmul.f32 %v6703_v12, %v7494_v41  ;;  %v558_v48 = vrot.slane %v7673_v34, 4 }
 0x372   : > { %v1413_v18 = vpop.xlane.xlu0 %1412  ;;  %v1452_v23 = vpop.xlane.xlu1 %1451 }
 0x373   : > { %6716 = vrcp.f32 %v1413_v18  ;;  %v570_v18 = vpack.c.bf16 %v558_v48, %v558_v48 }
 0x374   : > { %v6705_v10 = vpop.eup %6704 }
 0x375   : > { %v1535_v38 = vmul.f32 %v6705_v10, %v7502_v24  ;;  %v6707_v45 = vpop.eup %6706 }
 0x376   : > { %v7698_v0 = vpop.xlane.xlu0 %1445  ;;  %v1532_v25 = vmul.f32 %v6707_v45, %v7500_v59 }
 0x377   : > { %v1561_v21 = vpack.c.bf16 %v1535_v38, %v1534_v11 }
 0x378   : > { %v6709_v7 = vpop.eup %6708 }
 0x379   : > { %v1677_v42 = vsel %vm1203_vm3, %v1561_v21, 0  ;;  %v1533_v53 = vmul.f32 %v6709_v7, %v7510_v62  ;;  %v6711_v57 = vpop.eup %6710  ;;  %v1440_v24 = vpop.xlane.xlu1 %1439 }
 0x37a   : > { %6074 = vmatpush3.bf16.xpose.msra.mxu1 %v1677_v42  ;;  %v1455_v20 = vpop.xlane.xlu0 %1454  ;;  %v1530_v3 = vmul.f32 %v6711_v57, %v7512_v13  ;;  %6718 = vrcp.f32 %v1440_v24 }
 0x37b   : > { %6075 = vmatprep.subr.bf16.mxu1 %v9005_v5  ;;  %v1560_v61 = vpack.c.bf16 %v1533_v53, %v1532_v25 }
 0x37c   : > { %v6713_v41 = vpop.eup %6712 }
 0x37d   : > { %v1531_v52 = vmul.f32 %v6713_v41, %v7526_v44  ;;  %v6715_v36 = vpop.eup %6714  ;;  %v1674_v56 = vsel %vm1203_vm3, %v1560_v61, 0  ;;  %v1434_v40 = vpop.xlane.xlu1 %1433 }
 0x37e   : > { %v1449_v2 = vpop.xlane.xlu0 %1448  ;;  %v1528_v13 = vmul.f32 %v6715_v36, %v7520_v29 }
 0x37f   : > { %v1559_v6 = vpack.c.bf16 %v1531_v52, %v1530_v3 }
 0x380   : > { %v6717_v35 = vpop.eup %6716 }
 0x381   : > { %v1628_v62 = vsel %vm1203_vm3, %v1559_v6, 0  ;;  %v1529_v59 = vmul.f32 %v6717_v35, %v7535_v19 }
 0x382   : > { %6076 = vmatpush3.bf16.xpose.msra.mxu1 %v1674_v56  ;;  %v1443_v30 = vpop.xlane.xlu0 %1442  ;;  %6066 = vmatpush3.bf16.xpose.msra.mxu0 %v1628_v62 }
 0x383   : > { %6720 = vrcp.f32 %v1443_v30  ;;  %6089 = vmatprep.subr.bf16.mxu1 %v9005_v5  ;;  %6067 = vmatprep.subr.bf16.mxu0 %v9005_v5  ;;  %v1558_v54 = vpack.c.bf16 %v1529_v59, %v1528_v13 }
 0x384   : > { %6722 = vrcp.f32 %v1434_v40 }
 0x385   : > { %v1625_v1 = vsel %vm1203_vm3, %v1558_v54, 0 }
 0x386   : > { %v1476_v44 = vpop.xlane.xlu0 %1475 }
 0x387   : > { %v6719_v19 = vpop.eup %6718 }
 0x388   : > { %v1538_v29 = vmul.f32 %v6719_v19, %v7551_v22 }
 0x389   : > { %v1464_v4 = vpop.xlane.xlu1 %1463 }
 0x38a   : > { %v1437_v31 = vpop.xlane.xlu0 %1436  ;;  %6068 = vmatpush3.bf16.xpose.msra.mxu0 %v1625_v1 }
 0x38b   : > { %6724 = vrcp.f32 %v1437_v31  ;;  %6081 = vmatprep.subr.bf16.mxu0 %v9005_v5 }
 0x38c   : > { %6726 = vrcp.f32 %v1455_v20 }
 0x38d   : > { %6728 = vrcp.f32 %v1452_v23  ;;  %v1470_v34 = vpop.xlane.xlu1 %1469 }
 0x38e   : > { %v1479_v39 = vpop.xlane.xlu0 %1478  ;;  %6730 = vrcp.f32 %v1464_v4 }
 0x38f   : > { %6732 = vrcp.f32 %v1449_v2 }
 0x390   : > { %v6721_v12 = vpop.eup %6720 }
 0x391   : > { %v1539_v10 = vmul.f32 %v6721_v12, %v7568_v50  ;;  %6070 = vmatmul.mubr.msk.bf16.vlgmr.msra.gmra.mxu0 %vm1203_vm3, %v570_v18  ;;  %v6723_v7 = vpop.eup %6722  ;;  %v1473_v20 = vpop.xlane.xlu1 %1472 }
 0x392   : > { %v1458_v11 = vpop.xlane.xlu0 %1457  ;;  %6085 = vmatprep.mubr.msk.bf16.mxu0 %vm7108_vm4, %v9005_v5  ;;  %v1536_v42 = vmul.f32 %v6723_v7, %v7561_v43 }
 0x393   : > { %v1563_v38 = vpack.c.bf16 %v1539_v10, %v1538_v29 }
 0x395   : > { %v1726_v21 = vsel %vm1203_vm3, %v1563_v38, 0 }
 0x396   : > { %6082 = vmatpush3.bf16.xpose.msra.mxu0 %v1726_v21  ;;  %v1467_v45 = vpop.xlane.xlu0 %1466 }
 0x397   : > { %6083 = vmatprep.subr.bf16.mxu0 %v9005_v5  ;;  %6734 = vrcp.f32 %v1467_v45 }
 0x398   : > { %v6725_v22 = vpop.eup %6724  ;;  %6736 = vrcp.f32 %v7698_v0  ;;  %v7728_v0 = vpop.xlane.xlu1 %1490 }
 0x399   : > { %v1537_v23 = vmul.f32 %v6725_v22, %v7578_v9  ;;  %6738 = vrcp.f32 %v1458_v11  ;;  %v6727_v53 = vpop.eup %6726 }
 0x39a   : > { %v1461_v50 = vpop.xlane.xlu0 %1460  ;;  %v6729_v25 = vpop.eup %6728  ;;  %v1543_v61 = vmul.f32 %v6727_v53, %v7548_v33 }
 0x39b   : > { %6740 = vrcp.f32 %v1461_v50  ;;  %v1562_v57 = vpack.c.bf16 %v1537_v23, %v1536_v42  ;;  %v1542_v43 = vmul.f32 %v6729_v25, %v7533_v47  ;;  %v6731_v24 = vpop.eup %6730 }
 0x39c   : > { %6742 = vrcp.f32 %v1479_v39  ;;  %v6733_v52 = vpop.eup %6732  ;;  %v1546_v62 = vmul.f32 %v6731_v24, %v7581_v32  ;;  %v1485_v30 = vpop.xlane.xlu1 %1484 }
 0x39d   : > { %v1723_v41 = vsel %vm1203_vm3, %v1562_v57, 0  ;;  %6744 = vrcp.f32 %v1476_v44  ;;  %v1565_v3 = vpack.c.bf16 %v1543_v61, %v1542_v43  ;;  %v1541_v13 = vmul.f32 %v6733_v52, %v7558_v46 }
 0x39e   : > { %6084 = vmatpush3.bf16.xpose.msra.mxu0 %v1723_v41  ;;  %6746 = vrcp.f32 %v1473_v20 }
 0x39f   : > { %6097 = vmatprep.subr.bf16.mxu0 %v9005_v5  ;;  %v1775_v47 = vsel %vm1203_vm3, %v1565_v3, 0  ;;  %6748 = vrcp.f32 %v1470_v34 }
 0x3a0   : > { %v413_v48 = vpop.permute.xlu1 %412  ;;  %6750 = vrcp.f32 %v7728_v0 }
 0x3a1   : > { %v511_v12 = vadd.f32 %v7340_v55, %v413_v48 }
 0x3a2   : > { %v408_v9 = vpop.permute.xlu0 %407 }
 0x3a3   : > { %v506_v2 = vadd.f32 %v7346_v60, %v408_v9  ;;  %v573_v11 = vpack.c.bf16 %v511_v12, %v511_v12 }
 0x3a4   : > { %v6735_v36 = vpop.eup %6734 }
 0x3a5   : > { %v561_v6 = vrot.slane %v506_v2, 4  ;;  %v571_v35 = vpack.c.bf16 %v506_v2, %v506_v2  ;;  %v6737_v56 = vpop.eup %6736  ;;  %v1547_v33 = vmul.f32 %v6735_v36, %v7603_v37 }
 0x3a6   : > { %v6739_v60 = vpop.eup %6738  ;;  %v1540_v32 = vmul.f32 %v6737_v56, %v7542_v51 }
 0x3a7   : > { %v572_v59 = vpack.c.bf16 %v561_v6, %v561_v6  ;;  %6078 = vmatmul.mubr.msk.bf16.vlgmr.msra.gmra.mxu1 %vm1203_vm3, %v571_v35  ;;  %v1567_v44 = vpack.c.bf16 %v1547_v33, %v1546_v62  ;;  %v1544_v31 = vmul.f32 %v6739_v60, %v7597_v28  ;;  %v564_v28 = vrot.slane %v511_v12, 4 }
 0x3a8   : > { %6090 = vmatpush3.bf16.xpose.msra.mxu1 %v1775_v47  ;;  %6093 = vmatprep.mubr.msk.bf16.mxu1 %vm7108_vm4, %v9005_v5  ;;  %v6741_v54 = vpop.eup %6740  ;;  %v1564_v46 = vpack.c.bf16 %v1541_v13, %v1540_v32 }
 0x3a9   : > { %6086 = vmatmul.mubr.msk.bf16.vlgmr.msra.gmra.mxu0 %vm1203_vm3, %v572_v59  ;;  %6091 = vmatprep.subr.bf16.mxu1 %v9005_v5  ;;  %v1824_v37 = vsel %vm1203_vm3, %v1567_v44, 0  ;;  %v1545_v40 = vmul.f32 %v6741_v54, %v7611_v49  ;;  %v6743_v1 = vpop.eup %6742  ;;  %v574_v34 = vpack.c.bf16 %v564_v28, %v564_v28 }
 0x3aa   : > { %6101 = vmatprep.mubr.msk.bf16.mxu0 %vm7108_vm4, %v9005_v5  ;;  %6098 = vmatpush3.bf16.xpose.msra.mxu0 %v1824_v37  ;;  %v6745_v19 = vpop.eup %6744  ;;  %v1772_v4 = vsel %vm1203_vm3, %v1564_v46, 0  ;;  %v1551_v51 = vmul.f32 %v6743_v1, %v7589_v27 }
 0x3ab   : > { %6099 = vmatprep.subr.bf16.mxu0 %v9005_v5  ;;  %v1566_v39 = vpack.c.bf16 %v1545_v40, %v1544_v31  ;;  %v1550_v49 = vmul.f32 %v6745_v19, %v7573_v26  ;;  %v6747_v10 = vpop.eup %6746 }
 0x3ac   : > { %v6749_v38 = vpop.eup %6748  ;;  %v1549_v55 = vmul.f32 %v6747_v10, %v7591_v63 }
 0x3ad   : > { %v1821_v18 = vsel %vm1203_vm3, %v1566_v39, 0  ;;  %v1569_v29 = vpack.c.bf16 %v1551_v51, %v1550_v49  ;;  %v1548_v26 = vmul.f32 %v6749_v38, %v7583_v15  ;;  %v6751_v22 = vpop.eup %6750 }
 0x3ae   : > { %v1555_v53 = vmul.f32 %v6751_v22, %v7605_v17 }
 0x3af   : > { %v1873_v27 = vsel %vm1203_vm3, %v1569_v29, 0  ;;  %v1568_v21 = vpack.c.bf16 %v1549_v55, %v1548_v26 }
 0x3b0   : > { %6092 = vmatpush3.bf16.xpose.msra.mxu1 %v1772_v4 }
 0x3b1   : > { %6105 = vmatprep.subr.bf16.mxu1 %v9005_v5  ;;  %v1870_v45 = vsel %vm1203_vm3, %v1568_v21, 0 }
 0x3b2   : > { %6100 = vmatpush3.bf16.xpose.msra.mxu0 %v1821_v18 }
 0x3b3   : > { %6113 = vmatprep.subr.bf16.mxu0 %v9005_v5 }
 0x3b7   : > { %6094 = vmatmul.mubr.msk.bf16.vlgmr.msra.gmra.mxu1 %vm1203_vm3, %v573_v11 }
 0x3b8   : > { %6106 = vmatpush3.bf16.xpose.msra.mxu1 %v1873_v27  ;;  %6109 = vmatprep.mubr.msk.bf16.mxu1 %vm7108_vm4, %v9005_v5 }
 0x3b9   : > { %6107 = vmatprep.subr.bf16.mxu1 %v9005_v5  ;;  %6102 = vmatmul.mubr.msk.bf16.vlgmr.msra.gmra.mxu0 %vm1203_vm3, %v574_v34 }
 0x3ba   : > { %6117 = vmatprep.mubr.msk.bf16.mxu0 %vm7108_vm4, %v9005_v5 }
 0x3c0   : > { %6108 = vmatpush3.bf16.xpose.msra.mxu1 %v1870_v45  ;;  %v6617_v45 = vld [vmem:[%s8999_s1 + $0x38] sm:$0xff]  }
 0x3cf   : > { %v1488_v63 = vpop.xlane.xlu0 %1487 }
 0x3d0   : > { %6752 = vrcp.f32 %v1488_v63  ;;  %v2090_v63 = vlaneseq }
 0x3d1   : > { %6754 = vrcp.f32 %v1485_v30 }
 0x3d3   : > { %v1482_v7 = vpop.xlane.xlu0 %1481 }
 0x3d4   : > { %6756 = vrcp.f32 %v1482_v7  ;;  %v2091_v7 = vshrl.u32 %v2090_v63, 7 }
 0x3d6   : > { %v2095_v22 = vadd.s32 32, %v2091_v7 }
 0x3db   : > { %v418_v50 = vpop.permute.xlu0 %417 }
 0x3dc   : > { %v514_v15 = vadd.f32 %v7344_v58, %v418_v50  ;;  %v2097_v50 = vand.u32 127, %v2090_v63  ;;  %v6625_v63 = vld [vmem:[%s8999_s1 + $0x88] sm:$0xff]  }
 0x3dd   : > { %v6753_v42 = vpop.eup %6752 }
 0x3de   : > { %v575_v23 = vpack.c.bf16 %v514_v15, %v514_v15  ;;  %v1554_v20 = vmul.f32 %v6753_v42, %v7651_v16  ;;  %v6755_v57 = vpop.eup %6754  ;;  %v567_v16 = vrot.slane %v514_v15, 4  ;;  %v2102_v15 = vadd.s32 1, %v2095_v22 }
 0x3df   : > { %v1553_v58 = vmul.f32 %v6755_v57, %v7613_v8  ;;  %v2116_v42 = vadd.s32 1, %v2097_v50  ;;  %v2093_v57 = vadd.s32 16, %v2091_v7 }
 0x3e0   : > { %6110 = vmatmul.mubr.msk.bf16.vlgmr.msra.gmra.mxu1 %vm1203_vm3, %v575_v23  ;;  %v1571_v25 = vpack.c.bf16 %v1555_v53, %v1554_v20  ;;  %v576_v17 = vpack.c.bf16 %v567_v16, %v567_v16  ;;  %vm2107_vm6 = vcmp.eq.s32.totalorder %v2102_v15, %v2097_v50  ;;  %v7110_v16 = vmov 1.0|1.0   ;;  %v6629_v15 = vld [vmem:[%s8999_s1 + $0x98] sm:$0xff]  }
 0x3e1   : > { %v6757_v41 = vpop.eup %6756  ;;  %v2112_v23 = vsel %vm2107_vm6, 1.0, %v9005_v5  ;;  %vm2121_vm7 = vcmp.eq.s32.totalorder %v2095_v22, %v2116_v42  ;;  %vm2119_vm11 = vcmp.eq.s32.totalorder %v2093_v57, %v2116_v42  ;;  %vm2117_vm2 = vcmp.eq.s32.totalorder %v2091_v7, %v2116_v42  ;;  %v6628_v22 = vld [vmem:[%s8999_s1 + $0x90] sm:$0xff]  }
 0x3e2   : > { %v1922_v61 = vsel %vm1203_vm3, %v1571_v25, 0  ;;  %v1552_v0 = vmul.f32 %v6757_v41, %v7658_v14  ;;  %v6616_v14 = vld [vmem:[%s8999_s1 + $0x30] sm:$0xff]   ;;  %v2115_v20 = vpack.c.bf16 %v2112_v23, %v2112_v23  ;;  %v2126_v53 = vsel %vm2121_vm7, 1.0, %v9005_v5  ;;  %v7859_v23 = vld [vmem:[%s9001_s3 + $0x8] sm:$0xff] }
 0x3e3   : > { %6114 = vmatpush3.bf16.xpose.msra.mxu0 %v1922_v61  ;;  %6125 = vmatprep.mubr.msk.bf16.mxu1 %vm324_vm0, %v6616_v14  ;;  %v2094_v25 = vadd.s32 24, %v2091_v7  ;;  %v2129_v41 = vpack.c.bf16 %v2126_v53, %v2126_v53  ;;  %9030 = vst [vmem:[#allocation6_spill] sm:$0xff] %v7859_v23  ;;  %v7869_v53 = vld [vmem:[%s9001_s3 + $0x18] sm:$0xff] }
 0x3e4   : > { %6115 = vmatprep.subr.bf16.mxu0 %v9005_v5  ;;  %v1570_v43 = vpack.c.bf16 %v1553_v58, %v1552_v0  ;;  %v2138_v61 = vsel %vm1976_vm5, %v2115_v20, 0  ;;  %v2100_v0 = vadd.s32 1, %v2093_v57  ;;  %9032 = vst [vmem:[#allocation8_spill] sm:$0xff] %v7869_v53  ;;  %v7874_v57 = vld [vmem:[%s9001_s3 + $0x20] sm:$0xff] }
 0x3e5   : > { %v2101_v58 = vadd.s32 1, %v2094_v25  ;;  %vm2120_vm12 = vcmp.eq.s32.totalorder %v2094_v25, %v2116_v42  ;;  %9033 = vst [vmem:[#allocation9_spill] sm:$0xff] %v7874_v57  ;;  %v7879_v25 = vld [vmem:[%s9001_s3 + $0x28] sm:$0xff] }
 0x3e6   : > { %v1919_v9 = vsel %vm1203_vm3, %v1570_v43, 0  ;;  %v2192_v43 = vsel %vm1976_vm5, %v2129_v41, 0  ;;  %vm2105_vm8 = vcmp.eq.s32.totalorder %v2100_v0, %v2097_v50  ;;  %vm5575_vm13 = vmpackc.low %vm2120_vm12, %vm2119_vm11  ;;  %9034 = vst [vmem:[#allocation10_spill] sm:$0xff] %v7879_v25 }
 0x3e7   : > { %vm2106_vm9 = vcmp.eq.s32.totalorder %v2101_v58, %v2097_v50 }
 0x3e8   : > { %vm5569_vm10 = vmpackc.low %vm2106_vm9, %vm2105_vm8  ;;  %vm2130_vm8 = vcmask 326656  }
 0x3eb   : > { %6116 = vmatpush3.bf16.xpose.msra.mxu0 %v1919_v9  ;;  %v2092_v9 = vadd.s32 8, %v2091_v7 }
 0x3ec   : > { %6472 = vmatprep.subr.msk.bf16.mxu0 %vm1976_vm5, %v2115_v20  ;;  %v7864_v20 = vld [vmem:[%s9001_s3 + $0x10] sm:$0xff] }
 0x3ed   : > { %vm2118_vm6 = vcmp.eq.s32.totalorder %v2092_v9, %v2116_v42  ;;  %v7854_v42 = vld [vmem:[%s9001_s3] sm:$0xff]  ;;  %9031 = vst [vmem:[#allocation7_spill] sm:$0xff] %v7864_v20 }
 0x3ee   : > { %vm5577_vm7 = vmpackc.low %vm2118_vm6, %vm2117_vm2  ;;  %9029 = vst [vmem:[#allocation5_spill] sm:$0xff] %v7854_v42 }
 0x3f2   : > { %6118 = vmatmul.mubr.msk.bf16.vlgmr.msra.gmra.mxu0 %vm1203_vm3, %v576_v17  ;;  %v2098_v17 = vadd.s32 1, %v2091_v7  ;;  %v6626_v7 = vld [vmem:[%s8999_s1 + $0x50] sm:$0xff]  }
 0x3f3   : > { %6130 = vmatpush3.bf16.msra.mxu0 %v2138_v61  ;;  %v7889_v61 = vld [vmem:[%s9001_s3 + $0x38] sm:$0xff] }
 0x3f4   : > { %6131 = vmatprep.subr.msk.bf16.mxu0 %vm5569_vm10, %v7110_v16  ;;  %vm2103_vm14 = vcmp.eq.s32.totalorder %v2098_v17, %v2097_v50  ;;  %9036 = vst [vmem:[#allocation12_spill] sm:$0xff] %v7889_v61 }
 0x3f7   : > { %6132 = vmatpush3.bf16.msk.msra.mxu0 %vm5569_vm10, %v7110_v16 }
 0x421   : > { %v1615_v24 = vpop.f32.mrf.mxu1 }
 0x423   : > { %v6063_v2 = vpop.f32.mrf.mxu1 }
 0x424   : > { %v1986_v2 = vpop.permute.xlu1 %1985 }
 0x425   : > { %v1618_v3 = vpop.f32.mrf.mxu1 }
 0x427   : > { %v6064_v52 = vpop.f32.mrf.mxu1 }
 0x428   : > { %v1991_v3 = vpop.permute.xlu1 %1990 }
 0x42c   : > { %v1996_v52 = vpop.permute.xlu1 %1995 }
 0x430   : > { %v2001_v14 = vpop.permute.xlu1 %2000 }
 0x451   : > { %v1664_v36 = vpop.f32.mrf.mxu0 }
 0x452   : > { %v1965_v8 = vrot.slane %v1664_v36, 4  ;;  %v6602_v36 = vpop.permute.xlu1 %6601 }
 0x453   : > { %v6071_v6 = vpop.f32.mrf.mxu0 }
 0x454   : > { %v1977_v35 = vsel %vm1976_vm5, %v1615_v24, %v1965_v8  ;;  %v2099_v24 = vadd.s32 1, %v2092_v9 }
 0x455   : > { %v1667_v56 = vpop.f32.mrf.mxu0 }
 0x456   : > { %vm2104_vm15 = vcmp.eq.s32.totalorder %v2099_v24, %v2097_v50  ;;  %v6607_v6 = vpop.permute.xlu1 %6606  ;;  %v6627_v50 = vld [vmem:[%s8999_s1 + $0x58] sm:$0xff]   ;;  %v2579_v24 = vpop.permute.xlu0 %2578 }
 0x457   : > { %v6072_v62 = vpop.f32.mrf.mxu0  ;;  %vm5571_vm1 = vmpackc.low %vm2104_vm15, %vm2103_vm14  ;;  %v6609_v56 = vunpack.i.h.bf16 %v6607_v6 }
 0x458   : > { %6133 = vmatprep.subr.msk.bf16.mxu0 %vm5571_vm1, %v7110_v16  ;;  %v6608_v62 = vunpack.i.l.bf16 %v6607_v6 }
 0x459   : > { %6134 = vmatpush3.bf16.msk.msra.mxu0 %vm5571_vm1, %v7110_v16 }
 0x467   : > { %v1713_v33 = vpop.f32.mrf.mxu1 }
 0x469   : > { %v6079_v30 = vpop.f32.mrf.mxu1  ;;  %v1762_v59 = vpop.f32.mrf.mxu0 }
 0x46a   : > { %v1968_v47 = vrot.slane %v1762_v59, 4  ;;  %v6603_v59 = vunpack.i.l.bf16 %v6602_v36 }
 0x46b   : > { %v1716_v13 = vpop.f32.mrf.mxu1  ;;  %v6087_v60 = vpop.f32.mrf.mxu0 }
 0x46c   : > { %v1978_v44 = vsel %vm1976_vm5, %v1713_v33, %v1968_v47 }
 0x46d   : > { %v6080_v54 = vpop.f32.mrf.mxu1  ;;  %v1765_v32 = vpop.f32.mrf.mxu0  ;;  %v1981_v37 = vpack.c.bf16 %v1978_v44, %v1977_v35  ;;  %v6604_v44 = vunpack.i.h.bf16 %v6602_v36 }
 0x46f   : > { %v6088_v40 = vpop.f32.mrf.mxu0 }
 0x477   : > { %v1811_v46 = vpop.f32.mrf.mxu1 }
 0x479   : > { %v6095_v1 = vpop.f32.mrf.mxu1  ;;  %v1860_v31 = vpop.f32.mrf.mxu0 }
 0x47a   : > { %v1971_v10 = vrot.slane %v1860_v31, 4 }
 0x47b   : > { %v1814_v48 = vpop.f32.mrf.mxu1  ;;  %v6103_v19 = vpop.f32.mrf.mxu0 }
 0x47c   : > { %v1979_v27 = vsel %vm1976_vm5, %v1811_v46, %v1971_v10  ;;  %v6618_v48 = vld [vmem:[%s8999_s1 + $0x60] sm:$0xff]   ;;  %v6619_v19 = vld [vmem:[%s8999_s1 + $0x68] sm:$0xff]  }
 0x47d   : > { %v6096_v39 = vpop.f32.mrf.mxu1  ;;  %v1863_v4 = vpop.f32.mrf.mxu0 }
 0x47e   : > { %v6620_v39 = vld [vmem:[%s8999_s1 + $0x70] sm:$0xff]   ;;  %v6621_v4 = vld [vmem:[%s8999_s1 + $0x78] sm:$0xff]  }
 0x47f   : > { %v6104_v51 = vpop.f32.mrf.mxu0 }
 0x480   : > { %v6622_v51 = vld [vmem:[%s8999_s1 + $0x40] sm:$0xff]  }
 0x4a0   : > { %v1909_v12 = vpop.f32.mrf.mxu1 }
 0x4a2   : > { %v6111_v49 = vpop.f32.mrf.mxu1 }
 0x4a4   : > { %v1912_v18 = vpop.f32.mrf.mxu1 }
 0x4a6   : > { %v6112_v29 = vpop.f32.mrf.mxu1 }
 0x4b2   : > { %v1958_v28 = vpop.f32.mrf.mxu0 }
 0x4b3   : > { %v1974_v11 = vrot.slane %v1958_v28, 4 }
 0x4b4   : > { %v6119_v38 = vpop.f32.mrf.mxu0 }
 0x4b5   : > { %v1980_v55 = vsel %vm1976_vm5, %v1909_v12, %v1974_v11  ;;  %v6624_v12 = vld [vmem:[%s8999_s1 + $0x80] sm:$0xff]  }
 0x4b6   : > { %v1961_v34 = vpop.f32.mrf.mxu0  ;;  %v1982_v26 = vpack.c.bf16 %v1980_v55, %v1979_v27 }
 0x4b8   : > { %v6120_v21 = vpop.f32.mrf.mxu0  ;;  %6121 = vmatprep.subr.bf16.mxu1 %v1982_v26 }
 0x4b9   : > { %6122 = vmatpush3.bf16.msra.mxu1 %v1982_v26 }
 0x4ba   : > { %6123 = vmatprep.subr.bf16.mxu1 %v1981_v37 }
 0x4bd   : > { %6124 = vmatpush3.bf16.msra.mxu1 %v1981_v37 }
 0x4be   : > { %6473 = vmatprep.subr.msk.bf16.mxu1 %vm1976_vm5, %v2129_v41  ;;  %v7884_v41 = vld [vmem:[%s9001_s3 + $0x30] sm:$0xff] }
 0x4bf   : > { %9035 = vst [vmem:[#allocation11_spill] sm:$0xff] %v7884_v41 }
 0x4c0   : > { %6126 = vmatmul.mubr.msk.bf16.vlgmr.msra.gmra.mxu1 %vm324_vm0, %v6617_v45  ;;  %v6623_v45 = vld [vmem:[%s8999_s1 + $0x48] sm:$0xff]  }
 0x4c1   : > { %6140 = vmatpush3.bf16.msra.mxu1 %v2192_v43 }
 0x4c2   : > { %6141 = vmatprep.subr.msk.bf16.mxu1 %vm5575_vm13, %v7110_v16 }
 0x4c5   : > { %6142 = vmatpush3.bf16.msk.msra.mxu1 %vm5575_vm13, %v7110_v16 }
 0x4c6   : > { %6143 = vmatprep.subr.msk.bf16.mxu1 %vm5577_vm7, %v7110_v16 }
 0x4c9   : > { %6144 = vmatpush3.bf16.msk.msra.mxu1 %vm5577_vm7, %v7110_v16 }
 0x580   : > { %v6127_v8 = vpop.f32.mrf.mxu1 }
 0x581   : > { %v2062_v33 = vadd.f32 %v6127_v8, %v1996_v52 }
 0x582   : > { %v2053_v35 = vpop.f32.mrf.mxu1 }
 0x583   : > { %v2054_v47 = vadd.f32 %v2053_v35, %v1986_v2  ;;  %v2086_v54 = vsel %vm324_vm0, %v2062_v33, %v6608_v62 }
 0x584   : > { %v6128_v30 = vpop.f32.mrf.mxu1 }
 0x585   : > { %v2065_v13 = vadd.f32 %v6128_v30, %v2001_v14  ;;  %v2084_v46 = vsel %vm324_vm0, %v2054_v47, %v6603_v59  ;;  %v2589_v14 = vpop.permute.xlu0 %2588 }
 0x586   : > { %v2056_v60 = vpop.f32.mrf.mxu1 }
 0x587   : > { %v2087_v32 = vsel %vm324_vm0, %v2065_v13, %v6609_v56  ;;  %v2057_v37 = vadd.f32 %v2056_v60, %v1991_v3  ;;  %v2584_v3 = vpop.permute.xlu1 %2583 }
 0x588   : > { %v2089_v40 = vpack.c.bf16 %v2087_v32, %v2086_v54 }
 0x589   : > { %v2085_v1 = vsel %vm324_vm0, %v2057_v37, %v6604_v44  ;;  %v2599_v13 = vpop.permute.xlu0 %2598 }
 0x58a   : > { %v2088_v31 = vpack.c.bf16 %v2085_v1, %v2084_v46  ;;  %6149 = vmatprep.subr.bf16.mxu0 %v2089_v40 }
 0x58b   : > { %v2594_v62 = vpop.permute.xlu1 %2593 }
 0x58c   : > { %6135 = vmatprep.mubr.msk.bf16.mxu0 %vm2130_vm8, %v2088_v31  ;;  %6145 = vmatprep.mubr.msk.bf16.mxu1 %vm2130_vm8, %v2088_v31 }
 0x58d   : > { %6136 = vmatmul.mubr.msk.bf16.vlgmr.msra.gmra.mxu0 %vm2130_vm8, %v2089_v40  ;;  %6146 = vmatmul.mubr.msk.bf16.vlgmr.msra.gmra.mxu1 %vm2130_vm8, %v2089_v40 }
 0x58e   : > { %6150 = vmatpush3.bf16.msra.mxu0 %v2089_v40  ;;  %6153 = vmatprep.mubr.msk.bf16.mxu0 %vm324_vm0, %v6618_v48 }
 0x58f   : > { %6151 = vmatprep.subr.bf16.mxu0 %v2088_v31  ;;  %6165 = vmatprep.mubr.msk.bf16.mxu1 %vm324_vm0, %v6622_v51 }
 0x592   : > { %6152 = vmatpush3.bf16.msra.mxu0 %v2088_v31 }
 0x595   : > { %6154 = vmatmul.mubr.msk.bf16.vlgmr.msra.gmra.mxu0 %vm324_vm0, %v6619_v19  ;;  %v2604_v19 = vpop.permute.xlu1 %2603 }
 0x596   : > { %6157 = vmatprep.mubr.msk.bf16.mxu0 %vm324_vm0, %v6620_v39 }
 0x59d   : > { %6158 = vmatmul.mubr.msk.bf16.gmra.mxu0 %vm324_vm0, %v6621_v4 }
 0x59e   : > { %6177 = vmatprep.mubr.msk.bf16.mxu0 %vm324_vm0, %v6624_v12 }
 0x64d   : > { %v6137_v49 = vpop.f32.mrf.mxu0  ;;  %v6147_v18 = vpop.f32.mrf.mxu1 }
 0x64f   : > { %v2174_v29 = vpop.f32.mrf.mxu0  ;;  %v2228_v10 = vpop.f32.mrf.mxu1 }
 0x651   : > { %v6138_v28 = vpop.f32.mrf.mxu0  ;;  %v6148_v11 = vpop.f32.mrf.mxu1 }
 0x652   : > { %v2190_v38 = vpack.c.bf16 %v6138_v28, %v6137_v49  ;;  %v2244_v27 = vpack.c.bf16 %v6148_v11, %v6147_v18  ;;  %v2609_v18 = vpop.permute.xlu0 %2608 }
 0x653   : > { %v2177_v55 = vpop.f32.mrf.mxu0  ;;  %v2231_v34 = vpop.f32.mrf.mxu1 }
 0x654   : > { %v2189_v26 = vpack.c.bf16 %v2177_v55, %v2174_v29  ;;  %v2243_v21 = vpack.c.bf16 %v2231_v34, %v2228_v10  ;;  %6161 = vmatprep.subr.bf16.mxu1 %v2190_v38  ;;  %6173 = vmatprep.subr.bf16.mxu0 %v2244_v27 }
 0x655   : > { %6162 = vmatpush3.bf16.msra.mxu1 %v2190_v38  ;;  %6174 = vmatpush3.bf16.msra.mxu0 %v2244_v27  ;;  %v6155_v0 = vpop.f32.mrf.mxu0 }
 0x656   : > { %6163 = vmatprep.subr.bf16.mxu1 %v2189_v26  ;;  %6175 = vmatprep.subr.bf16.mxu0 %v2243_v21 }
 0x657   : > { %v2343_v58 = vpop.f32.mrf.mxu0 }
 0x659   : > { %6164 = vmatpush3.bf16.msra.mxu1 %v2189_v26  ;;  %6176 = vmatpush3.bf16.msra.mxu0 %v2243_v21  ;;  %v6156_v43 = vpop.f32.mrf.mxu0 }
 0x65b   : > { %v2346_v9 = vpop.f32.mrf.mxu0 }
 0x65c   : > { %6166 = vmatmul.mubr.msk.bf16.vlgmr.msra.gmra.mxu1 %vm324_vm0, %v6623_v45  ;;  %6178 = vmatmul.mubr.msk.bf16.vlgmr.msra.gmra.mxu0 %vm324_vm0, %v6625_v63 }
 0x65d   : > { %6169 = vmatprep.mubr.msk.bf16.mxu1 %vm324_vm0, %v6626_v7  ;;  %6181 = vmatprep.mubr.msk.bf16.mxu0 %vm324_vm0, %v6628_v22  ;;  %v6159_v16 = vpop.f32.mrf.mxu0  ;;  %v2614_v7 = vpop.permute.xlu1 %2613 }
 0x65f   : > { %v2359_v17 = vpop.f32.mrf.mxu0 }
 0x661   : > { %v6160_v2 = vpop.f32.mrf.mxu0 }
 0x663   : > { %v2362_v52 = vpop.f32.mrf.mxu0 }
 0x664   : > { %6170 = vmatmul.mubr.msk.bf16.gmra.mxu1 %vm324_vm0, %v6627_v50  ;;  %6182 = vmatmul.mubr.msk.bf16.gmra.mxu0 %vm324_vm0, %v6629_v15 }
 0x71c   : > { %v6167_v36 = vpop.f32.mrf.mxu1  ;;  %v6179_v8 = vpop.f32.mrf.mxu0 }
 0x71d   : > { %v2449_v6 = vadd.f32 %v6167_v36, %v6155_v0 }
 0x71e   : > { %v2440_v35 = vpop.f32.mrf.mxu1  ;;  %v2537_v56 = vpop.f32.mrf.mxu0 }
 0x71f   : > { %v2441_v33 = vadd.f32 %v2440_v35, %v2343_v58  ;;  %v2570_v30 = vadd.f32 %v6179_v8, %v2449_v6 }
 0x720   : > { %v6168_v59 = vpop.f32.mrf.mxu1  ;;  %v6180_v47 = vpop.f32.mrf.mxu0 }
 0x721   : > { %v2618_v60 = vadd.f32 %v2589_v14, %v2570_v30   ;;  %v2452_v44 = vadd.f32 %v6168_v59, %v6156_v43  ;;  %v2568_v54 = vadd.f32 %v2537_v56, %v2441_v33 }
 0x722   : > { %v2443_v32 = vpop.f32.mrf.mxu1  ;;  %v2540_v37 = vpop.f32.mrf.mxu0 }
 0x723   : > { %v2616_v40 = vadd.f32 %v2579_v24, %v2568_v54   ;;  %v2444_v46 = vadd.f32 %v2443_v32, %v2346_v9  ;;  %v2571_v1 = vadd.f32 %v6180_v47, %v2452_v44 }
 0x724   : > { %v6171_v31 = vpop.f32.mrf.mxu1  ;;  %v6183_v48 = vpop.f32.mrf.mxu0 }
 0x725   : > { %v2619_v39 = vadd.f32 %v2594_v62, %v2571_v1   ;;  %v2465_v4 = vadd.f32 %v6171_v31, %v6159_v16  ;;  %v2569_v51 = vadd.f32 %v2540_v37, %v2444_v46 }
 0x726   : > { %v2456_v12 = vpop.f32.mrf.mxu1  ;;  %v2553_v49 = vpop.f32.mrf.mxu0 }
 0x727   : > { %v2617_v29 = vadd.f32 %v2584_v3, %v2569_v51   ;;  %v2457_v10 = vadd.f32 %v2456_v12, %v2359_v17  ;;  %v2574_v28 = vadd.f32 %v6183_v48, %v2465_v4 }
 0x728   : > { %v6172_v11 = vpop.f32.mrf.mxu1  ;;  %v6184_v38 = vpop.f32.mrf.mxu0 }
 0x729   : > { %v2622_v27 = vadd.f32 %v2609_v18, %v2574_v28   ;;  %v2468_v55 = vadd.f32 %v6172_v11, %v6160_v2  ;;  %v2572_v34 = vadd.f32 %v2553_v49, %v2457_v10 }
 0x72a   : > { %v2459_v26 = vpop.f32.mrf.mxu1  ;;  %v2556_v22 = vpop.f32.mrf.mxu0 }
 0x72b   : > { %v2620_v21 = vadd.f32 %v2599_v13, %v2572_v34   ;;  %v2460_v45 = vadd.f32 %v2459_v26, %v2362_v52  ;;  %v2575_v63 = vadd.f32 %v6184_v38, %v2468_v55 }
 0x72d   : > { %v2623_v50 = vadd.f32 %v2614_v7, %v2575_v63   ;;  %v2573_v15 = vadd.f32 %v2556_v22, %v2460_v45 }
 0x72f   : > { %v2621_v0 = vadd.f32 %v2604_v19, %v2573_v15  }
 0x730 LB: >> { %9037 = vst [vmem:[#allocation13_spill] sm:$0xff] %v7072_v50  ;;  %9038 = vst [vmem:[#allocation14_spill] sm:$0xff] %v7076_v27  ;;  %v2690_v58 = vsel %vm2130_vm8, %v7076_v27, 0.0  ;;  %v2693_v43 = vsel %vm2130_vm8, %v7072_v50, 0.0  ;;  %v2711_v9 = vmul.f32 %v7076_v27, %v7076_v27  ;;  %v2712_v16 = vmul.f32 %v7072_v50, %v7072_v50  ;;  %v9045_v42 = vld [vmem:[#allocation5_spill] sm:$0xff]  ;;  %v9046_v23 = vld [vmem:[#allocation6_spill] sm:$0xff]  ;;  %s7104_s17 = sphi %s7911_s17, %s2637_s17   ;;  %v7100_v40 = vphi %v2616_v40, %v9097_v40   ;;  %v7096_v29 = vphi %v2617_v29, %v9096_v29   ;;  %v7092_v60 = vphi %v2618_v60, %v9095_v60   ;;  %v7088_v39 = vphi %v2619_v39, %v9094_v39   ;;  %v7084_v21 = vphi %v2620_v21, %v5327_v21   ;;  %v7080_v0 = vphi %v2621_v0, %v5328_v0   ;;  %v7076_v27 = vphi %v2622_v27, %v5329_v27   ;;  %v7072_v50 = vphi %v2623_v50, %v5330_v50  }
 0x731   : >> { %9039 = vst [vmem:[#allocation15_spill] sm:$0xff] %v7080_v0  ;;  %9040 = vst [vmem:[#allocation16_spill] sm:$0xff] %v7084_v21  ;;  %2691 = vadd.xlane.f32.xlu1 %v2690_v58  ;;  %2694 = vadd.xlane.f32.xlu0 %v2693_v43  ;;  %v2710_v2 = vmul.f32 %v7080_v0, %v7080_v0  ;;  %v2687_v52 = vsel %vm2130_vm8, %v7080_v0, 0.0  ;;  %v2709_v14 = vmul.f32 %v7084_v21, %v7084_v21  ;;  %vm2754_vm0 = vcmask 523264   ;;  %v9047_v20 = vld [vmem:[#allocation7_spill] sm:$0xff]  ;;  %v9048_v53 = vld [vmem:[#allocation8_spill] sm:$0xff] }
 0x732   : >> { %9041 = vst [vmem:[#allocation17_spill] sm:$0xff] %v7088_v39  ;;  %9042 = vst [vmem:[#allocation18_spill] sm:$0xff] %v7092_v60  ;;  %v2731_v17 = vsel %vm2130_vm8, %v2711_v9, 0.0  ;;  %v2734_v24 = vsel %vm2130_vm8, %v2712_v16, 0.0  ;;  %v2684_v8 = vsel %vm2130_vm8, %v7084_v21, 0.0  ;;  %v2708_v6 = vmul.f32 %v7088_v39, %v7088_v39  ;;  %6201 = vmatprep.mubr.msk.f32.mxu0 %vm2754_vm0, %v9045_v42  ;;  %v9049_v57 = vld [vmem:[#allocation9_spill] sm:$0xff] }
 0x733   : >> { %9043 = vst [vmem:[#allocation19_spill] sm:$0xff] %v7096_v29  ;;  %9044 = vst [vmem:[#allocation20_spill] sm:$0xff] %v7100_v40  ;;  %v2728_v3 = vsel %vm2130_vm8, %v2710_v2, 0.0  ;;  %v2725_v36 = vsel %vm2130_vm8, %v2709_v14, 0.0  ;;  %v2681_v56 = vsel %vm2130_vm8, %v7088_v39, 0.0  ;;  %v2707_v62 = vmul.f32 %v7092_v60, %v7092_v60  ;;  %v9050_v25 = vld [vmem:[#allocation10_spill] sm:$0xff] }
 0x734   : >> { %v2722_v35 = vsel %vm2130_vm8, %v2708_v6, 0.0  ;;  %v2678_v30 = vsel %vm2130_vm8, %v7092_v60, 0.0  ;;  %v2706_v59 = vmul.f32 %v7096_v29, %v7096_v29  ;;  %v2675_v13 = vsel %vm2130_vm8, %v7096_v29, 0.0  ;;  %v9051_v41 = vld [vmem:[#allocation11_spill] sm:$0xff]  ;;  %v9052_v61 = vld [vmem:[#allocation12_spill] sm:$0xff]  ;;  %s7112_s18 = smov 1  }
 0x735   : >> { %2732 = vadd.xlane.f32.xlu1 %v2731_v17  ;;  %2735 = vadd.xlane.f32.xlu0 %v2734_v24  ;;  %v2719_v33 = vsel %vm2130_vm8, %v2707_v62, 0.0  ;;  %v2705_v44 = vmul.f32 %v7100_v40, %v7100_v40  ;;  %v2672_v32 = vsel %vm2130_vm8, %v7100_v40, 0.0  ;;  %vm2745_vm9 = vcmask 7168   ;;  %s2646_s19 = smul.u32 192, %s7104_s17  ;;  %s5671_s20 = sshll.u32 %s7104_s17, 6 }
 0x736   : >> { %v2716_v47 = vsel %vm2130_vm8, %v2706_v59, 0.0  ;;  %vm7116_vm10 = vmmov 0   ;;  %s5690_s14 = smul.u32 160, %s7104_s17  ;;  %s5177_s26 = sadd.s32 768, %s5671_s20 }
 0x737   : >> { %v2713_v54 = vsel %vm2130_vm8, %v2705_v44, 0.0  ;;  %s8038_s28 = scalar_lea.vmem %s9002_s4, %s2646_s19  ;;  %s3132_s29 = sshra.s32 %s2646_s19, 3 }
 0x738   : >> { %s5613_s10 = sshll.u32 %s3132_s29, 2  ;;  %s8273_s19 = scalar_lea.vmem %s9003_s5, %s5690_s14 }
 0x739   : >> { %2729 = vadd.xlane.f32.xlu1 %v2728_v3  ;;  %2688 = vadd.xlane.f32.xlu0 %v2687_v52  ;;  %s8105_s13 = scalar_lea.vmem %s9000_s2, %s5613_s10  ;;  %s5178_s29 = sshra.s32 %s5177_s26, 3 }
 0x73a   : >> { %s5672_s10 = sshll.u32 %s5178_s29, 2  ;;  %s2637_s17 = sadd.s32 1, %s7104_s17  }
 0x73b   : >> { %p2634_p11 = scmp.ge.s32.totalorder %s2637_s17, 4  }
 0x73c   : > { %s5686_s17 = sshll.u32 (%p2634_p11), %s7176_s25, 4  ;;  %s7119_s25 = smov (%p2634_p11), [#allocation2]  }
 0x73d   : >> { %2726 = vadd.xlane.f32.xlu1 %v2725_v36  ;;  %2685 = vadd.xlane.f32.xlu0 %v2684_v8  ;;  %s6976_s26 = sshll.u32 (%p2634_p11), %s7119_s25, 4  ;;  %s6977_s26 = int_to_ptr.vmem [resolvable:$false] %s6976_s26 }
 0x73e   : > { %s6978_s29 = scalar_lea.vmem (%p2634_p11), %s6977_s26, 32 }
 0x741   : >> { %2723 = vadd.xlane.f32.xlu1 %v2722_v35  ;;  %2682 = vadd.xlane.f32.xlu0 %v2681_v56 }
 0x745   : >> { %2720 = vadd.xlane.f32.xlu1 %v2719_v33  ;;  %2679 = vadd.xlane.f32.xlu0 %v2678_v30  ;;  %v7111_v30 = vmov 0  }
 0x746   : >> { %6758 = vset.pattern.permute.xlu0 %v7111_v30  ;;  %6759 = vset.pattern.permute.xlu1 %v7111_v30 }
 0x749   : >> { %2717 = vadd.xlane.f32.xlu1 %v2716_v47  ;;  %2676 = vadd.xlane.f32.xlu0 %v2675_v13 }
 0x74d   : >> { %2714 = vadd.xlane.f32.xlu1 %v2713_v54  ;;  %2673 = vadd.xlane.f32.xlu0 %v2672_v32 }
 0x7ba   : >> { %v2692_v37 = vpop.xlane.xlu1 %2691  ;;  %v2695_v46 = vpop.xlane.xlu0 %2694 }
 0x7bb   : >> { %v2704_v48 = vmul.f32 0.025, %v2695_v46  ;;  %v2703_v51 = vmul.f32 0.025, %v2692_v37 }
 0x7be   : >> { %v2733_v1 = vpop.xlane.xlu1 %2732  ;;  %v2736_v31 = vpop.xlane.xlu0 %2735 }
 0x7bf   : >> { %v2743_v19 = vmul.f32 0.025, %v2733_v1  ;;  %v2744_v4 = vmul.f32 0.025, %v2736_v31 }
 0x7c1   : >> { %v2753_v12 = vsel %vm2745_vm9, %v2704_v48, %v2744_v4  ;;  %v2752_v11 = vsel %vm2745_vm9, %v2703_v51, %v2743_v19 }
 0x7c2   : >> { %v2730_v49 = vpop.xlane.xlu1 %2729  ;;  %6185 = vmatprep.subr.mxu0 %v2753_v12  ;;  %v2689_v18 = vpop.xlane.xlu0 %2688 }
 0x7c3   : >> { %v2742_v10 = vmul.f32 0.025, %v2730_v49  ;;  %v2702_v28 = vmul.f32 0.025, %v2689_v18  ;;  %6186 = vmatpush3.msra.mxu0 %v2753_v12  ;;  %v8044_v18 = vld [vmem:[%s8038_s28 + $0x30] sm:$0xff] }
 0x7c4   : >> { %6187 = vmatprep.subr.mxu0 %v2752_v11 }
 0x7c5   : >> { %6188 = vmatpush3.msra.mxu0 %v2752_v11  ;;  %v2751_v38 = vsel %vm2745_vm9, %v2702_v28, %v2742_v10  ;;  %v8049_v10 = vld [vmem:[%s8038_s28 + $0x28] sm:$0xff]  ;;  %v8055_v28 = vld [vmem:[%s8038_s28 + $0x38] sm:$0xff] }
 0x7c6   : >> { %v2727_v55 = vpop.xlane.xlu1 %2726  ;;  %6189 = vmatprep.subr.mxu0 %v2751_v38  ;;  %v2686_v34 = vpop.xlane.xlu0 %2685  ;;  %v8059_v11 = vld [vmem:[%s8038_s28 + $0x18] sm:$0xff] }
 0x7c7   : >> { %v2741_v26 = vmul.f32 0.025, %v2727_v55  ;;  %v2701_v45 = vmul.f32 0.025, %v2686_v34  ;;  %6190 = vmatpush3.msra.mxu0 %v2751_v38  ;;  %v8064_v38 = vld [vmem:[%s8038_s28] sm:$0xff]  ;;  %v7113_v55 = vmov 1  }
 0x7c8   : >> { %v8074_v34 = vld [vmem:[%s8038_s28 + $0x20] sm:$0xff] }
 0x7c9   : >> { %v2750_v63 = vsel %vm2745_vm9, %v2701_v45, %v2741_v26  ;;  %v8083_v26 = vld [vmem:[%s8038_s28 + $0x10] sm:$0xff] }
 0x7ca   : >> { %v2724_v7 = vpop.xlane.xlu1 %2723  ;;  %6191 = vmatprep.subr.mxu0 %v2750_v63  ;;  %v2683_v22 = vpop.xlane.xlu0 %2682 }
 0x7cb   : >> { %v2740_v15 = vmul.f32 0.025, %v2724_v7  ;;  %v2700_v58 = vmul.f32 0.025, %v2683_v22  ;;  %6192 = vmatpush3.msra.mxu0 %v2750_v63 }
 0x7cd   : >> { %v2749_v43 = vsel %vm2745_vm9, %v2700_v58, %v2740_v15 }
 0x7ce   : >> { %v2721_v9 = vpop.xlane.xlu1 %2720  ;;  %6193 = vmatprep.subr.mxu0 %v2749_v43  ;;  %v2680_v16 = vpop.xlane.xlu0 %2679 }
 0x7cf   : >> { %v2739_v17 = vmul.f32 0.025, %v2721_v9  ;;  %v2699_v24 = vmul.f32 0.025, %v2680_v16  ;;  %6194 = vmatpush3.msra.mxu0 %v2749_v43 }
 0x7d1   : >> { %v2748_v2 = vsel %vm2745_vm9, %v2699_v24, %v2739_v17 }
 0x7d2   : >> { %v2718_v3 = vpop.xlane.xlu1 %2717  ;;  %6195 = vmatprep.subr.mxu0 %v2748_v2  ;;  %v2677_v52 = vpop.xlane.xlu0 %2676 }
 0x7d3   : >> { %v2738_v14 = vmul.f32 0.025, %v2718_v3  ;;  %v2698_v36 = vmul.f32 0.025, %v2677_v52  ;;  %6196 = vmatpush3.msra.mxu0 %v2748_v2 }
 0x7d5   : >> { %v2747_v8 = vsel %vm2745_vm9, %v2698_v36, %v2738_v14 }
 0x7d6   : >> { %v2715_v6 = vpop.xlane.xlu1 %2714  ;;  %6197 = vmatprep.subr.mxu0 %v2747_v8  ;;  %v2674_v35 = vpop.xlane.xlu0 %2673 }
 0x7d7   : >> { %v2737_v56 = vmul.f32 0.025, %v2715_v6  ;;  %v2697_v62 = vmul.f32 0.025, %v2674_v35  ;;  %6198 = vmatpush3.msra.mxu0 %v2747_v8 }
 0x7d9   : >> { %v2746_v33 = vsel %vm2745_vm9, %v2697_v62, %v2737_v56 }
 0x7da   : >> { %6199 = vmatprep.subr.mxu0 %v2746_v33 }
 0x7db   : >> { %6200 = vmatpush3.msra.mxu0 %v2746_v33 }
 0x7dc   : >> { %6202 = vmatmul.mubr.msk.f32.vlgmr.msra.gmra.mxu0 %vm2754_vm0, %v9046_v23 }
 0x7dd   : >> { %6204 = vmatprep.mubr.msk.f32.mxu0 %vm2754_vm0, %v9047_v20 }
 0x7e0   : >> { %6205 = vmatmul.mubr.msk.f32.gmra.mxu0 %vm2754_vm0, %v9048_v53  ;;  %v5778_v53 = vld [vmem:[%s8273_s19 + $0x40] sm:$0xff]  }
 0x7e1   : >> { %6207 = vmatprep.mubr.msk.f32.mxu0 %vm2754_vm0, %v9049_v57 }
 0x7e4   : >> { %6208 = vmatmul.mubr.msk.f32.gmra.mxu0 %vm2754_vm0, %v9050_v25 }
 0x7e5   : >> { %6210 = vmatprep.mubr.msk.f32.mxu0 %vm2754_vm0, %v9051_v41  ;;  %v5785_v41 = vld [vmem:[%s8273_s19 + $0x78] sm:$0xff]  }
 0x7e6   : >> { %v5753_v42 = vunpack.c.l.bf16 %v5785_v41 }
 0x7e8   : >> { %6211 = vmatmul.mubr.msk.f32.gmra.mxu0 %vm2754_vm0, %v9052_v61 }
 0x89c   : >> { %v8006_v59 = vpop.f32.mrf.mxu0 }
 0x89d   : >> { %v2885_v49 = vmul.f32 %v8006_v59, %v8006_v59 }
 0x89e   : >> { %v8008_v47 = vpop.f32.mrf.mxu0 }
 0x89f   : >> { %v2884_v51 = vmul.f32 %v8008_v47, %v8008_v47 }
 0x8a0   : >> { %v8010_v13 = vpop.f32.mrf.mxu0 }
 0x8a1   : >> { %v2887_v12 = vmul.f32 %v8010_v13, %v8010_v13 }
 0x8a2   : >> { %v8012_v44 = vpop.f32.mrf.mxu0 }
 0x8a3   : >> { %v2886_v19 = vmul.f32 %v8012_v44, %v8012_v44 }
 0x8a4   : >> { %v8014_v54 = vpop.f32.mrf.mxu0 }
 0x8a5   : >> { %v2889_v4 = vmul.f32 %v8014_v54, %v8014_v54 }
 0x8a6   : >> { %v8016_v32 = vpop.f32.mrf.mxu0 }
 0x8a7   : >> { %v2888_v48 = vmul.f32 %v8016_v32, %v8016_v32 }
 0x8a8   : >> { %v6212_v37 = vpop.f32.mrf.mxu0 }
 0x8a9   : >> { %v2891_v46 = vmul.f32 %v6212_v37, %v6212_v37 }
 0x8aa   : >> { %v8018_v1 = vpop.f32.mrf.mxu0 }
 0x8ab   : >> { %v2890_v31 = vmul.f32 %v8018_v1, %v8018_v1  ;;  %2914 = vrot.lane.b32.xlu1 %v2891_v46, %s7112_s18 }
 0x8ad   : >> { %2912 = vrot.lane.b32.xlu0 %v2890_v31, %s7112_s18  ;;  %v2649_v31 = vld [vmem:[%s8038_s28 + $0x8] sm:$0xff] }
 0x8af   : >> { %2908 = vrot.lane.b32.xlu1 %v2888_v48, %s7112_s18 }
 0x8b1   : >> { %2904 = vrot.lane.b32.xlu0 %v2886_v19, %s7112_s18  ;;  %v6772_v19 = vld [vmem:[%s8105_s13] sm:$0xff]  }
 0x8b2   : >> { %6221 = vmatprep.mubr.msk.bf16.mxu1 %vm2754_vm0, %v6772_v19 }
 0x8b3   : >> { %2910 = vrot.lane.b32.xlu1 %v2889_v4, %s7112_s18  ;;  %v2656_v4 = vld [vmem:[%s8038_s28 + $0x40] sm:$0xff] }
 0x8b5   : >> { %2900 = vrot.lane.b32.xlu0 %v2884_v51, %s7112_s18  ;;  %v2657_v51 = vld [vmem:[%s8038_s28 + $0x48] sm:$0xff] }
 0x8b7   : >> { %2906 = vrot.lane.b32.xlu1 %v2887_v12, %s7112_s18 }
 0x8b9   : >> { %2964 = vperm.xlu0 %6758, %v8018_v1  }
 0x8bb   : >> { %2902 = vrot.lane.b32.xlu1 %v2885_v49, %s7112_s18  ;;  %v2658_v49 = vld [vmem:[%s8038_s28 + $0x50] sm:$0xff]  ;;  %s8954_s18 = scalar_lea.hbm (%p2634_p11), %s9004_s6, %s5686_s17 }
 0x8bd   : >> { %3076 = vperm.xlu0 %6758, %v8044_v18  }
 0x8bf   : >> { %2969 = vperm.xlu1 %6759, %v6212_v37  }
 0x8c1   : >> { %2944 = vperm.xlu0 %6758, %v8012_v44  }
 0x8c3   : >> { %2954 = vperm.xlu1 %6759, %v8016_v32  }
 0x8c5   : >> { %3071 = vperm.xlu0 %6758, %v8049_v10  }
 0x8c7   : >> { %2959 = vperm.xlu1 %6759, %v8014_v54  }
 0x8c9   : >> { %2934 = vperm.xlu0 %6758, %v8008_v47  }
 0x8cb   : >> { %3081 = vperm.xlu1 %6759, %v8055_v28  }
 0x8cd   : >> { %3061 = vperm.xlu0 %6758, %v8059_v11  }
 0x8cf   : >> { %6760 = vset.pattern.permute.xlu1 %v7113_v55 }
 0x8d0   : >> { %3117 = vperm.xlu1 %6760, %v8044_v18  }
 0x8d1   : >> { %3046 = vperm.xlu0 %6758, %v8064_v38  }
 0x8d4   : >> { %3121 = vperm.xlu1 %6760, %v8055_v28  }
 0x8d5   : >> { %6765 = vset.pattern.permute.xlu0 %v7113_v55 }
 0x8d8   : >> { %6761 = vset.pattern.permute.xlu1 %v7111_v30 }
 0x8d9   : >> { %2949 = vperm.xlu1 %6761, %v8010_v13  }
 0x8dd   : >> { %3066 = vperm.xlu1 %6761, %v8074_v34  }
 0x8e1   : >> { %6762 = vset.pattern.permute.xlu1 %v7113_v55 }
 0x8e2   : >> { %3109 = vperm.xlu1 %6762, %v8074_v34  }
 0x8e6   : >> { %3113 = vperm.xlu1 %6762, %v8049_v10  }
 0x8ea   : >> { %6763 = vset.pattern.permute.xlu1 %v7111_v30 }
 0x8eb   : >> { %2939 = vperm.xlu1 %6763, %v8006_v59  }
 0x8ef   : >> { %3056 = vperm.xlu1 %6763, %v8083_v26  }
 0x8f3   : >> { %6764 = vset.pattern.permute.xlu1 %v7113_v55 }
 0x91d   : >> { %v2915_v45 = vpop.permute.xlu1 %2914 }
 0x91e   : >> { %v2931_v63 = vsub.f32 %v6212_v37, %v2915_v45  ;;  %v2659_v45 = vld [vmem:[%s8038_s28 + $0x58] sm:$0xff] }
 0x91f   : >> { %v2913_v7 = vpop.permute.xlu0 %2912 }
 0x920   : >> { %v2987_v22 = vadd.f32 1e-05, %v2931_v63  ;;  %v2930_v33 = vsub.f32 %v8018_v1, %v2913_v7 }
 0x921   : >> { %v2909_v15 = vpop.permute.xlu1 %2908 }
 0x922   : >> { %6788 = vrsqrt.f32 %v2987_v22  ;;  %v2928_v36 = vsub.f32 %v8016_v32, %v2909_v15 }
 0x923   : >> { %v2905_v58 = vpop.permute.xlu0 %2904 }
 0x924   : >> { %v2926_v17 = vsub.f32 %v8012_v44, %v2905_v58  ;;  %v2984_v44 = vadd.f32 1e-05, %v2928_v36 }
 0x925   : >> { %v2911_v43 = vpop.permute.xlu1 %2910 }
 0x926   : >> { %v2929_v9 = vsub.f32 %v8014_v54, %v2911_v43  ;;  %v2982_v8 = vadd.f32 1e-05, %v2926_v17  ;;  %v2986_v54 = vadd.f32 1e-05, %v2930_v33 }
 0x927   : >> { %v2901_v16 = vpop.permute.xlu0 %2900 }
 0x928   : >> { %v2985_v24 = vadd.f32 1e-05, %v2929_v9  ;;  %v2924_v2 = vsub.f32 %v8008_v47, %v2901_v16 }
 0x929   : >> { %v2907_v3 = vpop.permute.xlu1 %2906 }
 0x92a   : >> { %6790 = vrsqrt.f32 %v2985_v24  ;;  %v2980_v52 = vadd.f32 1e-05, %v2924_v2  ;;  %v2927_v14 = vsub.f32 %v8010_v13, %v2907_v3 }
 0x92c   : >> { %6792 = vrsqrt.f32 %v2980_v52  ;;  %v2983_v6 = vadd.f32 1e-05, %v2927_v14 }
 0x92d   : >> { %v2903_v35 = vpop.permute.xlu1 %2902 }
 0x92e   : >> { %6794 = vrsqrt.f32 %v2983_v6  ;;  %v2925_v56 = vsub.f32 %v8006_v59, %v2903_v35 }
 0x92f   : >> { %v6789_v62 = vpop.eup %6788  ;;  %6796 = vrsqrt.f32 %v2982_v8 }
 0x930   : >> { %v2981_v47 = vadd.f32 1e-05, %v2925_v56  ;;  %3033 = vperm.xlu0 %6765, %v6789_v62  }
 0x932   : >> { %6798 = vrsqrt.f32 %v2981_v47 }
 0x933   : >> { %6800 = vrsqrt.f32 %v2984_v44 }
 0x934   : >> { %6802 = vrsqrt.f32 %v2986_v54 }
 0x937   : >> { %v6791_v13 = vpop.eup %6790 }
 0x938   : >> { %3023 = vperm.xlu0 %6765, %v6791_v13  }
 0x939   : >> { %v6793_v32 = vpop.eup %6792 }
 0x93a   : >> { %2998 = vperm.xlu1 %6764, %v6793_v32   ;;  %v2970_v12 = vpop.permute.xlu1 %2969 }
 0x93b   : >> { %v6795_v37 = vpop.eup %6794 }
 0x93c   : >> { %3013 = vperm.xlu0 %6765, %v6795_v37   ;;  %v6797_v59 = vpop.eup %6796 }
 0x93e   : >> { %3008 = vperm.xlu1 %6764, %v6797_v59  }
 0x93f   : >> { %v6799_v46 = vpop.eup %6798 }
 0x940   : >> { %3003 = vperm.xlu0 %6765, %v6799_v46   ;;  %v6801_v1 = vpop.eup %6800 }
 0x941   : >> { %v6803_v48 = vpop.eup %6802 }
 0x942   : >> { %3018 = vperm.xlu1 %6764, %v6801_v1  }
 0x944   : >> { %3097 = vperm.xlu0 %6765, %v2649_v31  }
 0x946   : >> { %3028 = vperm.xlu1 %6764, %v6803_v48  }
 0x94a   : >> { %3101 = vperm.xlu1 %6764, %v8083_v26  }
 0x94e   : >> { %3105 = vperm.xlu1 %6764, %v8059_v11  }
 0x952   : >> { %6766 = vset.pattern.permute.xlu1 %v7111_v30  ;;  %v7114_v30 = vmov 2  }
 0x953   : >> { %3051 = vperm.xlu1 %6766, %v2649_v31   ;;  %6769 = vset.pattern.permute.xlu0 %v7114_v30 }
 0x954   : >> { %3198 = vperm.xlu0 %6769, %v2656_v4  }
 0x957   : >> { %6767 = vset.pattern.permute.xlu1 %v7113_v55  ;;  %v2955_v55 = vpop.permute.xlu1 %2954 }
 0x958   : >> { %3093 = vperm.xlu1 %6767, %v8064_v38   ;;  %3203 = vperm.xlu0 %6769, %v2657_v51   ;;  %v2976_v6 = vsub.f32 %v7084_v21, %v2955_v55 }
 0x95b   : >> { %v2960_v63 = vpop.permute.xlu1 %2959 }
 0x95c   : >> { %6768 = vset.pattern.permute.xlu1 %v7114_v30  ;;  %3181 = vperm.xlu0 %6769, %v8074_v34   ;;  %v2977_v56 = vsub.f32 %v7080_v0, %v2960_v63 }
 0x95d   : >> { %3165 = vperm.xlu1 %6768, %v8064_v38  }
 0x95f   : >> { %v3082_v38 = vpop.permute.xlu1 %3081 }
 0x960   : >> { %3185 = vperm.xlu0 %6769, %v8049_v10  }
 0x961   : >> { %3169 = vperm.xlu1 %6768, %v2649_v31  }
 0x963   : >> { %v3118_v7 = vpop.permute.xlu1 %3117 }
 0x964   : >> { %3208 = vperm.xlu0 %6769, %v2658_v49  }
 0x965   : >> { %3173 = vperm.xlu1 %6768, %v8083_v26   ;;  %v2965_v26 = vpop.permute.xlu0 %2964 }
 0x966   : >> { %v2978_v44 = vsub.f32 %v7076_v27, %v2965_v26 }
 0x967   : >> { %v3122_v22 = vpop.permute.xlu1 %3121 }
 0x968   : >> { %3213 = vperm.xlu0 %6769, %v2659_v45  }
 0x969   : >> { %3177 = vperm.xlu1 %6768, %v8059_v11   ;;  %v3077_v15 = vpop.permute.xlu0 %3076 }
 0x96b   : >> { %v2950_v58 = vpop.permute.xlu1 %2949 }
 0x96c   : >> { %3193 = vperm.xlu0 %6769, %v8055_v28   ;;  %v2979_v28 = vsub.f32 %v7072_v50, %v2970_v12  ;;  %v2975_v32 = vsub.f32 %v7088_v39, %v2950_v58  ;;  %v5725_v50 = vunpack.c.l.bf16 %v5778_v53 }
 0x96d   : >> { %v2945_v11 = vpop.permute.xlu0 %2944 }
 0x96e   : >> { %v2974_v1 = vsub.f32 %v7092_v60, %v2945_v11 }
 0x96f   : >> { %v3067_v43 = vpop.permute.xlu1 %3066 }
 0x971   : >> { %v3072_v9 = vpop.permute.xlu0 %3071 }
 0x973   : >> { %v3110_v34 = vpop.permute.xlu1 %3109 }
 0x975   : >> { %v2935_v16 = vpop.permute.xlu0 %2934 }
 0x976   : >> { %v2972_v11 = vsub.f32 %v7100_v40, %v2935_v16 }
 0x977   : >> { %v3114_v10 = vpop.permute.xlu1 %3113 }
 0x979   : >> { %v3062_v17 = vpop.permute.xlu0 %3061 }
 0x97b   : >> { %v2940_v24 = vpop.permute.xlu1 %2939 }
 0x97d   : >> { %v3047_v2 = vpop.permute.xlu0 %3046 }
 0x97f   : >> { %v3057_v3 = vpop.permute.xlu1 %3056 }
 0x9ab   : >> { %v3034_v14 = vpop.permute.xlu0 %3033 }
 0x9ac   : >> { %v3043_v62 = vmul.f32 %v3034_v14, %v2979_v28 }
 0x9ae   : >> { %v3091_v37 = vmul.f32 %v3082_v38, %v3043_v62  ;;  %v6778_v62 = vld [vmem:[%s8105_s13 + $0x30] sm:$0xff]  }
 0x9b0   : >> { %v3131_v49 = vadd.f32 %v3122_v22, %v3091_v37 }
 0x9b3   : >> { %v3024_v8 = vpop.permute.xlu0 %3023 }
 0x9b4   : >> { %v3041_v47 = vmul.f32 %v3024_v8, %v2977_v56  ;;  %v6777_v56 = vld [vmem:[%s8105_s13 + $0x28] sm:$0xff]  }
 0x9b5   : >> { %v2999_v52 = vpop.permute.xlu1 %2998 }
 0x9b6   : >> { %v3089_v31 = vmul.f32 %v3072_v9, %v3041_v47  ;;  %v3036_v9 = vmul.f32 %v2999_v52, %v2972_v11  ;;  %v6773_v52 = vld [vmem:[%s8105_s13 + $0x8] sm:$0xff]  }
 0x9b7   : >> { %v3014_v54 = vpop.permute.xlu0 %3013  ;;  %v6781_v47 = vld [vmem:[%s8105_s13 + $0x48] sm:$0xff]  }
 0x9b8   : >> { %v3039_v48 = vmul.f32 %v3014_v54, %v2975_v32  ;;  %v3129_v55 = vadd.f32 %v3114_v10, %v3089_v31  ;;  %v9007_v54 = vmov 0.0   ;;  %v6783_v32 = vld [vmem:[%s8105_s13 + $0x58] sm:$0xff]  }
 0x9b9   : >> { %v3009_v36 = vpop.permute.xlu1 %3008  ;;  %6245 = vmatprep.subr.bf16.mxu0 %v9007_v54  ;;  %6247 = vmatprep.mubr.msk.bf16.mxu0 %vm7116_vm10, %v9007_v54 }
 0x9ba   : >> { %v3038_v4 = vmul.f32 %v3009_v36, %v2974_v1  ;;  %v3087_v45 = vmul.f32 %v3062_v17, %v3039_v48  ;;  %v3084_v17 = vmul.f32 %v3047_v2, %v3036_v9  ;;  %v6775_v2 = vld [vmem:[%s8105_s13 + $0x18] sm:$0xff]  }
 0x9bb   : >> { %v3004_v58 = vpop.permute.xlu0 %3003 }
 0x9bc   : >> { %v3086_v14 = vmul.f32 %v3057_v3, %v3038_v4 }
 0x9bd   : >> { %v3019_v35 = vpop.permute.xlu1 %3018 }
 0x9be   : >> { %v3040_v33 = vmul.f32 %v3019_v35, %v2976_v6  ;;  %v6774_v6 = vld [vmem:[%s8105_s13 + $0x10] sm:$0xff]   ;;  %v6776_v35 = vld [vmem:[%s8105_s13 + $0x20] sm:$0xff]  }
 0x9bf   : >> { %v3098_v3 = vpop.permute.xlu0 %3097 }
 0x9c0   : >> { %v3088_v59 = vmul.f32 %v3067_v43, %v3040_v33  ;;  %v2973_v43 = vsub.f32 %v7096_v29, %v2940_v24  ;;  %v6779_v33 = vld [vmem:[%s8105_s13 + $0x38] sm:$0xff]   ;;  %v5779_v29 = vld [vmem:[%s8273_s19 + $0x48] sm:$0xff]  }
 0x9c1   : >> { %v3029_v13 = vpop.permute.xlu1 %3028  ;;  %v5729_v60 = vunpack.c.l.bf16 %v5779_v29 }
 0x9c2   : >> { %v3042_v46 = vmul.f32 %v3029_v13, %v2978_v44  ;;  %v3128_v51 = vadd.f32 %v3110_v34, %v3088_v59  ;;  %v6780_v44 = vld [vmem:[%s8105_s13 + $0x40] sm:$0xff]   ;;  %v6782_v13 = vld [vmem:[%s8105_s13 + $0x50] sm:$0xff]   ;;  %s8893_s13 = scalar_lea.vmem %s9000_s2, %s5672_s10 }
 0x9c4   : >> { %v3090_v19 = vmul.f32 %v3077_v15, %v3042_v46  ;;  %v3162_v38 = vpack.c.bf16 %v3129_v55, %v3128_v51 }
 0x9c5   : >> { %v3102_v30 = vpop.permute.xlu1 %3101 }
 0x9c6   : >> { %v3130_v12 = vadd.f32 %v3118_v7, %v3090_v19  ;;  %v3126_v15 = vadd.f32 %v3102_v30, %v3086_v14  ;;  %v3037_v7 = vmul.f32 %v3004_v58, %v2973_v43 }
 0x9c8   : >> { %v3163_v63 = vpack.c.bf16 %v3131_v49, %v3130_v12 }
 0x9c9   : >> { %v3106_v26 = vpop.permute.xlu1 %3105 }
 0x9ca   : >> { %v3127_v8 = vadd.f32 %v3106_v26, %v3087_v45  ;;  %6213 = vmatprep.subr.bf16.mxu1 %v3163_v63 }
 0x9cb   : >> { %6214 = vmatpush3.bf16.msra.mxu1 %v3163_v63 }
 0x9cc   : >> { %6215 = vmatprep.subr.bf16.mxu1 %v3162_v38  ;;  %v3161_v22 = vpack.c.bf16 %v3127_v8, %v3126_v15 }
 0x9ce   : >> { %v3052_v34 = vpop.permute.xlu1 %3051 }
 0x9cf   : >> { %6216 = vmatpush3.bf16.msra.mxu1 %v3162_v38  ;;  %v3085_v10 = vmul.f32 %v3052_v34, %v3037_v7  ;;  %v3199_v37 = vpop.permute.xlu0 %3198 }
 0x9d0   : >> { %6217 = vmatprep.subr.bf16.mxu1 %v3161_v22 }
 0x9d1   : >> { %v3125_v16 = vadd.f32 %v3098_v3, %v3085_v10 }
 0x9d3   : >> { %v3094_v36 = vpop.permute.xlu1 %3093  ;;  %6218 = vmatpush3.bf16.msra.mxu1 %v3161_v22  ;;  %v8155_v46 = vpop.permute.xlu0 %3203 }
 0x9d4   : >> { %v3124_v24 = vadd.f32 %v3094_v36, %v3084_v17 }
 0x9d6   : >> { %v3160_v28 = vpack.c.bf16 %v3125_v16, %v3124_v24 }
 0x9d7   : >> { %v3182_v4 = vpop.permute.xlu0 %3181 }
 0x9d8   : >> { %6219 = vmatprep.subr.bf16.mxu1 %v3160_v28  ;;  %v3166_v59 = vpop.permute.xlu1 %3165 }
 0x9d9   : >> { %6220 = vmatpush3.bf16.msra.mxu1 %v3160_v28 }
 0x9da   : >> { %6273 = vmatprep.subr.bf16.mxu1 %v9007_v54 }
 0x9db   : >> { %v3186_v38 = vpop.permute.xlu0 %3185 }
 0x9dc   : >> { %6222 = vmatmul.mubr.msk.bf16.vlgmr.msra.gmra.mxu1 %vm2754_vm0, %v6773_v52  ;;  %v3170_v1 = vpop.permute.xlu1 %3169 }
 0x9dd   : >> { %6225 = vmatprep.mubr.msk.bf16.mxu1 %vm2754_vm0, %v6774_v6 }
 0x9df   : >> { %v3209_v10 = vpop.permute.xlu0 %3208 }
 0x9e0   : >> { %v3174_v51 = vpop.permute.xlu1 %3173 }
 0x9e4   : >> { %6226 = vmatmul.mubr.msk.bf16.gmra.mxu1 %vm2754_vm0, %v6775_v2  ;;  %v3178_v58 = vpop.permute.xlu1 %3177 }
 0x9e5   : >> { %6229 = vmatprep.mubr.msk.bf16.mxu1 %vm2754_vm0, %v6776_v35 }
 0x9ec   : >> { %6230 = vmatmul.mubr.msk.bf16.gmra.mxu1 %vm2754_vm0, %v6777_v56 }
 0x9ed   : >> { %6233 = vmatprep.mubr.msk.bf16.mxu1 %vm2754_vm0, %v6778_v62  ;;  %v2660_v62 = vld [vmem:[%s8038_s28 + $0x60] sm:$0xff] }
 0x9f4   : >> { %6234 = vmatmul.mubr.msk.bf16.gmra.mxu1 %vm2754_vm0, %v6779_v33  ;;  %v2661_v33 = vld [vmem:[%s8038_s28 + $0x68] sm:$0xff] }
 0x9f5   : >> { %6237 = vmatprep.mubr.msk.bf16.mxu1 %vm2754_vm0, %v6780_v44  ;;  %v2663_v44 = vld [vmem:[%s8038_s28 + $0x78] sm:$0xff] }
 0x9fc   : >> { %6238 = vmatmul.mubr.msk.bf16.gmra.mxu1 %vm2754_vm0, %v6781_v47  ;;  %v2662_v47 = vld [vmem:[%s8038_s28 + $0x70] sm:$0xff] }
 0x9fd   : >> { %6241 = vmatprep.mubr.msk.bf16.mxu1 %vm2754_vm0, %v6782_v13 }
 0xa04   : >> { %6242 = vmatmul.mubr.msk.bf16.gmra.mxu1 %vm2754_vm0, %v6783_v32  ;;  %v3214_v32 = vpop.permute.xlu0 %3213 }
 0xa05   : >> { %6275 = vmatprep.mubr.msk.bf16.mxu1 %vm7116_vm10, %v9007_v54 }
 0xa9c   : >> { %v6223_v31 = vpop.f32.mrf.mxu1 }
 0xa9d   : >> { %v3415_v63 = vadd.f32 %v6223_v31, %v3174_v51 }
 0xa9e   : >> { %v3406_v48 = vpop.f32.mrf.mxu1 }
 0xa9f   : >> { %v3407_v19 = vadd.f32 %v3406_v48, %v3166_v59  ;;  %v3503_v43 = vmul.f32 0.59460354, %v3415_v63  ;;  %v3194_v59 = vpop.permute.xlu0 %3193 }
 0xaa0   : >> { %v6224_v30 = vpop.f32.mrf.mxu1 }
 0xaa1   : >> { %v3501_v12 = vmul.f32 0.59460354, %v3407_v19  ;;  %v3418_v15 = vadd.f32 %v6224_v30, %v3178_v58  ;;  %v3511_v22 = vpack.c.bf16 %v3503_v43, %v3503_v43 }
 0xaa2   : >> { %v3409_v49 = vpop.f32.mrf.mxu1 }
 0xaa3   : >> { %v3509_v55 = vpack.c.bf16 %v3501_v12, %v3501_v12  ;;  %v3410_v45 = vadd.f32 %v3409_v49, %v3170_v1  ;;  %v3504_v34 = vmul.f32 0.59460354, %v3418_v15 }
 0xaa4   : >> { %v8157_v26 = vpop.f32.mrf.mxu1 }
 0xaa5   : >> { %v3502_v14 = vmul.f32 0.59460354, %v3410_v45  ;;  %3624 = vxpose.xlu1.c.b16.start.end [1/1] (short) (narrow) %v3509_v55, 48  ;;  %v3512_v28 = vpack.c.bf16 %v3504_v34, %v3504_v34  ;;  %v2665_v55 = vld [vmem:[%s8038_s28 + $0x88] sm:$0xff] }
 0xaa6   : >> { %v3422_v8 = vpop.f32.mrf.mxu1 }
 0xaa7   : >> { %v3510_v11 = vpack.c.bf16 %v3502_v14, %v3502_v14  ;;  %v3423_v1 = vadd.f32 %v3422_v8, %v3182_v4 }
 0xaa8   : >> { %v6228_v9 = vpop.f32.mrf.mxu1 }
 0xaa9   : >> { %3708 = vxpose.xlu0.c.b16.start.end [1/1] (short) (narrow) %v3510_v11, 48  ;;  %v3434_v48 = vadd.f32 %v6228_v9, %v3194_v59  ;;  %v3505_v19 = vmul.f32 0.59460354, %v3423_v1 }
 0xaaa   : >> { %v3425_v7 = vpop.f32.mrf.mxu1 }
 0xaab   : >> { %v3426_v13 = vadd.f32 %v3425_v7, %v3186_v38  ;;  %v3508_v30 = vmul.f32 0.59460354, %v3434_v48 }
 0xaac   : >> { %v6231_v17 = vpop.f32.mrf.mxu1 }
 0xaad   : >> { %v3447_v3 = vadd.f32 %v6231_v17, %v3209_v10  ;;  %v3516_v51 = vpack.c.bf16 %v3508_v30, %v3508_v30 }
 0xaae   : >> { %3792 = vxpose.xlu1.c.b16.start.end [1/1] (short) (narrow) %v3511_v22, 48  ;;  %v3438_v36 = vpop.f32.mrf.mxu1 }
 0xaaf   : >> { %v3519_v16 = vmul.f32 0.59460354, %v3447_v3  ;;  %v3439_v24 = vadd.f32 %v3438_v36, %v3199_v37  ;;  %v3506_v37 = vmul.f32 0.59460354, %v3426_v13 }
 0xab0   : >> { %v6232_v12 = vpop.f32.mrf.mxu1 }
 0xab1   : >> { %v3527_v52 = vpack.c.bf16 %v3519_v16, %v3519_v16  ;;  %v3517_v6 = vmul.f32 0.59460354, %v3439_v24  ;;  %v3514_v31 = vpack.c.bf16 %v3506_v37, %v3506_v37  ;;  %v3450_v11 = vadd.f32 %v6232_v12, %v3214_v32  ;;  %v2664_v12 = vld [vmem:[%s8038_s28 + $0x80] sm:$0xff] }
 0xab2   : >> { %3876 = vxpose.xlu0.c.b16.start.end [1/1] (short) (narrow) %v3512_v28, 48  ;;  %v3441_v49 = vpop.f32.mrf.mxu1 }
 0xab3   : >> { %v3818_v2 = vsel %vm1976_vm5, %v3527_v52, 0  ;;  %v3525_v35 = vpack.c.bf16 %v3517_v6, %v3517_v6  ;;  %v3442_v45 = vadd.f32 %v3441_v49, %v8155_v46  ;;  %v3520_v43 = vmul.f32 0.59460354, %v3450_v11 }
 0xab4   : >> { %6274 = vmatpush3.bf16.msra.mxu1 %v3818_v2  ;;  %v6235_v36 = vpop.f32.mrf.mxu1 }
 0xab5   : >> { %v3650_v56 = vsel %vm1976_vm5, %v3525_v35, 0  ;;  %6301 = vmatprep.subr.bf16.mxu1 %v9007_v54  ;;  %v3518_v63 = vmul.f32 0.59460354, %v3442_v45  ;;  %v3528_v9 = vpack.c.bf16 %v3520_v43, %v3520_v43  ;;  %v2666_v45 = vld [vmem:[%s8038_s28 + $0x90] sm:$0xff] }
 0xab6   : >> { %6246 = vmatpush3.bf16.msra.mxu0 %v3650_v56  ;;  %v3454_v16 = vpop.f32.mrf.mxu1 }
 0xab7   : >> { %6259 = vmatprep.subr.bf16.mxu0 %v9007_v54  ;;  %v3526_v14 = vpack.c.bf16 %v3518_v63, %v3518_v63  ;;  %v3902_v22 = vsel %vm1976_vm5, %v3528_v9, 0 }
 0xab8   : >> { %v6236_v6 = vpop.f32.mrf.mxu1 }
 0xab9   : >> { %v3734_v38 = vsel %vm1976_vm5, %v3526_v14, 0 }
 0xaba   : >> { %3189 = vperm.xlu1 %6768, %v8044_v18   ;;  %v3513_v18 = vpack.c.bf16 %v3505_v19, %v3505_v19 }
 0xabe   : >> { %3218 = vperm.xlu1 %6768, %v2660_v62  }
 0xac2   : >> { %3223 = vperm.xlu1 %6768, %v2661_v33  }
 0xac3   : >> { %3233 = vperm.xlu0 %6769, %v2663_v44   ;;  %v3457_v44 = vpop.f32.mrf.mxu1 }
 0xac6   : >> { %3228 = vperm.xlu1 %6768, %v2662_v47  }
 0xae1   : >> { %4044 = vxpose.xlu0.c.b16.start.end [1/1] (short) (narrow) %v3514_v31, 48 }
 0xae9   : >> { %3960 = vxpose.xlu1.c.b16.start.end [1/1] (short) (narrow) %v3513_v18, 48 }
 0xaea   : >> { %4212 = vxpose.xlu0.c.b16.start.end [1/1] (short) (narrow) %v3516_v51, 48 }
 0xafb   : >> { %3243 = vperm.xlu0 %6769, %v2665_v55  }
 0xb07   : >> { %v3632_v4 = vpop.trf.xlu1 }
 0xb08   : >> { %6248 = vmatmul.mubr.msk.bf16.vlgmr.msra.gmra.mxu0 %vm1203_vm3, %v3632_v4 }
 0xb09   : >> { %6251 = vmatprep.mubr.msk.bf16.mxu0 %vm7116_vm10, %v9007_v54  ;;  %6260 = vmatpush3.bf16.msra.mxu0 %v3734_v38 }
 0xb0a   : >> { %6287 = vmatprep.subr.bf16.mxu0 %v9007_v54 }
 0xb0b   : >> { %v3633_v8 = vpop.trf.xlu1  ;;  %v3716_v7 = vpop.trf.xlu0 }
 0xb0f   : >> { %v3634_v58 = vpop.trf.xlu1  ;;  %v3717_v10 = vpop.trf.xlu0 }
 0xb10   : >> { %6252 = vmatmul.mubr.msk.bf16.gmra.mxu0 %vm1203_vm3, %v3633_v8 }
 0xb11   : >> { %6255 = vmatprep.mubr.msk.bf16.mxu0 %vm7116_vm10, %v9007_v54 }
 0xb13   : >> { %v3800_v46 = vpop.trf.xlu1  ;;  %v3718_v17 = vpop.trf.xlu0 }
 0xb14   : >> { %6276 = vmatmul.mubr.msk.bf16.vlgmr.msra.gmra.mxu1 %vm1203_vm3, %v3800_v46 }
 0xb15   : >> { %6279 = vmatprep.mubr.msk.bf16.mxu1 %vm7116_vm10, %v9007_v54 }
 0xb17   : >> { %v3801_v15 = vpop.trf.xlu1  ;;  %v3884_v3 = vpop.trf.xlu0 }
 0xb18   : >> { %6256 = vmatmul.mubr.msk.bf16.gmra.mxu0 %vm1203_vm3, %v3634_v58 }
 0xb19   : >> { %6261 = vmatprep.mubr.msk.bf16.mxu0 %vm7116_vm10, %v9007_v54 }
 0xb1b   : >> { %v3802_v34 = vpop.trf.xlu1  ;;  %v3885_v28 = vpop.trf.xlu0 }
 0xb1c   : >> { %6280 = vmatmul.mubr.msk.bf16.gmra.mxu1 %vm1203_vm3, %v3801_v15 }
 0xb1d   : >> { %6283 = vmatprep.mubr.msk.bf16.mxu1 %vm7116_vm10, %v9007_v54 }
 0xb1f   : >> { %v3886_v33 = vpop.trf.xlu0 }
 0xb20   : >> { %6262 = vmatmul.mubr.msk.bf16.vlgmr.msra.gmra.mxu0 %vm1203_vm3, %v3716_v7 }
 0xb21   : >> { %6288 = vmatpush3.bf16.msra.mxu0 %v3902_v22  ;;  %6265 = vmatprep.mubr.msk.bf16.mxu0 %vm7116_vm10, %v9007_v54 }
 0xb22   : >> { %6315 = vmatprep.subr.bf16.mxu0 %v9007_v54 }
 0xb24   : >> { %6284 = vmatmul.mubr.msk.bf16.gmra.mxu1 %vm1203_vm3, %v3802_v34 }
 0xb25   : >> { %6303 = vmatprep.mubr.msk.bf16.mxu1 %vm7116_vm10, %v9007_v54 }
 0xb28   : >> { %6266 = vmatmul.mubr.msk.bf16.gmra.mxu0 %vm1203_vm3, %v3717_v10 }
 0xb29   : >> { %6269 = vmatprep.mubr.msk.bf16.mxu0 %vm7116_vm10, %v9007_v54 }
 0xb30   : >> { %6270 = vmatmul.mubr.msk.bf16.gmra.mxu0 %vm1203_vm3, %v3718_v17  ;;  %v8257_v17 = vpop.f32.mrf.mxu1 }
 0xb31   : >> { %6289 = vmatprep.mubr.msk.bf16.mxu0 %vm7116_vm10, %v9007_v54 }
 0xb35   : >> { %v3190_v24 = vpop.permute.xlu1 %3189 }
 0xb36   : >> { %v3431_v52 = vadd.f32 %v8157_v26, %v3190_v24 }
 0xb38   : >> { %v3507_v2 = vmul.f32 0.59460354, %v3431_v52  ;;  %6290 = vmatmul.mubr.msk.bf16.vlgmr.msra.gmra.mxu0 %vm1203_vm3, %v3884_v3  ;;  %v8259_v3 = vpop.f32.mrf.mxu1 }
 0xb39   : >> { %v3219_v35 = vpop.permute.xlu1 %3218  ;;  %6293 = vmatprep.mubr.msk.bf16.mxu0 %vm7116_vm10, %v9007_v54 }
 0xb3a   : >> { %v3515_v56 = vpack.c.bf16 %v3507_v2, %v3507_v2  ;;  %v3455_v62 = vadd.f32 %v3454_v16, %v3219_v35 }
 0xb3c   : >> { %v3521_v47 = vmul.f32 0.59460354, %v3455_v62  ;;  %4128 = vxpose.xlu1.c.b16.start.end [1/1] (short) (narrow) %v3515_v56, 48  ;;  %v5692_v56 = vld [vmem:[%s8273_s19] sm:$0xff]   ;;  %v5775_v62 = vld [vmem:[%s8273_s19 + $0x28] sm:$0xff]  }
 0xb3d   : >> { %v3224_v13 = vpop.permute.xlu1 %3223 }
 0xb3e   : >> { %v3529_v32 = vpack.c.bf16 %v3521_v47, %v3521_v47  ;;  %v3458_v37 = vadd.f32 %v3457_v44, %v3224_v13  ;;  %v3234_v1 = vpop.permute.xlu0 %3233  ;;  %v5693_v13 = vunpack.c.l.bf16 %v5692_v56 }
 0xb3f   : >> { %v3466_v18 = vadd.f32 %v6236_v6, %v3234_v1 }
 0xb40   : >> { %v3986_v26 = vsel %vm1976_vm5, %v3529_v32, 0  ;;  %v3522_v59 = vmul.f32 0.59460354, %v3458_v37  ;;  %6294 = vmatmul.mubr.msk.bf16.gmra.mxu0 %vm1203_vm3, %v3885_v28  ;;  %v5713_v32 = vunpack.c.l.bf16 %v5775_v62 }
 0xb41   : >> { %v3229_v31 = vpop.permute.xlu1 %3228  ;;  %6302 = vmatpush3.bf16.msra.mxu1 %v3986_v26  ;;  %6297 = vmatprep.mubr.msk.bf16.mxu0 %vm7116_vm10, %v9007_v54  ;;  %v3524_v49 = vmul.f32 0.59460354, %v3466_v18 }
 0xb42   : >> { %v3530_v48 = vpack.c.bf16 %v3522_v59, %v3522_v59  ;;  %v3463_v19 = vadd.f32 %v6235_v36, %v3229_v31  ;;  %6329 = vmatprep.subr.bf16.mxu1 %v9007_v54  ;;  %v8261_v36 = vpop.f32.mrf.mxu1  ;;  %v5694_v31 = vunpack.c.h.bf16 %v5692_v56 }
 0xb43   : >> { %v3532_v14 = vpack.c.bf16 %v3524_v49, %v3524_v49  ;;  %v4052_v4 = vpop.trf.xlu0  ;;  %9053 = vst [vmem:[#allocation21_spill] sm:$0xff] %v8261_v36  ;;  %v5784_v36 = vld [vmem:[%s8273_s19 + $0x70] sm:$0xff]  }
 0xb44   : >> { %v4070_v30 = vsel %vm1976_vm5, %v3530_v48, 0  ;;  %v3523_v51 = vmul.f32 0.59460354, %v3463_v19  ;;  %v8263_v16 = vpop.f32.mrf.mxu1  ;;  %v5771_v19 = vld [vmem:[%s8273_s19 + $0x8] sm:$0xff]  }
 0xb45   : >> { %6316 = vmatpush3.bf16.msra.mxu0 %v4070_v30  ;;  %v4238_v8 = vsel %vm1976_vm5, %v3532_v14, 0  ;;  %9054 = vst [vmem:[#allocation22_spill] sm:$0xff] %v8263_v16  ;;  %v5714_v30 = vunpack.c.h.bf16 %v5775_v62  ;;  %v5772_v62 = vld [vmem:[%s8273_s19 + $0x10] sm:$0xff]  }
 0xb46   : >> { %6343 = vmatprep.subr.bf16.mxu0 %v9007_v54  ;;  %v3531_v55 = vpack.c.bf16 %v3523_v51, %v3523_v51  ;;  %v8265_v24 = vpop.f32.mrf.mxu1  ;;  %v5776_v51 = vld [vmem:[%s8273_s19 + $0x30] sm:$0xff]  }
 0xb47   : >> { %v4053_v46 = vpop.trf.xlu0  ;;  %9055 = vst [vmem:[#allocation23_spill] sm:$0xff] %v8265_v24 }
 0xb48   : >> { %3238 = vperm.xlu1 %6768, %v2664_v12   ;;  %6298 = vmatmul.mubr.msk.bf16.gmra.mxu0 %vm1203_vm3, %v3886_v33  ;;  %v4154_v38 = vsel %vm1976_vm5, %v3531_v55, 0  ;;  %v8268_v28 = vpop.f32.mrf.mxu1  ;;  %v5697_v55 = vunpack.c.l.bf16 %v5771_v19 }
 0xb49   : >> { %6317 = vmatprep.mubr.msk.bf16.mxu0 %vm7116_vm10, %v9007_v54  ;;  %9056 = vst [vmem:[#allocation24_spill] sm:$0xff] %v8268_v28 }
 0xb4a   : >> { %v8275_v2 = vpop.f32.mrf.mxu1 }
 0xb4b   : >> { %v3968_v63 = vpop.trf.xlu1  ;;  %v4054_v43 = vpop.trf.xlu0  ;;  %9057 = vst [vmem:[#allocation25_spill] sm:$0xff] %v8275_v2 }
 0xb4c   : >> { %3248 = vperm.xlu1 %6768, %v2666_v45   ;;  %6304 = vmatmul.mubr.msk.bf16.vlgmr.msra.gmra.mxu1 %vm1203_vm3, %v3968_v63  ;;  %v8279_v44 = vpop.f32.mrf.mxu1 }
 0xb4d   : >> { %6330 = vmatpush3.bf16.msra.mxu1 %v4154_v38  ;;  %6307 = vmatprep.mubr.msk.bf16.mxu1 %vm7116_vm10, %v9007_v54  ;;  %9058 = vst [vmem:[#allocation26_spill] sm:$0xff] %v8279_v44 }
 0xb4e   : >> { %6357 = vmatprep.subr.bf16.mxu1 %v9007_v54 }
 0xb4f   : >> { %v3969_v58 = vpop.trf.xlu1  ;;  %v4220_v15 = vpop.trf.xlu0 }
 0xb50   : >> { %6318 = vmatmul.mubr.msk.bf16.vlgmr.msra.gmra.mxu0 %vm1203_vm3, %v4052_v4 }
 0xb51   : >> { %6344 = vmatpush3.bf16.msra.mxu0 %v4238_v8  ;;  %6321 = vmatprep.mubr.msk.bf16.mxu0 %vm7116_vm10, %v9007_v54  ;;  %v5717_v8 = vunpack.c.l.bf16 %v5776_v51 }
 0xb52   : >> { %6367 = vmatprep.subr.bf16.mxu0 %v9007_v54 }
 0xb53   : >> { %v3970_v11 = vpop.trf.xlu1  ;;  %v4221_v9 = vpop.trf.xlu0 }
 0xb54   : >> { %6308 = vmatmul.mubr.msk.bf16.gmra.mxu1 %vm1203_vm3, %v3969_v58 }
 0xb55   : >> { %6311 = vmatprep.mubr.msk.bf16.mxu1 %vm7116_vm10, %v9007_v54 }
 0xb57   : >> { %v4222_v7 = vpop.trf.xlu0 }
 0xb58   : >> { %6322 = vmatmul.mubr.msk.bf16.gmra.mxu0 %vm1203_vm3, %v4053_v46 }
 0xb59   : >> { %6325 = vmatprep.mubr.msk.bf16.mxu0 %vm7116_vm10, %v9007_v54 }
 0xb5c   : >> { %6312 = vmatmul.mubr.msk.bf16.gmra.mxu1 %vm1203_vm3, %v3970_v11 }
 0xb5d   : >> { %6331 = vmatprep.mubr.msk.bf16.mxu1 %vm7116_vm10, %v9007_v54 }
 0xb60   : >> { %6326 = vmatmul.mubr.msk.bf16.gmra.mxu0 %vm1203_vm3, %v4054_v43 }
 0xb61   : >> { %6345 = vmatprep.mubr.msk.bf16.mxu0 %vm7116_vm10, %v9007_v54 }
 0xb68   : >> { %6346 = vmatmul.mubr.msk.bf16.vlgmr.msra.gmra.mxu0 %vm1203_vm3, %v4220_v15 }
 0xb69   : >> { %6349 = vmatprep.mubr.msk.bf16.mxu0 %vm7116_vm10, %v9007_v54 }
 0xb70   : >> { %6350 = vmatmul.mubr.msk.bf16.gmra.mxu0 %vm1203_vm3, %v4221_v9 }
 0xb71   : >> { %6353 = vmatprep.mubr.msk.bf16.mxu0 %vm7116_vm10, %v9007_v54 }
 0xb78   : >> { %6354 = vmatmul.mubr.msk.bf16.gmra.mxu0 %vm1203_vm3, %v4222_v7 }
 0xb79   : >> { %6373 = vmatprep.mubr.msk.bf16.mxu0 %vm7116_vm10, %v9007_v54 }
 0xb9e   : >> { %v4136_v22 = vpop.trf.xlu1 }
 0xb9f   : >> { %6332 = vmatmul.mubr.msk.bf16.vlgmr.msra.gmra.mxu1 %vm1203_vm3, %v4136_v22  ;;  %v5718_v22 = vunpack.c.h.bf16 %v5776_v51 }
 0xba0   : >> { %6335 = vmatprep.mubr.msk.bf16.mxu1 %vm7116_vm10, %v9007_v54 }
 0xba2   : >> { %v4137_v34 = vpop.trf.xlu1 }
 0xba6   : >> { %v4138_v10 = vpop.trf.xlu1 }
 0xba7   : >> { %6336 = vmatmul.mubr.msk.bf16.gmra.mxu1 %vm1203_vm3, %v4137_v34 }
 0xba8   : >> { %6339 = vmatprep.mubr.msk.bf16.mxu1 %vm7116_vm10, %v9007_v54 }
 0xbaf   : >> { %6340 = vmatmul.mubr.msk.bf16.gmra.mxu1 %vm1203_vm3, %v4138_v10  ;;  %vm5416_vm3 = vcmask (%p2634_p11), 253952  }
 0xbb0   : >> { %6363 = vmatprep.mubr.msk.bf16.mxu1 %vm7116_vm10, %v9007_v54 }
 0xbc8   : >> { %v3686_v52 = vpop.f32.mrf.mxu0 }
 0xbc9   : >> { %v8281_v1 = vadd.f32 %v5693_v13, %v3686_v52  ;;  %v5777_v52 = vld [vmem:[%s8273_s19 + $0x38] sm:$0xff]  }
 0xbca   : >> { %v6249_v6 = vpop.f32.mrf.mxu0 }
 0xbcb   : >> { %v4296_v4 = vsel %vm2130_vm8, %v8281_v1, -inf }
 0xbcc   : >> { %v3689_v35 = vpop.f32.mrf.mxu0 }
 0xbcd   : >> { %v8289_v14 = vadd.f32 %v5694_v31, %v3689_v35  ;;  %v5698_v35 = vunpack.c.h.bf16 %v5771_v19 }
 0xbce   : >> { %v6250_v33 = vpop.f32.mrf.mxu0 }
 0xbcf   : >> { %v4299_v34 = vsel %vm2130_vm8, %v8289_v14, -inf }
 0xbd0   : >> { %v3694_v47 = vpop.f32.mrf.mxu0 }
 0xbd1   : >> { %v8297_v9 = vadd.f32 %v5697_v55, %v3694_v47 }
 0xbd2   : >> { %v6253_v37 = vpop.f32.mrf.mxu0 }
 0xbd3   : >> { %v5721_v37 = vunpack.c.l.bf16 %v5777_v52 }
 0xbd4   : >> { %v3854_v26 = vpop.f32.mrf.mxu1  ;;  %v3697_v59 = vpop.f32.mrf.mxu0 }
 0xbd5   : >> { %v8283_v48 = vadd.f32 %v5713_v32, %v3854_v26  ;;  %v4302_v32 = vsel %vm2130_vm8, %v8297_v9, -inf }
 0xbd6   : >> { %v6277_v18 = vpop.f32.mrf.mxu1  ;;  %v6254_v12 = vpop.f32.mrf.mxu0 }
 0xbd7   : >> { %v4326_v49 = vsel %vm2130_vm8, %v8283_v48, -inf  ;;  %v5701_v18 = vunpack.c.l.bf16 %v5772_v62 }
 0xbd8   : >> { %4327 = vmax.xlane.f32.xlu1 %v4326_v49  ;;  %v3857_v45 = vpop.f32.mrf.mxu1  ;;  %v3702_v63 = vpop.f32.mrf.mxu0 }
 0xbd9   : >> { %v8291_v38 = vadd.f32 %v5714_v30, %v3857_v45  ;;  %v8311_v30 = vadd.f32 %v5698_v35, %v3697_v59  ;;  %v5722_v35 = vunpack.c.h.bf16 %v5777_v52 }
 0xbda   : >> { %v6278_v58 = vpop.f32.mrf.mxu1  ;;  %v6257_v46 = vpop.f32.mrf.mxu0 }
 0xbdb   : >> { %v4329_v11 = vsel %vm2130_vm8, %v8291_v38, -inf  ;;  %v4305_v59 = vsel %vm2130_vm8, %v8311_v30, -inf }
 0xbdc   : >> { %4297 = vmax.xlane.f32.xlu1 %v4296_v4  ;;  %v3862_v43 = vpop.f32.mrf.mxu1  ;;  %4330 = vmax.xlane.f32.xlu0 %v4329_v11  ;;  %v3705_v15 = vpop.f32.mrf.mxu0  ;;  %v8317_v4 = vadd.f32 %v5701_v18, %v3702_v63 }
 0xbdd   : >> { %v8299_v7 = vadd.f32 %v5717_v8, %v3862_v43 }
 0xbde   : >> { %v6281_v10 = vpop.f32.mrf.mxu1  ;;  %v6258_v6 = vpop.f32.mrf.mxu0  ;;  %v4308_v15 = vsel %vm2130_vm8, %v8317_v4, -inf }
 0xbdf   : >> { %v4332_v56 = vsel %vm2130_vm8, %v8299_v7, -inf }
 0xbe0   : >> { %4333 = vmax.xlane.f32.xlu1 %v4332_v56  ;;  %v3865_v33 = vpop.f32.mrf.mxu1  ;;  %4300 = vmax.xlane.f32.xlu0 %v4299_v34  ;;  %v3770_v13 = vpop.f32.mrf.mxu0 }
 0xbe1   : >> { %v8307_v47 = vadd.f32 %v5718_v22, %v3865_v33 }
 0xbe2   : >> { %v6282_v26 = vpop.f32.mrf.mxu1  ;;  %v6263_v31 = vpop.f32.mrf.mxu0 }
 0xbe3   : >> { %v4335_v19 = vsel %vm2130_vm8, %v8307_v47, -inf }
 0xbe4   : >> { %4303 = vmax.xlane.f32.xlu1 %v4302_v32  ;;  %v3870_v51 = vpop.f32.mrf.mxu1  ;;  %4336 = vmax.xlane.f32.xlu0 %v4335_v19  ;;  %v3773_v12 = vpop.f32.mrf.mxu0 }
 0xbe5   : >> { %v8315_v49 = vadd.f32 %v5721_v37, %v3870_v51 }
 0xbe6   : >> { %v6285_v55 = vpop.f32.mrf.mxu1  ;;  %v6264_v45 = vpop.f32.mrf.mxu0 }
 0xbe7   : >> { %v4338_v8 = vsel %vm2130_vm8, %v8315_v49, -inf  ;;  %v5780_v55 = vld [vmem:[%s8273_s19 + $0x50] sm:$0xff]  }
 0xbe8   : >> { %4339 = vmax.xlane.f32.xlu1 %v4338_v8  ;;  %4306 = vmax.xlane.f32.xlu0 %v4305_v59  ;;  %v3873_v58 = vpop.f32.mrf.mxu1  ;;  %v3778_v46 = vpop.f32.mrf.mxu0  ;;  %v5733_v52 = vunpack.c.l.bf16 %v5780_v55  ;;  %v5702_v59 = vunpack.c.h.bf16 %v5772_v62 }
 0xbe9   : >> { %v5773_v58 = vld [vmem:[%s8273_s19 + $0x18] sm:$0xff]  }
 0xbea   : >> { %v6286_v11 = vpop.f32.mrf.mxu1  ;;  %v6267_v43 = vpop.f32.mrf.mxu0  ;;  %v5706_v5 = vunpack.c.h.bf16 %v5773_v58 }
 0xbec   : >> { %4309 = vmax.xlane.f32.xlu1 %v4308_v15  ;;  %v8325_v22 = vpop.f32.mrf.mxu0  ;;  %v5734_v15 = vunpack.c.h.bf16 %v5780_v55 }
 0xbee   : >> { %v6268_v63 = vpop.f32.mrf.mxu0 }
 0xbef   : >> { %v5782_v63 = vld [vmem:[%s8273_s19 + $0x60] sm:$0xff]  }
 0xbf0   : >> { %v8327_v34 = vpop.f32.mrf.mxu0 }
 0xbf2   : >> { %v6271_v10 = vpop.f32.mrf.mxu0 }
 0xbf4   : >> { %v3789_v6 = vpop.f32.mrf.mxu0 }
 0xbf6   : >> { %v6272_v56 = vpop.f32.mrf.mxu0 }
 0xbf7   : >> { %v5781_v56 = vld [vmem:[%s8273_s19 + $0x58] sm:$0xff]  }
 0xbf8   : >> { %v3938_v33 = vpop.f32.mrf.mxu0 }
 0xbf9   : >> { %v8329_v32 = vadd.f32 %v5722_v35, %v3938_v33  ;;  %v8344_v35 = vadd.f32 %v5702_v59, %v3770_v13  ;;  %v5705_v33 = vunpack.c.l.bf16 %v5773_v58  ;;  %v5738_v58 = vunpack.c.h.bf16 %v5781_v56 }
 0xbfa   : >> { %v6291_v37 = vpop.f32.mrf.mxu0 }
 0xbfb   : >> { %v5742_v37 = vunpack.c.h.bf16 %v5782_v63  ;;  %v4311_v13 = vsel %vm2130_vm8, %v8344_v35, -inf }
 0xbfc   : >> { %v8331_v26 = vpop.f32.mrf.mxu0 }
 0xbfe   : >> { %v6292_v31 = vpop.f32.mrf.mxu0 }
 0xc00   : >> { %v8333_v18 = vpop.f32.mrf.mxu0 }
 0xc02   : >> { %v6295_v19 = vpop.f32.mrf.mxu0 }
 0xc04   : >> { %v8335_v51 = vpop.f32.mrf.mxu0 }
 0xc05   : >> { %v8445_v44 = vadd.f32 %v5729_v60, %v8335_v51 }
 0xc06   : >> { %v6296_v45 = vpop.f32.mrf.mxu0 }
 0xc08   : >> { %v8338_v8 = vpop.f32.mrf.mxu0 }
 0xc0a   : >> { %v6299_v11 = vpop.f32.mrf.mxu0 }
 0xc0b   : >> { %v5737_v11 = vunpack.c.l.bf16 %v5781_v56 }
 0xc0c   : >> { %v4022_v43 = vpop.f32.mrf.mxu1  ;;  %v3957_v10 = vpop.f32.mrf.mxu0 }
 0xc0d   : >> { %v8342_v6 = vadd.f32 %v5733_v52, %v4022_v43  ;;  %v8353_v52 = vadd.f32 %v5705_v33, %v3773_v12  ;;  %v5774_v10 = vld [vmem:[%s8273_s19 + $0x20] sm:$0xff]   ;;  %v8366_v33 = vadd.f32 %v5706_v5, %v3778_v46 }
 0xc0e   : >> { %v6305_v31 = vpop.f32.mrf.mxu1  ;;  %v6300_v19 = vpop.f32.mrf.mxu0  ;;  %v5710_v46 = vunpack.c.h.bf16 %v5774_v10 }
 0xc0f   : >> { %v4356_v45 = vsel %vm2130_vm8, %v8342_v6, -inf  ;;  %v4314_v12 = vsel %vm2130_vm8, %v8353_v52, -inf }
 0xc10   : >> { %4357 = vmax.xlane.f32.xlu1 %v4356_v45  ;;  %v4025_v62 = vpop.f32.mrf.mxu1  ;;  %v4106_v55 = vpop.f32.mrf.mxu0 }
 0xc11   : >> { %v8349_v54 = vadd.f32 %v5734_v15, %v4025_v62  ;;  %v8355_v59 = vadd.f32 %v5742_v37, %v4106_v55  ;;  %v5709_v37 = vunpack.c.l.bf16 %v5774_v10 }
 0xc12   : >> { %v6306_v43 = vpop.f32.mrf.mxu1  ;;  %v6319_v31 = vpop.f32.mrf.mxu0 }
 0xc13   : >> { %v4359_v19 = vsel %vm2130_vm8, %v8349_v54, -inf  ;;  %v8377_v5 = vadd.f32 %v5709_v37, %v8325_v22 }
 0xc14   : >> { %v4030_v45 = vpop.f32.mrf.mxu1  ;;  %4360 = vmax.xlane.f32.xlu0 %v4359_v19  ;;  %4312 = vmax.xlane.f32.xlu1 %v4311_v13  ;;  %v8360_v20 = vpop.f32.mrf.mxu0  ;;  %v5741_v13 = vunpack.c.l.bf16 %v5782_v63 }
 0xc15   : >> { %v8362_v15 = vadd.f32 %v5737_v11, %v4030_v45  ;;  %v4317_v11 = vsel %vm2130_vm8, %v8366_v33, -inf }
 0xc16   : >> { %v6309_v62 = vpop.f32.mrf.mxu1  ;;  %v6320_v55 = vpop.f32.mrf.mxu0 }
 0xc17   : >> { %v4362_v43 = vsel %vm2130_vm8, %v8362_v15, -inf }
 0xc18   : >> { %v4033_v31 = vpop.f32.mrf.mxu1  ;;  %4363 = vmax.xlane.f32.xlu1 %v4362_v43  ;;  %4315 = vmax.xlane.f32.xlu0 %v4314_v12  ;;  %v8370_v56 = vpop.f32.mrf.mxu0  ;;  %v8388_v43 = vadd.f32 %v5710_v46, %v8327_v34 }
 0xc19   : >> { %v8372_v19 = vadd.f32 %v5738_v58, %v4033_v31  ;;  %v4320_v58 = vsel %vm2130_vm8, %v8377_v5, -inf }
 0xc1a   : >> { %v6310_v45 = vpop.f32.mrf.mxu1  ;;  %v6323_v62 = vpop.f32.mrf.mxu0 }
 0xc1b   : >> { %v4365_v55 = vsel %vm2130_vm8, %v8372_v19, -inf }
 0xc1c   : >> { %v4038_v23 = vpop.f32.mrf.mxu1  ;;  %4366 = vmax.xlane.f32.xlu0 %v4365_v55  ;;  %4318 = vmax.xlane.f32.xlu1 %v4317_v11  ;;  %v8381_v63 = vpop.f32.mrf.mxu0 }
 0xc1d   : >> { %v8383_v12 = vadd.f32 %v5741_v13, %v4038_v23  ;;  %v4323_v23 = vsel %vm2130_vm8, %v8388_v43, -inf }
 0xc1e   : >> { %v6313_v22 = vpop.f32.mrf.mxu1  ;;  %v6324_v10 = vpop.f32.mrf.mxu0 }
 0xc1f   : >> { %v4368_v37 = vsel %vm2130_vm8, %v8383_v12, -inf }
 0xc20   : >> { %4369 = vmax.xlane.f32.xlu1 %v4368_v37  ;;  %4321 = vmax.xlane.f32.xlu0 %v4320_v58  ;;  %v4041_v31 = vpop.f32.mrf.mxu1  ;;  %v8392_v45 = vpop.f32.mrf.mxu0 }
 0xc22   : >> { %v6314_v13 = vpop.f32.mrf.mxu1  ;;  %v6327_v11 = vpop.f32.mrf.mxu0 }
 0xc24   : >> { %4324 = vmax.xlane.f32.xlu0 %v4323_v23  ;;  %v4125_v62 = vpop.f32.mrf.mxu0 }
 0xc26   : >> { %v6328_v34 = vpop.f32.mrf.mxu0 }
 0xc27   : >> { %v8406_v34 = vpop.permute.xlu1 %3238 }
 0xc28   : >> { %v8396_v46 = vpop.f32.mrf.mxu0 }
 0xc2a   : >> { %v6347_v55 = vpop.f32.mrf.mxu0 }
 0xc2b   : >> { %v8409_v55 = vpop.permute.xlu1 %3248 }
 0xc2c   : >> { %v8398_v22 = vpop.f32.mrf.mxu0 }
 0xc2e   : >> { %v6348_v10 = vpop.f32.mrf.mxu0 }
 0xc30   : >> { %v8400_v58 = vpop.f32.mrf.mxu0 }
 0xc32   : >> { %v6351_v37 = vpop.f32.mrf.mxu0 }
 0xc33   : >> { %v5754_v37 = vunpack.c.h.bf16 %v5785_v41  ;;  %v8422_v41 = vadd.f32 %v5725_v50, %v8331_v26 }
 0xc34   : >> { %v8402_v31 = vpop.f32.mrf.mxu0 }
 0xc35   : >> { %v4344_v26 = vsel %vm2130_vm8, %v8422_v41, -inf }
 0xc36   : >> { %v6352_v25 = vpop.f32.mrf.mxu0 }
 0xc37   : >> { %v5786_v25 = vld [vmem:[%s8273_s19 + $0x80] sm:$0xff]  }
 0xc38   : >> { %v8404_v13 = vpop.f32.mrf.mxu0  ;;  %v5757_v27 = vunpack.c.l.bf16 %v5786_v25 }
 0xc3a   : >> { %v6355_v23 = vpop.f32.mrf.mxu0 }
 0xc3c   : >> { %v4293_v11 = vpop.f32.mrf.mxu0 }
 0xc3e   : >> { %v6356_v62 = vpop.f32.mrf.mxu0 }
 0xc3f   : >> { %v5726_v62 = vunpack.c.h.bf16 %v5778_v53 }
 0xc41   : >> { %v8428_v53 = vadd.f32 %v5726_v62, %v8333_v18  ;;  %v5730_v18 = vunpack.c.h.bf16 %v5779_v29 }
 0xc43   : >> { %v8451_v29 = vadd.f32 %v5730_v18, %v8338_v8 }
 0xc5f   : >> { %v4190_v10 = vpop.f32.mrf.mxu1 }
 0xc60   : >> { %v8412_v57 = vadd.f32 %v5753_v42, %v4190_v10  ;;  %v4341_v42 = vsel %vm2130_vm8, %v8329_v32, -inf }
 0xc61   : >> { %v4328_v61 = vpop.xlane.xlu1 %4327  ;;  %v6333_v0 = vpop.f32.mrf.mxu1 }
 0xc62   : >> { %v4386_v23 = vsel %vm2130_vm8, %v8412_v57, -inf  ;;  %v4426_v24 = vsub.f32 %v8283_v48, %v4328_v61 }
 0xc63   : >> { %v4193_v11 = vpop.f32.mrf.mxu1  ;;  %4387 = vmax.xlane.f32.xlu1 %v4386_v23  ;;  %v5758_v23 = vunpack.c.h.bf16 %v5786_v25  ;;  %v5783_v25 = vld [vmem:[%s8273_s19 + $0x68] sm:$0xff]  }
 0xc64   : >> { %v8417_v21 = vadd.f32 %v5754_v37, %v4193_v11  ;;  %v4476_v51 = vmul.f32 1.442695, %v4426_v24  ;;  %v4371_v24 = vsel %vm2130_vm8, %v8355_v59, -inf }
 0xc65   : >> { %v6334_v10 = vpop.f32.mrf.mxu1  ;;  %v4298_v39 = vpop.xlane.xlu1 %4297 }
 0xc66   : >> { %v4389_v0 = vsel %vm2130_vm8, %v8417_v21, -inf  ;;  %v5787_v10 = vld [vmem:[%s8273_s19 + $0x88] sm:$0xff]   ;;  %v4416_v61 = vsub.f32 %v8281_v1, %v4298_v39  ;;  %v4353_v39 = vsel %vm2130_vm8, %v8451_v29, -inf  ;;  %v5788_v1 = vld [vmem:[%s8273_s19 + $0x90] sm:$0xff]   ;;  %6804 = vpow2.f32 %v4476_v51 }
 0xc67   : >> { %v4198_v40 = vpop.f32.mrf.mxu1  ;;  %4390 = vmax.xlane.f32.xlu0 %v4389_v0  ;;  %4342 = vmax.xlane.f32.xlu1 %v4341_v42  ;;  %v8437_v42 = vpop.permute.xlu0 %3243  ;;  %v5762_v18 = vunpack.c.h.bf16 %v5787_v10 }
 0xc68   : >> { %v8430_v37 = vadd.f32 %v5757_v27, %v4198_v40  ;;  %v5761_v40 = vunpack.c.l.bf16 %v5787_v10  ;;  %v4347_v27 = vsel %vm2130_vm8, %v8428_v53, -inf  ;;  %v4456_v16 = vmul.f32 1.442695, %v4416_v61 }
 0xc69   : >> { %v6337_v11 = vpop.f32.mrf.mxu1  ;;  %v4334_v0 = vpop.xlane.xlu1 %4333 }
 0xc6a   : >> { %v4392_v50 = vsel %vm2130_vm8, %v8430_v37, -inf  ;;  %6806 = vpow2.f32 %v4456_v16 }
 0xc6b   : >> { %v4201_v2 = vpop.f32.mrf.mxu1  ;;  %4393 = vmax.xlane.f32.xlu1 %v4392_v50  ;;  %4345 = vmax.xlane.f32.xlu0 %v4344_v26 }
 0xc6c   : >> { %v8439_v62 = vadd.f32 %v5758_v23, %v4201_v2  ;;  %v5745_v2 = vunpack.c.l.bf16 %v5783_v25  ;;  %v5746_v23 = vunpack.c.h.bf16 %v5783_v25 }
 0xc6d   : >> { %v6338_v11 = vpop.f32.mrf.mxu1  ;;  %v4304_v8 = vpop.xlane.xlu1 %4303 }
 0xc6e   : >> { %v4395_v50 = vsel %vm2130_vm8, %v8439_v62, -inf  ;;  %v4331_v11 = vpop.xlane.xlu0 %4330  ;;  %v4418_v61 = vsub.f32 %v8297_v9, %v4304_v8  ;;  %v5789_v9 = vld [vmem:[%s8273_s19 + $0x98] sm:$0xff]   ;;  %s5419_s19 = scalar_lea.sflag (%p2634_p11), [#allocation3], %s242_s9 }
 0xc6f   : >> { %v4206_v26 = vpop.f32.mrf.mxu1  ;;  %4396 = vmax.xlane.f32.xlu0 %v4395_v50  ;;  %4348 = vmax.xlane.f32.xlu1 %v4347_v27  ;;  %v4350_v27 = vsel %vm2130_vm8, %v8445_v44, -inf  ;;  %v5749_v50 = vunpack.c.l.bf16 %v5784_v36 }
 0xc70   : >> { %v8454_v28 = vadd.f32 %v5761_v40, %v4206_v26  ;;  %v8462_v40 = vadd.f32 %v5745_v2, %v8360_v20  ;;  %v8465_v26 = vadd.f32 %v5746_v23, %v8370_v56  ;;  %v5766_v20 = vunpack.c.h.bf16 %v5788_v1 }
 0xc71   : >> { %v6341_v60 = vpop.f32.mrf.mxu1  ;;  %v8474_v56 = vadd.f32 %v5749_v50, %v8381_v63  ;;  %v8477_v2 = vadd.f32 %v5762_v18, %v8396_v46  ;;  %v5765_v63 = vunpack.c.l.bf16 %v5788_v1  ;;  %v4460_v8 = vmul.f32 1.442695, %v4418_v61 }
 0xc72   : >> { %v4398_v48 = vsel %vm2130_vm8, %v8454_v28, -inf  ;;  %v4301_v10 = vpop.xlane.xlu0 %4300  ;;  %v4374_v23 = vsel %vm2130_vm8, %v8462_v40, -inf  ;;  %v4377_v51 = vsel %vm2130_vm8, %v8465_v26, -inf }
 0xc73   : >> { %4399 = vmax.xlane.f32.xlu1 %v4398_v48  ;;  %4351 = vmax.xlane.f32.xlu0 %v4350_v27  ;;  %v4209_v25 = vpop.f32.mrf.mxu1  ;;  %v4428_v48 = vsub.f32 %v8299_v7, %v4334_v0  ;;  %v5750_v27 = vunpack.c.h.bf16 %v5784_v36  ;;  %v4427_v7 = vsub.f32 %v8291_v38, %v4331_v11  ;;  %v4340_v0 = vpop.xlane.xlu1 %4339  ;;  %v4380_v50 = vsel %vm2130_vm8, %v8474_v56, -inf }
 0xc74   : >> { %v4401_v18 = vsel %vm2130_vm8, %v8477_v2, -inf  ;;  %v8493_v25 = vadd.f32 %v5766_v20, %v8400_v58  ;;  %v4417_v16 = vsub.f32 %v8289_v14, %v4301_v10 }
 0xc75   : >> { %v6342_v60 = vpop.f32.mrf.mxu1  ;;  %v4480_v36 = vmul.f32 1.442695, %v4428_v48  ;;  %v8486_v46 = vadd.f32 %v5750_v27, %v8392_v45  ;;  %v4478_v38 = vmul.f32 1.442695, %v4427_v7  ;;  %v8507_v27 = vpop.eup %6804 }
 0xc76   : >> { %v4337_v11 = vpop.xlane.xlu0 %4336  ;;  %v4407_v58 = vsel %vm2130_vm8, %v8493_v25, -inf  ;;  %v5769_v60 = vunpack.c.l.bf16 %v5789_v9  ;;  %v4458_v14 = vmul.f32 1.442695, %v4417_v16 }
 0xc77   : >> { %4354 = vmax.xlane.f32.xlu0 %v4353_v39  ;;  %4372 = vmax.xlane.f32.xlu1 %v4371_v24  ;;  %6808 = vpow2.f32 %v4480_v36  ;;  %v4430_v39 = vsub.f32 %v8315_v49, %v4340_v0  ;;  %v4310_v45 = vpop.xlane.xlu1 %4309  ;;  %v8499_v24 = vadd.f32 %v5765_v63, %v8398_v22  ;;  %v4383_v1 = vsel %vm2130_vm8, %v8486_v46, -inf  ;;  %v8517_v36 = vpop.eup %6806 }
 0xc78   : >> { %6810 = vpow2.f32 %v4478_v38  ;;  %v4429_v48 = vsub.f32 %v8307_v47, %v4337_v11  ;;  %v4420_v49 = vsub.f32 %v8317_v4, %v4310_v45  ;;  %v4566_v4 = vsel %vm2130_vm8, %v8507_v27, 0.0 }
 0xc79   : >> { %6812 = vpow2.f32 %v4460_v8  ;;  %v4484_v10 = vmul.f32 1.442695, %v4430_v39  ;;  %v4404_v22 = vsel %vm2130_vm8, %v8499_v24, -inf }
 0xc7a   : >> { %v4307_v20 = vpop.xlane.xlu0 %4306  ;;  %6814 = vpow2.f32 %v4458_v14  ;;  %v4482_v7 = vmul.f32 1.442695, %v4429_v48  ;;  %v4464_v0 = vmul.f32 1.442695, %v4420_v49 }
 0xc7b   : >> { %4375 = vmax.xlane.f32.xlu0 %v4374_v23  ;;  %4378 = vmax.xlane.f32.xlu1 %v4377_v51  ;;  %v8512_v23 = vadd.f32 %v5769_v60, %v8402_v31  ;;  %v5770_v51 = vunpack.c.h.bf16 %v5789_v9  ;;  %6816 = vpow2.f32 %v4484_v10  ;;  %v4419_v47 = vsub.f32 %v8311_v30, %v4307_v20 }
 0xc7c   : >> { %6818 = vpow2.f32 %v4482_v7  ;;  %v4536_v30 = vsel %vm2130_vm8, %v8517_v36, 0.0 }
 0xc7d   : >> { %v4410_v61 = vsel %vm2130_vm8, %v8512_v23, -inf  ;;  %v8522_v31 = vadd.f32 %v5770_v51, %v8404_v13  ;;  %v4462_v63 = vmul.f32 1.442695, %v4419_v47  ;;  %6820 = vpow2.f32 %v4464_v0 }
 0xc7f   : >> { %4381 = vmax.xlane.f32.xlu0 %v4380_v50  ;;  %4402 = vmax.xlane.f32.xlu1 %v4401_v18  ;;  %v4413_v18 = vsel %vm2130_vm8, %v8522_v31, -inf  ;;  %6822 = vpow2.f32 %v4462_v63 }
 0xc83   : >> { %4384 = vmax.xlane.f32.xlu0 %v4383_v1  ;;  %4408 = vmax.xlane.f32.xlu1 %v4407_v58 }
 0xc84   : >> { %v8526_v50 = vpop.eup %6808 }
 0xc85   : >> { %v8530_v38 = vpop.eup %6810  ;;  %v4572_v13 = vsel %vm2130_vm8, %v8526_v50, 0.0 }
 0xc86   : >> { %v8534_v16 = vpop.eup %6812  ;;  %v4569_v8 = vsel %vm2130_vm8, %v8530_v38, 0.0 }
 0xc87   : >> { %4405 = vmax.xlane.f32.xlu0 %v4404_v22  ;;  %4567 = vadd.xlane.f32.xlu1 %v4566_v4  ;;  %v8536_v11 = vpop.eup %6814  ;;  %v4542_v9 = vsel %vm2130_vm8, %v8534_v16, 0.0 }
 0xc88   : >> { %v8542_v39 = vpop.eup %6816  ;;  %v4539_v58 = vsel %vm2130_vm8, %v8536_v11, 0.0 }
 0xc89   : >> { %v8544_v45 = vpop.eup %6818  ;;  %v4578_v1 = vsel %vm2130_vm8, %v8542_v39, 0.0 }
 0xc8a   : >> { %v8550_v60 = vpop.eup %6820  ;;  %v4575_v49 = vsel %vm2130_vm8, %v8544_v45, 0.0 }
 0xc8b   : >> { %4537 = vadd.xlane.f32.xlu1 %v4536_v30  ;;  %4411 = vmax.xlane.f32.xlu0 %v4410_v61  ;;  %v4548_v10 = vsel %vm2130_vm8, %v8550_v60, 0.0 }
 0xc8c   : >> { %v8557_v20 = vpop.eup %6822 }
 0xc8f   : >> { %4573 = vadd.xlane.f32.xlu1 %v4572_v13  ;;  %4414 = vmax.xlane.f32.xlu0 %v4413_v18 }
 0xc93   : >> { %4543 = vadd.xlane.f32.xlu1 %v4542_v9  ;;  %4570 = vadd.xlane.f32.xlu0 %v4569_v8 }
 0xc97   : >> { %4579 = vadd.xlane.f32.xlu1 %v4578_v1  ;;  %4540 = vadd.xlane.f32.xlu0 %v4539_v58 }
 0xc99   : >> { %v4358_v14 = vpop.xlane.xlu1 %4357 }
 0xc9a   : >> { %v4436_v48 = vsub.f32 %v8342_v6, %v4358_v14  ;;  %v4545_v6 = vsel %vm2130_vm8, %v8557_v20, 0.0 }
 0xc9b   : >> { %4549 = vadd.xlane.f32.xlu1 %v4548_v10  ;;  %4576 = vadd.xlane.f32.xlu0 %v4575_v49 }
 0xc9c   : >> { %v4496_v22 = vmul.f32 1.442695, %v4436_v48 }
 0xc9d   : >> { %v4313_v51 = vpop.xlane.xlu1 %4312  ;;  %v4361_v7 = vpop.xlane.xlu0 %4360 }
 0xc9e   : >> { %6824 = vpow2.f32 %v4496_v22  ;;  %v4421_v47 = vsub.f32 %v8344_v35, %v4313_v51  ;;  %v4437_v0 = vsub.f32 %v8349_v54, %v4361_v7 }
 0xc9f   : >> { %4546 = vadd.xlane.f32.xlu0 %v4545_v6 }
 0xca0   : >> { %v4466_v4 = vmul.f32 1.442695, %v4421_v47  ;;  %v4498_v61 = vmul.f32 1.442695, %v4437_v0 }
 0xca1   : >> { %v4364_v63 = vpop.xlane.xlu1 %4363  ;;  %v4316_v30 = vpop.xlane.xlu0 %4315 }
 0xca2   : >> { %6826 = vpow2.f32 %v4466_v4  ;;  %v4438_v18 = vsub.f32 %v8362_v15, %v4364_v63  ;;  %v4422_v13 = vsub.f32 %v8353_v52, %v4316_v30 }
 0xca3   : >> { %6828 = vpow2.f32 %v4498_v61 }
 0xca4   : >> { %v4500_v9 = vmul.f32 1.442695, %v4438_v18  ;;  %v4468_v8 = vmul.f32 1.442695, %v4422_v13 }
 0xca5   : >> { %v4319_v1 = vpop.xlane.xlu1 %4318  ;;  %v4367_v35 = vpop.xlane.xlu0 %4366 }
 0xca6   : >> { %6830 = vpow2.f32 %v4500_v9  ;;  %v4423_v54 = vsub.f32 %v8366_v33, %v4319_v1  ;;  %v4439_v58 = vsub.f32 %v8372_v19, %v4367_v35 }
 0xca7   : >> { %6832 = vpow2.f32 %v4468_v8 }
 0xca8   : >> { %v4470_v14 = vmul.f32 1.442695, %v4423_v54  ;;  %v4502_v48 = vmul.f32 1.442695, %v4439_v58 }
 0xca9   : >> { %v4370_v10 = vpop.xlane.xlu1 %4369  ;;  %v4322_v49 = vpop.xlane.xlu0 %4321 }
 0xcaa   : >> { %6834 = vpow2.f32 %v4470_v14  ;;  %v4440_v15 = vsub.f32 %v8383_v12, %v4370_v10  ;;  %v4424_v52 = vsub.f32 %v8377_v5, %v4322_v49 }
 0xcab   : >> { %v8569_v22 = vpop.eup %6824  ;;  %6836 = vpow2.f32 %v4502_v48 }
 0xcac   : >> { %v4504_v51 = vmul.f32 1.442695, %v4440_v15  ;;  %v4472_v7 = vmul.f32 1.442695, %v4424_v52  ;;  %v4596_v33 = vsel %vm2130_vm8, %v8569_v22, 0.0 }
 0xcad   : >> { %4597 = vadd.xlane.f32.xlu1 %v4596_v33  ;;  %v4325_v19 = vpop.xlane.xlu0 %4324 }
 0xcae   : >> { %6838 = vpow2.f32 %v4504_v51  ;;  %v4425_v47 = vsub.f32 %v8388_v43, %v4325_v19 }
 0xcaf   : >> { %v8574_v0 = vpop.eup %6826  ;;  %6840 = vpow2.f32 %v4472_v7 }
 0xcb0   : >> { %v8576_v6 = vpop.eup %6828  ;;  %v4474_v12 = vmul.f32 1.442695, %v4425_v47  ;;  %v4551_v5 = vsel %vm2130_vm8, %v8574_v0, 0.0 }
 0xcb1   : >> { %4552 = vadd.xlane.f32.xlu1 %v4551_v5  ;;  %v4599_v4 = vsel %vm2130_vm8, %v8576_v6, 0.0 }
 0xcb2   : >> { %6842 = vpow2.f32 %v4474_v12  ;;  %4600 = vadd.xlane.f32.xlu0 %v4599_v4 }
 0xcb3   : >> { %v8582_v61 = vpop.eup %6830 }
 0xcb4   : >> { %v8584_v63 = vpop.eup %6832  ;;  %v4602_v43 = vsel %vm2130_vm8, %v8582_v61, 0.0 }
 0xcb5   : >> { %4603 = vadd.xlane.f32.xlu1 %v4602_v43  ;;  %v4554_v30 = vsel %vm2130_vm8, %v8584_v63, 0.0 }
 0xcb6   : >> { %4555 = vadd.xlane.f32.xlu0 %v4554_v30 }
 0xcb7   : >> { %v8590_v18 = vpop.eup %6834 }
 0xcb8   : >> { %v8592_v13 = vpop.eup %6836  ;;  %v4557_v9 = vsel %vm2130_vm8, %v8590_v18, 0.0 }
 0xcb9   : >> { %4558 = vadd.xlane.f32.xlu1 %v4557_v9  ;;  %v4605_v8 = vsel %vm2130_vm8, %v8592_v13, 0.0 }
 0xcba   : >> { %4606 = vadd.xlane.f32.xlu0 %v4605_v8 }
 0xcbb   : >> { %v8598_v1 = vpop.eup %6838 }
 0xcbc   : >> { %v8600_v35 = vpop.eup %6840  ;;  %v4608_v54 = vsel %vm2130_vm8, %v8598_v1, 0.0 }
 0xcbd   : >> { %4609 = vadd.xlane.f32.xlu1 %v4608_v54  ;;  %v4560_v58 = vsel %vm2130_vm8, %v8600_v35, 0.0 }
 0xcbe   : >> { %4561 = vadd.xlane.f32.xlu0 %v4560_v58 }
 0xcbf   : >> { %v8606_v14 = vpop.eup %6842 }
 0xcc0   : >> { %v4563_v48 = vsel %vm2130_vm8, %v8606_v14, 0.0 }
 0xcc2   : >> { %4564 = vadd.xlane.f32.xlu0 %v4563_v48 }
 0xcec   : >> { %v4388_v10 = vpop.xlane.xlu1 %4387 }
 0xced   : >> { %v4446_v58 = vsub.f32 %v8412_v57, %v4388_v10 }
 0xcf0   : >> { %v4343_v49 = vpop.xlane.xlu1 %4342  ;;  %v8610_v15 = vpop.xlane.xlu0 %4390 }
 0xcf1   : >> { %v4431_v52 = vsub.f32 %v8329_v32, %v4343_v49 }
 0xcf3   : >> { %v4486_v51 = vmul.f32 1.442695, %v4431_v52 }
 0xcf4   : >> { %v4394_v7 = vpop.xlane.xlu1 %4393  ;;  %v4346_v33 = vpop.xlane.xlu0 %4345 }
 0xcf5   : >> { %6844 = vpow2.f32 %v4486_v51  ;;  %v4432_v19 = vsub.f32 %v8422_v41, %v4346_v33  ;;  %v4448_v43 = vsub.f32 %v8430_v37, %v4394_v7  ;;  %v4516_v37 = vmul.f32 1.442695, %v4446_v58 }
 0xcf7   : >> { %v4488_v47 = vmul.f32 1.442695, %v4432_v19  ;;  %v4520_v41 = vmul.f32 1.442695, %v4448_v43 }
 0xcf8   : >> { %v4349_v12 = vpop.xlane.xlu1 %4348  ;;  %v8614_v5 = vpop.xlane.xlu0 %4396 }
 0xcf9   : >> { %v4433_v4 = vsub.f32 %v8428_v53, %v4349_v12  ;;  %6846 = vpow2.f32 %v4488_v47 }
 0xcfb   : >> { %v4490_v30 = vmul.f32 1.442695, %v4433_v4 }
 0xcfc   : >> { %v4400_v9 = vpop.xlane.xlu1 %4399  ;;  %v4352_v8 = vpop.xlane.xlu0 %4351 }
 0xcfd   : >> { %6848 = vpow2.f32 %v4490_v30  ;;  %v4450_v32 = vsub.f32 %v8454_v28, %v4400_v9  ;;  %v4434_v54 = vsub.f32 %v8445_v44, %v4352_v8 }
 0xcff   : >> { %v4524_v48 = vmul.f32 1.442695, %v4450_v32  ;;  %v4492_v49 = vmul.f32 1.442695, %v4434_v54 }
 0xd00   : >> { %v4373_v52 = vpop.xlane.xlu1 %4372  ;;  %v4355_v51 = vpop.xlane.xlu0 %4354 }
 0xd01   : >> { %6850 = vpow2.f32 %v4524_v48  ;;  %v4435_v53 = vsub.f32 %v8451_v29, %v4355_v51  ;;  %v4441_v7 = vsub.f32 %v8355_v59, %v4373_v52 }
 0xd02   : >> { %v8622_v33 = vpop.eup %6844  ;;  %6852 = vpow2.f32 %v4492_v49 }
 0xd03   : >> { %9059 = vst [vmem:[#allocation27_spill] sm:$0xff] %v8622_v33  ;;  %6854 = vpow2.f32 %v4520_v41  ;;  %v4494_v28 = vmul.f32 1.442695, %v4435_v53  ;;  %v4581_v44 = vsel %vm2130_vm8, %v8622_v33, 0.0  ;;  %v4506_v29 = vmul.f32 1.442695, %v4441_v7 }
 0xd04   : >> { %v4379_v57 = vpop.xlane.xlu1 %4378  ;;  %4582 = vadd.xlane.f32.xlu1 %v4581_v44  ;;  %v8627_v10 = vpop.xlane.xlu0 %4375 }
 0xd05   : >> { %6856 = vpow2.f32 %v4494_v28  ;;  %v4443_v47 = vsub.f32 %v8465_v26, %v4379_v57 }
 0xd06   : >> { %v8629_v19 = vpop.eup %6846  ;;  %6858 = vpow2.f32 %v4516_v37 }
 0xd07   : >> { %9060 = vst [vmem:[#allocation28_spill] sm:$0xff] %v8629_v19  ;;  %v4584_v59 = vsel %vm2130_vm8, %v8629_v19, 0.0  ;;  %6860 = vpow2.f32 %v4506_v29  ;;  %v4510_v30 = vmul.f32 1.442695, %v4443_v47  ;;  %v2667_v19 = vld [vmem:[%s8038_s28 + $0x98] sm:$0xff] }
 0xd08   : >> { %v8632_v12 = vpop.xlane.xlu1 %4402  ;;  %v8636_v4 = vpop.xlane.xlu0 %4381  ;;  %4585 = vadd.xlane.f32.xlu0 %v4584_v59 }
 0xd09   : >> { %6862 = vpow2.f32 %v4510_v30 }
 0xd0a   : >> { %v8638_v43 = vpop.eup %6848 }
 0xd0b   : >> { %9061 = vst [vmem:[#allocation29_spill] sm:$0xff] %v8638_v43  ;;  %v4587_v9 = vsel %vm2130_vm8, %v8638_v43, 0.0 }
 0xd0c   : >> { %4588 = vadd.xlane.f32.xlu1 %v4587_v9  ;;  %v8642_v8 = vpop.xlane.xlu1 %4408  ;;  %v8644_v32 = vpop.xlane.xlu0 %4384 }
 0xd0e   : >> { %v8646_v26 = vpop.eup %6850 }
 0xd0f   : >> { %9062 = vst [vmem:[#allocation30_spill] sm:$0xff] %v8646_v26  ;;  %v8648_v54 = vpop.eup %6852  ;;  %v4638_v58 = vsel %vm2130_vm8, %v8646_v26, 0.0 }
 0xd10   : >> { %9063 = vst [vmem:[#allocation31_spill] sm:$0xff] %v8648_v54  ;;  %v8652_v41 = vpop.eup %6854  ;;  %4639 = vadd.xlane.f32.xlu1 %v4638_v58  ;;  %v8654_v48 = vpop.xlane.xlu1 %4567  ;;  %v4590_v49 = vsel %vm2130_vm8, %v8648_v54, 0.0 }
 0xd11   : >> { %9064 = vst [vmem:[#allocation32_spill] sm:$0xff] %v8652_v41  ;;  %v8658_v52 = vpop.xlane.xlu0 %4405  ;;  %4591 = vadd.xlane.f32.xlu0 %v4590_v49  ;;  %v4632_v53 = vsel %vm2130_vm8, %v8652_v41, 0.0 }
 0xd12   : >> { %v8660_v51 = vpop.eup %6856 }
 0xd13   : >> { %9065 = vst [vmem:[#allocation33_spill] sm:$0xff] %v8660_v51  ;;  %v8664_v37 = vpop.eup %6858  ;;  %v4593_v28 = vsel %vm2130_vm8, %v8660_v51, 0.0 }
 0xd14   : >> { %9066 = vst [vmem:[#allocation34_spill] sm:$0xff] %v8664_v37  ;;  %4633 = vadd.xlane.f32.xlu1 %v4632_v53  ;;  %v4538_v7 = vpop.xlane.xlu1 %4537  ;;  %v4626_v57 = vsel %vm2130_vm8, %v8664_v37, 0.0  ;;  %v8672_v29 = vpop.eup %6860 }
 0xd15   : >> { %v8668_v44 = vpop.xlane.xlu0 %4411  ;;  %4594 = vadd.xlane.f32.xlu0 %v4593_v28  ;;  %9067 = vst [vmem:[#allocation35_spill] sm:$0xff] %v8672_v29  ;;  %v4611_v30 = vsel %vm2130_vm8, %v8672_v29, 0.0  ;;  %v2668_v29 = vld [vmem:[%s8038_s28 + $0xa0] sm:$0xff] }
 0xd16   : >> { %v8678_v9 = vpop.eup %6862 }
 0xd17   : >> { %9068 = vst [vmem:[#allocation36_spill] sm:$0xff] %v8678_v9  ;;  %v4617_v53 = vsel %vm2130_vm8, %v8678_v9, 0.0 }
 0xd18   : >> { %4627 = vadd.xlane.f32.xlu1 %v4626_v57  ;;  %v4574_v47 = vpop.xlane.xlu1 %4573 }
 0xd19   : >> { %v8674_v59 = vpop.xlane.xlu0 %4414 }
 0xd1c   : >> { %4612 = vadd.xlane.f32.xlu1 %v4611_v30  ;;  %v4544_v58 = vpop.xlane.xlu1 %4543  ;;  %v4449_v30 = vsub.f32 %v8439_v62, %v8614_v5  ;;  %v4444_v62 = vsub.f32 %v8474_v56, %v8636_v4  ;;  %v9069_v5 = vmov 0.0   ;;  %v4445_v56 = vsub.f32 %v8486_v46, %v8644_v32 }
 0xd1d   : >> { %v8680_v49 = vpop.xlane.xlu0 %4570 }
 0xd1e   : >> { %v4522_v54 = vmul.f32 1.442695, %v4449_v30  ;;  %v4514_v46 = vmul.f32 1.442695, %v4445_v56 }
 0xd20   : >> { %4618 = vadd.xlane.f32.xlu1 %v4617_v53  ;;  %v4580_v28 = vpop.xlane.xlu1 %4579 }
 0xd21   : >> { %v4541_v57 = vpop.xlane.xlu0 %4540 }
 0xd24   : >> { %v4550_v37 = vpop.xlane.xlu1 %4549 }
 0xd25   : >> { %v4577_v41 = vpop.xlane.xlu0 %4576  ;;  %6864 = vrcp.f32 %v4550_v37  ;;  %v4442_v37 = vsub.f32 %v8462_v40, %v8627_v10 }
 0xd26   : >> { %6866 = vrcp.f32 %v4544_v58 }
 0xd29   : >> { %v4547_v33 = vpop.xlane.xlu0 %4546 }
 0xd2a   : >> { %6868 = vrcp.f32 %v4547_v33 }
 0xd2b   : >> { %3253 = vperm.xlu0 %6769, %v2667_v19   ;;  %6870 = vrcp.f32 %v4541_v57 }
 0xd2c   : >> { %6872 = vrcp.f32 %v4538_v7 }
 0xd2d   : >> { %6874 = vrcp.f32 %v4580_v28  ;;  %v4451_v28 = vsub.f32 %v8477_v2, %v8632_v12  ;;  %v4453_v2 = vsub.f32 %v8493_v25, %v8642_v8  ;;  %v4452_v25 = vsub.f32 %v8499_v24, %v8658_v52 }
 0xd2e   : >> { %6876 = vpow2.f32 %v4522_v54  ;;  %v4447_v54 = vsub.f32 %v8417_v21, %v8610_v15  ;;  %v4454_v24 = vsub.f32 %v8512_v23, %v8668_v44  ;;  %v4455_v23 = vsub.f32 %v8522_v31, %v8674_v59 }
 0xd2f   : >> { %v4526_v57 = vmul.f32 1.442695, %v4451_v28 }
 0xd30   : >> { %v4518_v15 = vmul.f32 1.442695, %v4447_v54  ;;  %v4534_v31 = vmul.f32 1.442695, %v4455_v23 }
 0xd31   : >> { %3258 = vperm.xlu1 %6768, %v2668_v29  }
 0xd32   : >> { %v6865_v43 = vpop.eup %6864 }
 0xd33   : >> { %v4700_v53 = vmul.f32 %v6865_v43, %v8550_v60  ;;  %v6867_v9 = vpop.eup %6866  ;;  %v4508_v60 = vmul.f32 1.442695, %v4442_v37 }
 0xd34   : >> { %v4698_v43 = vmul.f32 %v6867_v9, %v8534_v16 }
 0xd35   : >> { %v4738_v58 = vpack.c.bf16 %v4700_v53, %v4700_v53  ;;  %6878 = vpow2.f32 %v4508_v60 }
 0xd36   : >> { %v8691_v26 = vpop.xlane.xlu1 %4597  ;;  %6880 = vrcp.f32 %v4577_v41 }
 0xd37   : >> { %v6869_v51 = vpop.eup %6868  ;;  %v4770_v33 = vsel %vm2130_vm8, %v4738_v58, 0  ;;  %v3471_v58 = vadd.f32 %v8259_v3, %v8406_v34 }
 0xd38   : >> { %v4699_v19 = vmul.f32 %v6869_v51, %v8557_v20  ;;  %6358 = vmatpush3.bf16.xpose.msra.mxu1 %v4770_v33  ;;  %v6871_v29 = vpop.eup %6870  ;;  %v4512_v20 = vmul.f32 1.442695, %v4444_v62  ;;  %v4528_v33 = vmul.f32 1.442695, %v4452_v25 }
 0xd39   : >> { %6359 = vmatprep.subr.bf16.mxu1 %v9069_v5  ;;  %v6873_v4 = vpop.eup %6872  ;;  %v4697_v9 = vmul.f32 %v6871_v29, %v8536_v11  ;;  %v4530_v11 = vmul.f32 1.442695, %v4453_v2  ;;  %v3533_v3 = vpack.c.bf16 %v3471_v58, %v3471_v58 }
 0xd3a   : >> { %v8699_v40 = vpop.xlane.xlu1 %4552  ;;  %v4737_v7 = vpack.c.bf16 %v4699_v19, %v4698_v43  ;;  %6882 = vpow2.f32 %v4512_v20  ;;  %v4696_v21 = vmul.f32 %v6873_v4, %v8517_v36  ;;  %v6875_v30 = vpop.eup %6874 }
 0xd3b   : >> { %v8701_v10 = vpop.xlane.xlu0 %4600  ;;  %6884 = vrcp.f32 %v4574_v47  ;;  %v8723_v8 = vpop.eup %6876  ;;  %v4710_v37 = vmul.f32 %v6875_v30, %v8542_v39 }
 0xd3c   : >> { %v4767_v51 = vsel %vm2130_vm8, %v4737_v7, 0  ;;  %v4736_v41 = vpack.c.bf16 %v4697_v9, %v4696_v21  ;;  %6886 = vpow2.f32 %v4526_v57  ;;  %v4635_v52 = vsel %vm2130_vm8, %v8723_v8, 0.0 }
 0xd3d   : >> { %6888 = vpow2.f32 %v4514_v46  ;;  %v4744_v19 = vpack.c.bf16 %v4710_v37, %v4710_v37 }
 0xd3e   : >> { %v8715_v12 = vpop.xlane.xlu1 %4603  ;;  %6890 = vpow2.f32 %v4518_v15  ;;  %v4764_v36 = vsel %vm2130_vm8, %v4736_v41, 0 }
 0xd3f   : >> { %v8709_v16 = vpop.xlane.xlu0 %4555  ;;  %6892 = vrcp.f32 %v8680_v49  ;;  %v4874_v7 = vsel %vm2130_vm8, %v4744_v19, 0 }
 0xd40   : >> { %6360 = vmatpush3.bf16.xpose.msra.mxu1 %v4767_v51  ;;  %6894 = vpow2.f32 %v4530_v11 }
 0xd41   : >> { %6361 = vmatprep.subr.bf16.mxu1 %v9069_v5  ;;  %6896 = vrcp.f32 %v8654_v48  ;;  %v4532_v48 = vmul.f32 1.442695, %v4454_v24 }
 0xd42   : >> { %v4559_v53 = vpop.xlane.xlu1 %4558  ;;  %v8736_v49 = vpop.eup %6878 }
 0xd43   : >> { %v8719_v32 = vpop.xlane.xlu0 %4606  ;;  %v6881_v62 = vpop.eup %6880  ;;  %v4614_v44 = vsel %vm2130_vm8, %v8736_v49, 0.0 }
 0xd44   : >> { %v4709_v29 = vmul.f32 %v6881_v62, %v8544_v45 }
 0xd46   : >> { %v4610_v34 = vpop.xlane.xlu1 %4609 }
 0xd47   : >> { %v4562_v47 = vpop.xlane.xlu0 %4561  ;;  %v8738_v60 = vpop.eup %6882 }
 0xd48   : >> { %6362 = vmatpush3.bf16.xpose.msra.mxu1 %v4764_v36  ;;  %v6885_v43 = vpop.eup %6884  ;;  %v4620_v59 = vsel %vm2130_vm8, %v8738_v60, 0.0 }
 0xd49   : >> { %6377 = vmatprep.subr.bf16.mxu1 %v9069_v5  ;;  %v8749_v28 = vpop.eup %6886  ;;  %v4708_v20 = vmul.f32 %v6885_v43, %v8526_v50  ;;  %v2671_v43 = vld [vmem:[%s8038_s28 + $0xb8] sm:$0xff] }
 0xd4a   : >> { %4636 = vadd.xlane.f32.xlu0 %v4635_v52  ;;  %v8755_v56 = vpop.eup %6888  ;;  %v4641_v51 = vsel %vm2130_vm8, %v8749_v28, 0.0 }
 0xd4b   : >> { %v4565_v39 = vpop.xlane.xlu0 %4564  ;;  %v8757_v45 = vpop.eup %6890  ;;  %v4743_v4 = vpack.c.bf16 %v4709_v29, %v4708_v20  ;;  %v4623_v57 = vsel %vm2130_vm8, %v8755_v56, 0.0 }
 0xd4c   : >> { %6898 = vrcp.f32 %v4565_v39  ;;  %v6893_v54 = vpop.eup %6892 }
 0xd4d   : >> { %6900 = vpow2.f32 %v4528_v33  ;;  %v8761_v9 = vpop.eup %6894  ;;  %v4871_v50 = vsel %vm2130_vm8, %v4743_v4, 0  ;;  %v4707_v46 = vmul.f32 %v6893_v54, %v8530_v38  ;;  %v3479_v33 = vadd.f32 %v8257_v17, %v8409_v55 }
 0xd4e   : >> { %6902 = vrcp.f32 %v4562_v47  ;;  %4615 = vadd.xlane.f32.xlu0 %v4614_v44  ;;  %v6897_v2 = vpop.eup %6896  ;;  %v4647_v21 = vsel %vm2130_vm8, %v8761_v9, 0.0 }
 0xd4f   : >> { %6904 = vrcp.f32 %v4610_v34  ;;  %6364 = vmatmul.mubr.msk.bf16.vlgmr.msra.gmra.mxu1 %vm2130_vm8, %v3533_v3  ;;  %v2670_v34 = vld [vmem:[%s8038_s28 + $0xb0] sm:$0xff] }
 0xd50   : >> { %6906 = vrcp.f32 %v4559_v53  ;;  %6378 = vmatpush3.bf16.xpose.msra.mxu1 %v4874_v7  ;;  %6383 = vmatprep.mubr.msk.bf16.mxu1 %vm7116_vm10, %v9069_v5 }
 0xd51   : >> { %6908 = vpow2.f32 %v4532_v48  ;;  %6379 = vmatprep.subr.bf16.mxu1 %v9069_v5 }
 0xd52   : >> { %4621 = vadd.xlane.f32.xlu0 %v4620_v59  ;;  %6910 = vpow2.f32 %v4534_v31 }
 0xd53   : >> { %6912 = vrcp.f32 %v8709_v16  ;;  %v4629_v16 = vsel %vm2130_vm8, %v8757_v45, 0.0 }
 0xd54   : >> { %6914 = vrcp.f32 %v8719_v32  ;;  %v4706_v32 = vmul.f32 %v6897_v2, %v8507_v27 }
 0xd55   : >> { %4642 = vadd.xlane.f32.xlu1 %v4641_v51  ;;  %6916 = vrcp.f32 %v8699_v40 }
 0xd56   : >> { %4624 = vadd.xlane.f32.xlu0 %v4623_v57  ;;  %6918 = vrcp.f32 %v8715_v12  ;;  %v4742_v30 = vpack.c.bf16 %v4707_v46, %v4706_v32 }
 0xd57   : >> { %6920 = vrcp.f32 %v8701_v10 }
 0xd58   : >> { %6380 = vmatpush3.bf16.xpose.msra.mxu1 %v4871_v50  ;;  %6922 = vrcp.f32 %v8691_v26 }
 0xd59   : >> { %v6899_v15 = vpop.eup %6898  ;;  %4648 = vadd.xlane.f32.xlu1 %v4647_v21  ;;  %6381 = vmatprep.subr.bf16.mxu1 %v9069_v5 }
 0xd5a   : >> { %v8777_v41 = vpop.eup %6900  ;;  %4630 = vadd.xlane.f32.xlu0 %v4629_v16  ;;  %v4705_v38 = vmul.f32 %v6899_v15, %v8606_v14  ;;  %v4868_v14 = vsel %vm2130_vm8, %v4742_v30, 0  ;;  %v9071_v30 = vld [vmem:[#allocation30_spill] sm:$0xff] }
 0xd5b   : >> { %v6903_v40 = vpop.eup %6902  ;;  %v4644_v12 = vsel %vm2130_vm8, %v8777_v41, 0.0 }
 0xd5c   : >> { %v6905_v11 = vpop.eup %6904  ;;  %v4741_v25 = vpack.c.bf16 %v4705_v38, %v4705_v38  ;;  %v4704_v27 = vmul.f32 %v6903_v40, %v8600_v35 }
 0xd5d   : >> { %v6907_v53 = vpop.eup %6906  ;;  %v4720_v37 = vmul.f32 %v6905_v11, %v8598_v1 }
 0xd5e   : >> { %v8782_v47 = vpop.eup %6908  ;;  %4645 = vadd.xlane.f32.xlu0 %v4644_v12  ;;  %v4822_v36 = vsel %vm2130_vm8, %v4741_v25, 0  ;;  %v4703_v58 = vmul.f32 %v6907_v53, %v8590_v18  ;;  %v3535_v18 = vpack.c.bf16 %v3479_v33, %v3479_v33  ;;  %v9072_v12 = vld [vmem:[#allocation33_spill] sm:$0xff] }
 0xd5f   : >> { %6368 = vmatpush3.bf16.xpose.msra.mxu0 %v4822_v36  ;;  %v4650_v35 = vsel %vm2130_vm8, %v8782_v47, 0.0  ;;  %v8797_v10 = vpop.eup %6910  ;;  %v4750_v52 = vpack.c.bf16 %v4720_v37, %v4720_v37 }
 0xd60   : >> { %6382 = vmatpush3.bf16.xpose.msra.mxu1 %v4868_v14  ;;  %6369 = vmatprep.subr.bf16.mxu0 %v9069_v5  ;;  %v4740_v1 = vpack.c.bf16 %v4704_v27, %v4703_v58  ;;  %v6913_v24 = vpop.eup %6912  ;;  %v4653_v17 = vsel %vm2130_vm8, %v8797_v10, 0.0  ;;  %v9073_v14 = vld [vmem:[#allocation24_spill] sm:$0xff] }
 0xd61   : >> { %6397 = vmatprep.subr.bf16.mxu1 %v9069_v5  ;;  %v6915_v39 = vpop.eup %6914  ;;  %v4702_v62 = vmul.f32 %v6913_v24, %v8584_v63  ;;  %v4978_v3 = vsel %vm2130_vm8, %v4750_v52, 0  ;;  %v9074_v52 = vld [vmem:[#allocation31_spill] sm:$0xff] }
 0xd62   : >> { %4651 = vadd.xlane.f32.xlu0 %v4650_v35  ;;  %v6917_v19 = vpop.eup %6916  ;;  %v4819_v26 = vsel %vm2130_vm8, %v4740_v1, 0  ;;  %v4719_v48 = vmul.f32 %v6915_v39, %v8592_v13 }
 0xd63   : >> { %v6919_v55 = vpop.eup %6918  ;;  %v4701_v23 = vmul.f32 %v6917_v19, %v8574_v0 }
 0xd64   : >> { %v4718_v44 = vmul.f32 %v6919_v55, %v8582_v61  ;;  %v6921_v29 = vpop.eup %6920  ;;  %v9070_v61 = vld [vmem:[#allocation22_spill] sm:$0xff] }
 0xd65   : >> { %v4739_v63 = vpack.c.bf16 %v4702_v62, %v4701_v23  ;;  %v6923_v31 = vpop.eup %6922  ;;  %v4717_v59 = vmul.f32 %v6921_v29, %v8576_v6  ;;  %v3474_v20 = vadd.f32 %v9070_v61, %v8437_v42  ;;  %v2669_v6 = vld [vmem:[%s8038_s28 + $0xa8] sm:$0xff]  ;;  %v9077_v23 = vld [vmem:[#allocation27_spill] sm:$0xff] }
 0xd66   : >> { %4654 = vadd.xlane.f32.xlu0 %v4653_v17  ;;  %v4749_v7 = vpack.c.bf16 %v4719_v48, %v4718_v44  ;;  %v4716_v4 = vmul.f32 %v6923_v31, %v8569_v22  ;;  %v9078_v29 = vld [vmem:[#allocation21_spill] sm:$0xff] }
 0xd67   : >> { %6370 = vmatpush3.bf16.xpose.msra.mxu0 %v4819_v26  ;;  %6384 = vmatmul.mubr.msk.bf16.vlgmr.msra.gmra.mxu1 %vm2130_vm8, %v3535_v18  ;;  %v4816_v13 = vsel %vm2130_vm8, %v4739_v63, 0  ;;  %v3534_v51 = vpack.c.bf16 %v3474_v20, %v3474_v20  ;;  %v9075_v18 = vld [vmem:[#allocation29_spill] sm:$0xff] }
 0xd68   : >> { %6398 = vmatpush3.bf16.xpose.msra.mxu1 %v4978_v3  ;;  %6371 = vmatprep.subr.bf16.mxu0 %v9069_v5  ;;  %v4975_v0 = vsel %vm2130_vm8, %v4749_v7, 0  ;;  %v4748_v54 = vpack.c.bf16 %v4717_v59, %v4716_v4 }
 0xd69   : >> { %6399 = vmatprep.subr.bf16.mxu1 %v9069_v5  ;;  %6403 = vmatprep.mubr.msk.bf16.mxu1 %vm7116_vm10, %v9069_v5 }
 0xd6a   : >> { %3268 = vperm.xlu1 %6768, %v2670_v34   ;;  %v4972_v57 = vsel %vm2130_vm8, %v4748_v54, 0  ;;  %v9076_v34 = vld [vmem:[#allocation28_spill] sm:$0xff] }
 0xd6e   : >> { %3273 = vperm.xlu1 %6768, %v2671_v43  }
 0xd6f   : >> { %6372 = vmatpush3.bf16.xpose.msra.mxu0 %v4816_v13 }
 0xd70   : >> { %6400 = vmatpush3.bf16.xpose.msra.mxu1 %v4975_v0  ;;  %6387 = vmatprep.subr.bf16.mxu0 %v9069_v5 }
 0xd71   : >> { %6401 = vmatprep.subr.bf16.mxu1 %v9069_v5 }
 0xd76   : >> { %6374 = vmatmul.mubr.msk.bf16.vlgmr.msra.gmra.mxu0 %vm2130_vm8, %v3534_v51  ;;  %v9079_v51 = vld [vmem:[#allocation32_spill] sm:$0xff] }
 0xd77   : >> { %6393 = vmatprep.mubr.msk.bf16.mxu0 %vm7116_vm10, %v9069_v5 }
 0xd78   : >> { %6402 = vmatpush3.bf16.xpose.msra.mxu1 %v4972_v57 }
 0xd79   : >> { %6417 = vmatprep.subr.bf16.mxu1 %v9069_v5 }
 0xd7c   : >> { %3263 = vperm.xlu0 %6769, %v2669_v6  }
 0xd8d   : >> { %v4583_v42 = vpop.xlane.xlu1 %4582 }
 0xd91   : >> { %v4586_v50 = vpop.xlane.xlu0 %4585 }
 0xd95   : >> { %v4589_v2 = vpop.xlane.xlu1 %4588 }
 0xd99   : >> { %v4640_v46 = vpop.xlane.xlu1 %4639 }
 0xd9a   : >> { %6924 = vrcp.f32 %v4640_v46  ;;  %v4592_v22 = vpop.xlane.xlu0 %4591 }
 0xd9d   : >> { %v4634_v21 = vpop.xlane.xlu1 %4633 }
 0xd9e   : >> { %v4595_v15 = vpop.xlane.xlu0 %4594 }
 0xd9f   : >> { %6926 = vrcp.f32 %v4595_v15 }
 0xda0   : >> { %6928 = vrcp.f32 %v4592_v22 }
 0xda1   : >> { %v4628_v16 = vpop.xlane.xlu1 %4627  ;;  %6930 = vrcp.f32 %v4589_v2 }
 0xda2   : >> { %6932 = vrcp.f32 %v4586_v50 }
 0xda3   : >> { %6934 = vrcp.f32 %v4583_v42 }
 0xda4   : >> { %6936 = vrcp.f32 %v4634_v21 }
 0xda5   : >> { %v8828_v32 = vpop.xlane.xlu1 %4612 }
 0xda6   : >> { %v3254_v43 = vpop.permute.xlu0 %3253 }
 0xda7   : >> { %v6925_v38 = vpop.eup %6924  ;;  %v3482_v31 = vadd.f32 %v9078_v29, %v3254_v43 }
 0xda8   : >> { %v4730_v11 = vmul.f32 %v6925_v38, %v9071_v30 }
 0xda9   : >> { %v4619_v40 = vpop.xlane.xlu1 %4618  ;;  %v3536_v13 = vpack.c.bf16 %v3482_v31, %v3482_v31 }
 0xdaa   : >> { %v4756_v58 = vpack.c.bf16 %v4730_v11, %v4730_v11 }
 0xdac   : >> { %v6927_v25 = vpop.eup %6926  ;;  %v5082_v19 = vsel %vm2130_vm8, %v4756_v58, 0 }
 0xdad   : >> { %v3259_v53 = vpop.permute.xlu1 %3258  ;;  %v4715_v36 = vmul.f32 %v6927_v25, %v9072_v12  ;;  %v6929_v27 = vpop.eup %6928  ;;  %v9080_v12 = vld [vmem:[#allocation34_spill] sm:$0xff] }
 0xdae   : >> { %v3487_v37 = vadd.f32 %v9073_v14, %v3259_v53  ;;  %v6931_v35 = vpop.eup %6930  ;;  %v4714_v39 = vmul.f32 %v6929_v27, %v9074_v52  ;;  %v9082_v52 = vld [vmem:[#allocation23_spill] sm:$0xff] }
 0xdaf   : >> { %v4747_v33 = vpack.c.bf16 %v4715_v36, %v4715_v36  ;;  %v4713_v17 = vmul.f32 %v6931_v35, %v9075_v18  ;;  %v6933_v26 = vpop.eup %6932 }
 0xdb0   : >> { %v3537_v1 = vpack.c.bf16 %v3487_v37, %v3487_v37  ;;  %v6935_v62 = vpop.eup %6934  ;;  %v4712_v48 = vmul.f32 %v6933_v26, %v9076_v34 }
 0xdb1   : >> { %v4926_v24 = vsel %vm2130_vm8, %v4747_v33, 0  ;;  %v4746_v55 = vpack.c.bf16 %v4714_v39, %v4713_v17  ;;  %v4711_v44 = vmul.f32 %v6935_v62, %v9077_v23  ;;  %v6937_v20 = vpop.eup %6936  ;;  %v9083_v17 = vld [vmem:[#allocation35_spill] sm:$0xff] }
 0xdb2   : >> { %6388 = vmatpush3.bf16.xpose.msra.mxu0 %v4926_v24  ;;  %6404 = vmatmul.mubr.msk.bf16.vlgmr.msra.gmra.mxu1 %vm2130_vm8, %v3537_v1  ;;  %v4728_v57 = vmul.f32 %v6937_v20, %v9079_v51 }
 0xdb3   : >> { %6418 = vmatpush3.bf16.xpose.msra.mxu1 %v5082_v19  ;;  %6389 = vmatprep.subr.bf16.mxu0 %v9069_v5  ;;  %v4923_v3 = vsel %vm2130_vm8, %v4746_v55, 0  ;;  %v4745_v63 = vpack.c.bf16 %v4712_v48, %v4711_v44 }
 0xdb4   : >> { %6419 = vmatprep.subr.bf16.mxu1 %v9069_v5  ;;  %6423 = vmatprep.mubr.msk.bf16.mxu1 %vm7116_vm10, %v9069_v5 }
 0xdb5   : >> { %v4920_v7 = vsel %vm2130_vm8, %v4745_v63, 0 }
 0xdba   : >> { %6390 = vmatpush3.bf16.xpose.msra.mxu0 %v4923_v3 }
 0xdbb   : >> { %6391 = vmatprep.subr.bf16.mxu0 %v9069_v5 }
 0xdc2   : >> { %6392 = vmatpush3.bf16.xpose.msra.mxu0 %v4920_v7 }
 0xdc3   : >> { %6407 = vmatprep.subr.bf16.mxu0 %v9069_v5 }
 0xdc9   : >> { %6394 = vmatmul.mubr.msk.bf16.vlgmr.msra.gmra.mxu0 %vm2130_vm8, %v3536_v13 }
 0xdca   : >> { %6413 = vmatprep.mubr.msk.bf16.mxu0 %vm7116_vm10, %v9069_v5 }
 0xdd3   : >> { %v4637_v0 = vpop.xlane.xlu0 %4636 }
 0xdd4   : >> { %6938 = vrcp.f32 %v4637_v0 }
 0xdd7   : >> { %v4616_v59 = vpop.xlane.xlu0 %4615 }
 0xddb   : >> { %v4622_v61 = vpop.xlane.xlu0 %4621 }
 0xdde   : >> { %v4643_v22 = vpop.xlane.xlu1 %4642 }
 0xddf   : >> { %v4625_v4 = vpop.xlane.xlu0 %4624 }
 0xde0   : >> { %6940 = vrcp.f32 %v4625_v4 }
 0xde1   : >> { %v6939_v54 = vpop.eup %6938  ;;  %6942 = vrcp.f32 %v4628_v16 }
 0xde2   : >> { %6944 = vrcp.f32 %v4622_v61  ;;  %v4729_v6 = vmul.f32 %v6939_v54, %v8723_v8 }
 0xde3   : >> { %6946 = vrcp.f32 %v4619_v40  ;;  %v4631_v42 = vpop.xlane.xlu0 %4630  ;;  %v4649_v40 = vpop.xlane.xlu1 %4648 }
 0xde4   : >> { %6948 = vrcp.f32 %v4631_v42  ;;  %v4755_v2 = vpack.c.bf16 %v4729_v6, %v4728_v57 }
 0xde5   : >> { %6950 = vrcp.f32 %v4616_v59 }
 0xde6   : >> { %v5079_v50 = vsel %vm2130_vm8, %v4755_v2, 0  ;;  %6952 = vrcp.f32 %v8828_v32  ;;  %v9085_v2 = vld [vmem:[#allocation25_spill] sm:$0xff] }
 0xde7   : >> { %6420 = vmatpush3.bf16.xpose.msra.mxu1 %v5079_v50  ;;  %v4646_v46 = vpop.xlane.xlu0 %4645  ;;  %v3269_v33 = vpop.permute.xlu1 %3268 }
 0xde8   : >> { %6421 = vmatprep.subr.bf16.mxu1 %v9069_v5  ;;  %v3495_v39 = vadd.f32 %v9082_v52, %v3269_v33  ;;  %v6971_v52 = vld [vmem:[%s8038_s28 + $0x38] sm:$0xff] }
 0xdea   : >> { %v3539_v18 = vpack.c.bf16 %v3495_v39, %v3495_v39 }
 0xdeb   : >> { %v4652_v21 = vpop.xlane.xlu0 %4651  ;;  %v3274_v42 = vpop.permute.xlu1 %3273 }
 0xdec   : >> { %v3498_v50 = vadd.f32 %v9085_v2, %v3274_v42 }
 0xded   : >> { %v6941_v15 = vpop.eup %6940 }
 0xdee   : >> { %v6943_v16 = vpop.eup %6942  ;;  %v4725_v38 = vmul.f32 %v6941_v15, %v8755_v56  ;;  %v9081_v56 = vld [vmem:[#allocation36_spill] sm:$0xff] }
 0xdef   : >> { %v6945_v8 = vpop.eup %6944  ;;  %v4655_v30 = vpop.xlane.xlu0 %4654  ;;  %v4726_v36 = vmul.f32 %v6943_v16, %v9080_v12  ;;  %v7117_v12 = vmov 3  }
 0xdf0   : >> { %v6947_v11 = vpop.eup %6946  ;;  %v4753_v25 = vpack.c.bf16 %v4725_v38, %v4725_v38  ;;  %6954 = vrcp.f32 %v4655_v30  ;;  %v4724_v37 = vmul.f32 %v6945_v8, %v8738_v60  ;;  %v6784_v30 = vld [vmem:[%s8893_s13] sm:$0xff]   ;;  %6770 = vset.pattern.permute.xlu1 %v7117_v12  ;;  %6771 = vset.pattern.permute.xlu0 %v7117_v12 }
 0xdf1   : >> { %v6949_v53 = vpop.eup %6948  ;;  %v4723_v58 = vmul.f32 %v6947_v11, %v9081_v56  ;;  %6956 = vrcp.f32 %v4652_v21  ;;  %v6969_v56 = vld [vmem:[%s8038_s28 + $0x30] sm:$0xff]  ;;  %v9092_v12 = vld [vmem:[#allocation13_spill] sm:$0xff] }
 0xdf2   : >> { %v5030_v27 = vsel %vm2130_vm8, %v4753_v25, 0  ;;  %v4727_v14 = vmul.f32 %v6949_v53, %v8757_v45  ;;  %v6951_v24 = vpop.eup %6950  ;;  %6958 = vrcp.f32 %v4649_v40 }
 0xdf3   : >> { %6408 = vmatpush3.bf16.xpose.msra.mxu0 %v5030_v27  ;;  %v4752_v1 = vpack.c.bf16 %v4724_v37, %v4723_v58  ;;  %v6953_v19 = vpop.eup %6952  ;;  %v4722_v60 = vmul.f32 %v6951_v24, %v8736_v49  ;;  %6960 = vrcp.f32 %v4646_v46  ;;  %v9084_v49 = vld [vmem:[#allocation26_spill] sm:$0xff]  ;;  %v3540_v46 = vpack.c.bf16 %v3498_v50, %v3498_v50  ;;  %v6967_v37 = vld [vmem:[%s8038_s28 + $0x20] sm:$0xff] }
 0xdf4   : >> { %v4754_v32 = vpack.c.bf16 %v4727_v14, %v4726_v36  ;;  %6409 = vmatprep.subr.bf16.mxu0 %v9069_v5  ;;  %v4721_v55 = vmul.f32 %v6953_v19, %v9083_v17  ;;  %6962 = vrcp.f32 %v4643_v22  ;;  %v6964_v36 = vld [vmem:[%s8038_s28] sm:$0xff]  ;;  %v6965_v27 = vld [vmem:[%s8038_s28 + $0x8] sm:$0xff]  ;;  %v6966_v14 = vld [vmem:[%s8038_s28 + $0x10] sm:$0xff] }
 0xdf5   : >> { %v5027_v45 = vsel %vm2130_vm8, %v4752_v1, 0  ;;  %5195 = vperm.xlu1 %6770, %v6964_v36   ;;  %5199 = vperm.xlu0 %6771, %v6965_v27   ;;  %v9088_v50 = vld [vmem:[#allocation17_spill] sm:$0xff] }
 0xdf6   : >> { %v5076_v35 = vsel %vm2130_vm8, %v4754_v32, 0  ;;  %v4751_v26 = vpack.c.bf16 %v4722_v60, %v4721_v55  ;;  %v6968_v32 = vld [vmem:[%s8038_s28 + $0x18] sm:$0xff] }
 0xdf7   : >> { %6422 = vmatpush3.bf16.xpose.msra.mxu1 %v5076_v35  ;;  %v3264_v3 = vpop.permute.xlu0 %3263  ;;  %v6970_v35 = vld [vmem:[%s8038_s28 + $0x28] sm:$0xff]  ;;  %s5431_s28 = sshll.u32 (%p2634_p11), %s7893_s16, 4  ;;  %s8956_s28 = int_to_ptr.vmem [resolvable:$true] %s5431_s28 }
 0xdf8   : >> { %v5024_v34 = vsel %vm2130_vm8, %v4751_v26, 0  ;;  %v3490_v23 = vadd.f32 %v9084_v49, %v3264_v3  ;;  %s6972_s20 = scalar_lea.vmem (%p2634_p11), %s8956_s28, 16  ;;  %p6979_p1 = scmp.lt.s32.totalorder (%p2634_p11), %s8956_s28, %s6977_s26 }
 0xdf9   : >> { %5203 = vperm.xlu1 %6770, %v6966_v14   ;;  %5211 = vperm.xlu0 %6771, %v6967_v37   ;;  %v9093_v14 = vld [vmem:[#allocation15_spill] sm:$0xff]  ;;  %v9098_v37 = vmov (%p2634_p11), 0.0   ;;  %p6973_p12 = scmp.ne.s32.totalorder (%p2634_p11), %s8956_s28, %s6972_s20  ;;  %p6980_p2 = scmp.lt.s32.totalorder (%p2634_p11), %s6978_s29, %s6972_s20 }
 0xdfa   : >> { %v3538_v43 = vpack.c.bf16 %v3490_v23, %v3490_v23 }
 0xdfb   : >> { %6410 = vmatpush3.bf16.xpose.msra.mxu0 %v5027_v45  ;;  %p6974_p13 = pnand (%p2634_p11), %p6973_p12, %p7193_p5  ;;  %p6981_p3 = por (%p2634_p11), %p6980_p2, %p6979_p1 }
 0xdfc   : >> { %6411 = vmatprep.subr.bf16.mxu0 %v9069_v5 }
 0xdfd   : >> { %v6955_v62 = vpop.eup %6954  ;;  %5207 = vperm.xlu1 %6770, %v6968_v32   ;;  %5219 = vperm.xlu0 %6771, %v6969_v56   ;;  %p6975_p0 = pneg (%p2634_p11), %p6974_p13 }
 0xdfe   : >> { %6424 = vmatmul.mubr.msk.bf16.vlgmr.msra.gmra.mxu1 %vm2130_vm8, %v3539_v18  ;;  %v4735_v48 = vmul.f32 %v6955_v62, %v8797_v10  ;;  %v6957_v63 = vpop.eup %6956 }
 0xdff   : >> { %v6959_v7 = vpop.eup %6958  ;;  %v4734_v31 = vmul.f32 %v6957_v63, %v8782_v47  ;;  %6445 = vmatprep.mubr.msk.bf16.mxu1 %vm2754_vm0, %v6784_v30  ;;  %v6785_v63 = vld [vmem:[%s8893_s13 + $0x8] sm:$0xff]   ;;  %p6982_p4 = pnand (%p2634_p11), %p6981_p3, %p6975_p0 }
 0xe00   : >> { %v4759_v44 = vpack.c.bf16 %v4735_v48, %v4735_v48  ;;  %v4733_v10 = vmul.f32 %v6959_v7, %v8761_v9  ;;  %v6961_v0 = vpop.eup %6960  ;;  %v6787_v7 = vld [vmem:[%s8893_s13 + $0x18] sm:$0xff]  }
 0xe01   : >> { %v6963_v61 = vpop.eup %6962  ;;  %v4732_v54 = vmul.f32 %v6961_v0, %v8777_v41  ;;  %5215 = vperm.xlu1 %6770, %v6970_v35  }
 0xe02   : >> { %v5134_v29 = vsel %vm2130_vm8, %v4759_v44, 0  ;;  %v4758_v13 = vpack.c.bf16 %v4734_v31, %v4733_v10  ;;  %v4731_v47 = vmul.f32 %v6963_v61, %v8749_v28 }
 0xe03   : >> { %6412 = vmatpush3.bf16.xpose.msra.mxu0 %v5024_v34 }
 0xe04   : >> { %6427 = vmatprep.subr.bf16.mxu0 %v9069_v5  ;;  %v5131_v4 = vsel %vm2130_vm8, %v4758_v13, 0  ;;  %v4757_v6 = vpack.c.bf16 %v4732_v54, %v4731_v47 }
 0xe05   : >> { %5223 = vperm.xlu1 %6770, %v6971_v52  }
 0xe06   : >> { %v5128_v9 = vsel %vm2130_vm8, %v4757_v6, 0 }
 0xe0a   : >> { %6414 = vmatmul.mubr.msk.bf16.vlgmr.msra.gmra.mxu0 %vm2130_vm8, %v3538_v43  ;;  %v6786_v43 = vld [vmem:[%s8893_s13 + $0x10] sm:$0xff]  }
 0xe0b   : >> { %6428 = vmatpush3.bf16.xpose.msra.mxu0 %v5134_v29  ;;  %6433 = vmatprep.mubr.msk.bf16.mxu0 %vm7116_vm10, %v9069_v5 }
 0xe0c   : >> { %6429 = vmatprep.subr.bf16.mxu0 %v9069_v5 }
 0xe0f   : >> { %v4806_v59 = vpop.f32.mrf.mxu1 }
 0xe11   : >> { %v6365_v20 = vpop.f32.mrf.mxu1 }
 0xe13   : >> { %6430 = vmatpush3.bf16.xpose.msra.mxu0 %v5131_v4  ;;  %v4809_v51 = vpop.f32.mrf.mxu1  ;;  %v9086_v4 = vld [vmem:[#allocation18_spill] sm:$0xff] }
 0xe14   : >> { %6431 = vmatprep.subr.bf16.mxu0 %v9069_v5 }
 0xe15   : >> { %v6366_v57 = vpop.f32.mrf.mxu1 }
 0xe16   : >> { %v9087_v57 = vld [vmem:[#allocation20_spill] sm:$0xff] }
 0xe1b   : >> { %6432 = vmatpush3.bf16.xpose.msra.mxu0 %v5128_v9 }
 0xe1c   : > { %6453 = vmatprep.subr.mxu0 (%p2634_p11), %v9098_v37 }
 0xe22   : >> { %6434 = vmatmul.mubr.msk.bf16.vlgmr.msra.gmra.mxu0 %vm2130_vm8, %v3540_v46 }
 0xe23   : > { %6461 = vmatprep.mubr.msk.f32.mxu0 (%p2634_p11), %vm7108_vm4, %v9098_v37 }
 0xe27   : >> { %v4910_v22 = vpop.f32.mrf.mxu1 }
 0xe29   : >> { %v6385_v41 = vpop.f32.mrf.mxu1 }
 0xe2b   : >> { %v4913_v21 = vpop.f32.mrf.mxu1 }
 0xe2d   : >> { %v6386_v15 = vpop.f32.mrf.mxu1 }
 0xe2e   : >> { %v9089_v15 = vld [vmem:[#allocation19_spill] sm:$0xff] }
 0xe36   : >> { %v4858_v16 = vpop.f32.mrf.mxu0 }
 0xe37   : >> { %v5190_v5 = vpack.c.bf16 %v4858_v16, %v4806_v59 }
 0xe38   : >> { %v6375_v38 = vpop.f32.mrf.mxu0 }
 0xe3a   : >> { %v4861_v28 = vpop.f32.mrf.mxu0 }
 0xe3b   : >> { %v9090_v28 = vld [vmem:[#allocation14_spill] sm:$0xff] }
 0xe3c   : >> { %v6376_v8 = vpop.f32.mrf.mxu0 }
 0xe70   : >> { %v5196_v29 = vpop.permute.xlu1 %5195  ;;  %v5200_v10 = vpop.permute.xlu0 %5199 }
 0xe72   : >> { %v5014_v40 = vpop.f32.mrf.mxu1 }
 0xe74   : >> { %v6405_v11 = vpop.f32.mrf.mxu1  ;;  %v5204_v31 = vpop.permute.xlu1 %5203 }
 0xe75   : >> { %v5212_v20 = vpop.permute.xlu0 %5211  ;;  %v9091_v11 = vld [vmem:[#allocation16_spill] sm:$0xff] }
 0xe76   : >> { %v5017_v25 = vpop.f32.mrf.mxu1 }
 0xe78   : >> { %v6406_v53 = vpop.f32.mrf.mxu1  ;;  %v5208_v13 = vpop.permute.xlu1 %5207 }
 0xe79   : >> { %v5220_v41 = vpop.permute.xlu0 %5219 }
 0xe7c   : >> { %v5216_v9 = vpop.permute.xlu1 %5215 }
 0xe89   : >> { %v4962_v58 = vpop.f32.mrf.mxu0 }
 0xe8a   : >> { %v5191_v44 = vpack.c.bf16 %v4962_v58, %v4910_v22 }
 0xe8b   : >> { %v6395_v33 = vpop.f32.mrf.mxu0 }
 0xe8d   : >> { %v4965_v1 = vpop.f32.mrf.mxu0 }
 0xe8f   : >> { %v6396_v24 = vpop.f32.mrf.mxu0 }
 0xebe   : >> { %v5118_v39 = vpop.f32.mrf.mxu1 }
 0xec0   : >> { %v6425_v19 = vpop.f32.mrf.mxu1 }
 0xec2   : >> { %v5121_v45 = vpop.f32.mrf.mxu1 }
 0xec4   : >> { %v6426_v60 = vpop.f32.mrf.mxu1 }
 0xeca   : >> { %v5066_v18 = vpop.f32.mrf.mxu0 }
 0xecb   : >> { %v5192_v48 = vpack.c.bf16 %v5066_v18, %v5014_v40  ;;  %v5224_v40 = vpop.permute.xlu1 %5223 }
 0xecc   : >> { %v6415_v17 = vpop.f32.mrf.mxu0 }
 0xece   : >> { %v5069_v55 = vpop.f32.mrf.mxu0 }
 0xed0   : >> { %v6416_v26 = vpop.f32.mrf.mxu0 }
 0xee2   : >> { %v5170_v62 = vpop.f32.mrf.mxu0 }
 0xee3   : >> { %v5193_v3 = vpack.c.bf16 %v5170_v62, %v5118_v39 }
 0xee4   : >> { %v6435_v34 = vpop.f32.mrf.mxu0 }
 0xee5   : >> { %6437 = vmatprep.subr.bf16.mxu1 %v5193_v3 }
 0xee6   : >> { %v5173_v49 = vpop.f32.mrf.mxu0  ;;  %6438 = vmatpush3.bf16.msra.mxu1 %v5193_v3 }
 0xee7   : >> { %6439 = vmatprep.subr.bf16.mxu1 %v5192_v48 }
 0xee8   : >> { %v6436_v23 = vpop.f32.mrf.mxu0 }
 0xeea   : >> { %6440 = vmatpush3.bf16.msra.mxu1 %v5192_v48 }
 0xeeb   : >> { %6441 = vmatprep.subr.bf16.mxu1 %v5191_v44 }
 0xeee   : >> { %6442 = vmatpush3.bf16.msra.mxu1 %v5191_v44 }
 0xeef   : >> { %6443 = vmatprep.subr.bf16.mxu1 %v5190_v5 }
 0xef2   : >> { %6444 = vmatpush3.bf16.msra.mxu1 %v5190_v5 }
 0xef5   : >> { %6446 = vmatmul.mubr.msk.bf16.vlgmr.msra.gmra.mxu1 %vm2754_vm0, %v6785_v63 }
 0xef6   : >> { %6449 = vmatprep.mubr.msk.bf16.mxu1 %vm2754_vm0, %v6786_v43 }
 0xefd   : >> { %6450 = vmatmul.mubr.msk.bf16.gmra.mxu1 %vm2754_vm0, %v6787_v7 }
 0xfb5   : >> { %v6447_v0 = vpop.f32.mrf.mxu1 }
 0xfb6   : >> { %v5301_v59 = vadd.f32 %v6447_v0, %v5204_v31 }
 0xfb7   : >> { %v5292_v61 = vpop.f32.mrf.mxu1 }
 0xfb8   : >> { %v5325_v54 = vadd.f32 %v9086_v4, %v5301_v59   ;;  %v5293_v51 = vadd.f32 %v5292_v61, %v5196_v29 }
 0xfb9   : >> { %v6448_v47 = vpop.f32.mrf.mxu1 }
 0xfba   : >> { %v5323_v6 = vadd.f32 %v9087_v57, %v5293_v51   ;;  %v5304_v42 = vadd.f32 %v6448_v47, %v5208_v13  ;;  %v9095_v60 = vmov %v5325_v54 }
 0xfbb   : >> { %v5295_v2 = vpop.f32.mrf.mxu1 }
 0xfbc   : >> { %v5326_v46 = vadd.f32 %v9088_v50, %v5304_v42   ;;  %v5296_v22 = vadd.f32 %v5295_v2, %v5200_v10 }
 0xfbd   : >> { %v6451_v21 = vpop.f32.mrf.mxu1 }
 0xfbe   : >> { %v5324_v16 = vadd.f32 %v9089_v15, %v5296_v22   ;;  %v5317_v5 = vadd.f32 %v6451_v21, %v5220_v41  ;;  %v9094_v39 = vmov %v5326_v46  ;;  %6454 = vmatpush3.xpose.msk.msra.mxu0 (%p2634_p11), %vm2130_vm8, %v5326_v46 }
 0xfbf   : >> { %v5308_v38 = vpop.f32.mrf.mxu1  ;;  %6455 = vmatprep.subr.mxu0 (%p2634_p11), %v9098_v37 }
 0xfc0   : >> { %v5329_v27 = vadd.f32 %v9090_v28, %v5317_v5   ;;  %v5309_v8 = vadd.f32 %v5308_v38, %v5212_v20  ;;  %v9096_v29 = vmov %v5324_v16 }
 0xfc1   : >> { %v6452_v30 = vpop.f32.mrf.mxu1  ;;  %v7118_v27 = vmov (%p2634_p11), 0.025  }
 0xfc2   : >> { %v5327_v21 = vadd.f32 %v9091_v11, %v5309_v8   ;;  %v5320_v25 = vadd.f32 %v6452_v30, %v5224_v40  ;;  %v9097_v40 = vmov %v5323_v6  ;;  %2636 = sbr.rel (!%p2634_p11) target bundleno = 1840 (0x730), region = 90  ;;  %6456 = vmatpush3.xpose.msk.msra.mxu0 (%p2634_p11), %vm2130_vm8, %v5325_v54 }
 0xfc3   : >> { %v5311_v53 = vpop.f32.mrf.mxu1  ;;  %6457 = vmatprep.subr.mxu0 (%p2634_p11), %v9098_v37 }
 0xfc4   : >> { %v5330_v50 = vadd.f32 %v9092_v12, %v5320_v25   ;;  %v5312_v36 = vadd.f32 %v5311_v53, %v5216_v9 }
 0xfc6   : >> { %v5328_v0 = vadd.f32 %v9093_v14, %v5312_v36   ;;  %6458 = vmatpush3.xpose.msk.msra.mxu0 (%p2634_p11), %vm2130_vm8, %v5324_v16 }
 0xfc7   : > { %6459 = vmatprep.subr.mxu0 %v9098_v37 }
 0xfca   : > { %6460 = vmatpush3.xpose.msk.msra.mxu0 %vm2130_vm8, %v5323_v6 }
 0xfcd   : > { %6462 = vmatmul.mubr.msk.f32.vlgmr.msra.gmra.mxu0 %vm2130_vm8, %v7118_v27 }
0x108d   : > { %v5412_v32 = vpop.f32.mrf.mxu0 }
0x108e   : > { %5417 = vst.msk [vmem:[%s7893_s16] sm:$0x1] %vm5416_vm3, %v5412_v32 }
0x108f   : > { %v6463_v56 = vpop.f32.mrf.mxu0 }
0x1090   : > { %6985 = shalt.err (!%p6982_p4)
}
0x1091   : > { %s6986_s16 = scalar_lea.hbm %s8954_s18, 16  ;;  %s6990_s11 = scalar_lea.hbm %s9004_s6, 32 }
0x1092   : > { %p6987_p7 = scmp.ne.s32.totalorder %s8954_s18, %s6986_s16  ;;  %p6991_p10 = scmp.lt.s32.totalorder %s8954_s18, %s9004_s6 }
0x1093   : > { %p6992_p11 = scmp.lt.s32.totalorder %s6990_s11, %s6986_s16 }
0x1094   : > { %p6988_p8 = pnand %p6987_p7, %p7193_p5 }
0x1095   : > { %p6993_p12 = por %p6992_p11, %p6991_p10 }
0x1096   : > { %p6989_p9 = pneg %p6988_p8 }
0x1098   : > { %p6994_p13 = pnand %p6993_p12, %p6989_p9 }
0x109a   : > { %6997 = shalt.err (!%p6994_p13)
}
0x109b   : > { %6474 = dma.vmem_to_hbm [thread:$0]  (%p7193_p5), %s8956_s28, 16, %s8954_s18, %s5419_s19  }
0x109c PF: > { %p6480_p0 = scmp.ge.s32.totalorder %s7068_s24, 2  ;;  %s5443_s17 = sand.u32 1, %s7056_s21  }
0x109d   : > { %s5444_s14 = scalar_lea.sflag [#allocation3], %s5443_s17 }
0x109e   : > { %p6477_p1 = pnand %p6480_p0, %p7197_p6 }
0x10a0   : > { %p6478_p2 = pneg %p6477_p1 }
0x10a2   : > { %7051 = dma.done.wait (%p6478_p2), %s5444_s14, 16  }
0x10a3   : > { %7053 = vsyncadd (%p6478_p2), %s5444_s14, 4294967280  ;;  %p16_p3 = scmp.ge.s32.totalorder %s7180_s27, 4   ;;  %s9099_s21 = smov %s7060_s22 }
0x10a4   : > { %s9100_s22 = smov %s7064_s23  ;;  %s9101_s23 = smov %s7191_s30 }
0x10a5   : > { %s9102_s24 = smov %s7180_s27  ;;  %18 = sbr.rel (!%p16_p3) target bundleno = 3 (0x3), region = 101 }
0x10aa   :  { %5448 = vsyncpa [#allocation3], 1 }
0x10ab   :  { %5450 = vsyncpa [#allocation3 + $0x1], 1 }

</bundles_post_ra>
